<compile_context>
chip_gen: v6e
topology: v6e:2x2x1
jax: 0.10.0
libtpu: 0.0.40
codegen_flags: <defaults>
</compile_context>

<pallas_src>
import math

import jax
import jax.numpy as jnp
from jax.experimental import pallas as pl
from jax.experimental.pallas import tpu as pltpu


# ----------------------------------------------------------------------------
# Bicubic (align_corners=True) interpolation matrices, matching PyTorch's
# upsample_bicubic2d with A = -0.75.
# ----------------------------------------------------------------------------
def _cubic_coeffs(t, A=-0.75):
    def c1(x):  # |x| <= 1
        return ((A + 2.0) * x - (A + 3.0)) * x * x + 1.0

    def c2(x):  # 1 < |x| < 2
        return ((A * x - 5.0 * A) * x + 8.0 * A) * x - 4.0 * A

    return [c2(t + 1.0), c1(t), c1(1.0 - t), c2(2.0 - t)]


def bicubic_matrix(in_size, out_size):
    M = [[0.0] * in_size for _ in range(out_size)]
    scale = 0.0 if out_size == 1 else (in_size - 1) / (out_size - 1)
    for o in range(out_size):
        real = scale * o
        i0 = math.floor(real)
        t = real - i0
        coeffs = _cubic_coeffs(t)
        for k in range(4):
            idx = min(max(i0 - 1 + k, 0), in_size - 1)
            M[o][idx] += coeffs[k]
    return jnp.array(M, dtype=jnp.float32)


# ----------------------------------------------------------------------------
# Pallas kernel: whole post-upsample DRRN body for one image.
# ----------------------------------------------------------------------------
PADW = 8       # aligned left/right zero-column padding of activation buffers
N_UNITS = 25   # recursive residual units


def drrn_kernel(xcol_ref, x_ref, w_in_ref, w1_ref, w2_ref, w_out_ref, out_ref,
                bufa_ref, bufb_ref, inputs_ref):
    H, W, cin = x_ref.shape
    C = w1_ref.shape[-1]            # 128
    kin = xcol_ref.shape[-1]        # 9 * cin

    # Row-chunk size: keeps the (HC*W, 128) f32 accumulator vreg-resident.
    HC = 4 if H % 4 == 0 else (2 if H % 2 == 0 else 1)
    n_chunks = H // HC

    def conv_block(src_ref, w_ref, r, cout):
        """3x3 conv (stride 1, pad 1, no bias) output rows [r, r+HC).

        src_ref is a zero-bordered (H+2, W+2*PADW, C) f32 buffer whose valid
        data lives at rows 1..H, cols PADW..PADW+W-1.  Each of the 9 taps is
        an MXU matmul with bf16 operands and f32 accumulation; the (HC*W,
        cout) accumulator never leaves vregs.
        """
        acc = jnp.zeros((HC * W, cout), jnp.float32)
        for dy in range(3):
            for dx in range(3):
                win = src_ref[pl.ds(r + dy, HC), pl.ds(PADW - 1 + dx, W), :]
                lhs = win.reshape(HC * W, C).astype(jnp.bfloat16)
                acc = acc + jnp.dot(lhs, w_ref[dy, dx],
                                    preferred_element_type=jnp.float32)
        return acc.reshape(HC, W, cout)

    # Zero the padded buffers once per grid step; the untouched borders give
    # the convolutions' implicit zero padding (interior writes below are at
    # an 8-aligned column offset, so they are full, unmasked stores).
    bufa_ref[...] = jnp.zeros_like(bufa_ref)
    bufb_ref[...] = jnp.zeros_like(bufb_ref)

    # ---- inputs = input_conv(relu(x_up))  (xcol = wrapper-side 3x3 im2col) --
    @pl.loop(0, n_chunks)
    def _(ci):
        r = pl.multiple_of(ci * HC, HC)
        lhs = xcol_ref[pl.ds(r, HC), :, :].reshape(HC * W, kin)
        res = jnp.dot(lhs, w_in_ref[...],
                      preferred_element_type=jnp.float32).reshape(HC, W, C)
        inputs_ref[pl.ds(r, HC), :, :] = res
        bufa_ref[pl.ds(r + 1, HC), pl.ds(PADW, W), :] = jnp.maximum(res, 0.0)

    # ---- 25 recursive residual units ----------------------------------------
    @pl.loop(0, N_UNITS)
    def _(it):
        # conv1: read relu(state) from bufA, write relu(conv1(...)) into bufB.
        @pl.loop(0, n_chunks)
        def _(ci):
            r = pl.multiple_of(ci * HC, HC)
            res = conv_block(bufa_ref, w1_ref, r, C)
            bufb_ref[pl.ds(r + 1, HC), pl.ds(PADW, W), :] = jnp.maximum(res, 0.0)

        # conv2 + residual: state = conv2(bufB) + inputs; stash relu(state)
        # back into bufA for the next unit / the output conv.
        @pl.loop(0, n_chunks)
        def _(ci):
            r = pl.multiple_of(ci * HC, HC)
            res = (conv_block(bufb_ref, w2_ref, r, C)
                   + inputs_ref[pl.ds(r, HC), :, :])
            bufa_ref[pl.ds(r + 1, HC), pl.ds(PADW, W), :] = jnp.maximum(res, 0.0)

    # ---- out = output_conv(relu(state)) + residual (upsampled x) ------------
    @pl.loop(0, n_chunks)
    def _(ci):
        r = pl.multiple_of(ci * HC, HC)
        res = conv_block(bufa_ref, w_out_ref, r, cin)
        out_ref[pl.ds(r, HC), :, :] = res + x_ref[pl.ds(r, HC), :, :]


def drrn_pallas(x_col, x_nhwc, w_in_col, w1, w2, w_out):
    N, H, W, cin = x_nhwc.shape
    C = w1.shape[-1]
    kin = x_col.shape[-1]

    return pl.pallas_call(
        drrn_kernel,
        out_shape=jax.ShapeDtypeStruct((N, H, W, cin), jnp.float32),
        grid=(N,),
        in_specs=[
            pl.BlockSpec((None, H, W, kin), lambda n: (n, 0, 0, 0)),   # x_col
            pl.BlockSpec((None, H, W, cin), lambda n: (n, 0, 0, 0)),   # x_up
            pl.BlockSpec((kin, C), lambda n: (0, 0)),                  # w_in
            pl.BlockSpec((3, 3, C, C), lambda n: (0, 0, 0, 0)),        # w1
            pl.BlockSpec((3, 3, C, C), lambda n: (0, 0, 0, 0)),        # w2
            pl.BlockSpec((3, 3, C, cin), lambda n: (0, 0, 0, 0)),      # w_out
        ],
        out_specs=pl.BlockSpec((None, H, W, cin), lambda n: (n, 0, 0, 0)),
        scratch_shapes=[
            pltpu.VMEM((H + 2, W + 2 * PADW, C), jnp.float32),  # bufA (relu state)
            pltpu.VMEM((H + 2, W + 2 * PADW, C), jnp.float32),  # bufB (relu conv1)
            pltpu.VMEM((H, W, C), jnp.float32),                 # "inputs"
        ],
        compiler_params=pltpu.CompilerParams(
            dimension_semantics=("parallel",),
            vmem_limit_bytes=32 * 1024 * 1024),
    )(x_col, x_nhwc, w_in_col, w1, w2, w_out)


# ----------------------------------------------------------------------------
# Wrapper: NCHW in / NCHW out. Bicubic upsample + input-conv im2col in plain
# JAX (setup glue), everything else inside the Pallas kernel.
# ----------------------------------------------------------------------------
def drrn_forward(x_nchw, params, scale_factor):
    w_in, w1, w2, w_out = params
    N, cin, Hin, Win = x_nchw.shape
    Hout, Wout = Hin * scale_factor, Win * scale_factor

    # F.interpolate(..., mode='bicubic', align_corners=True) as separable matmuls.
    Mh = bicubic_matrix(Hin, Hout)
    Mw = bicubic_matrix(Win, Wout)
    x_up = jnp.einsum('oi,ncij,pj->ncop', Mh, x_nchw.astype(jnp.float32), Mw)
    x_nhwc = jnp.transpose(x_up, (0, 2, 3, 1))                  # (N,H,W,Cin) f32

    # im2col of relu(x_up) for the 3x3 input conv -> one matmul in the kernel.
    xr = jnp.maximum(x_nhwc, 0.0)
    xp = jnp.pad(xr, ((0, 0), (1, 1), (1, 1), (0, 0)))
    x_col = jnp.concatenate(
        [xp[:, dy:dy + Hout, dx:dx + Wout, :]
         for dy in range(3) for dx in range(3)],
        axis=-1).astype(jnp.bfloat16)                           # (N,H,W,9*Cin)

    C = w1.shape[-1]
    w_in_col = w_in.reshape(9 * cin, C).astype(jnp.bfloat16)    # (9*Cin, 128)

    y_nhwc = drrn_pallas(x_col, x_nhwc, w_in_col,
                         w1.astype(jnp.bfloat16),
                         w2.astype(jnp.bfloat16),
                         w_out.astype(jnp.bfloat16))
    return jnp.transpose(y_nhwc, (0, 3, 1, 2))


def init_params(key, num_channels):
    """Conv weights, normal(0, sqrt(2 / (k*k*out_channels))), no bias.
    Stored as (kh, kw, cin, cout) for the NHWC kernel."""
    k_in, k1, k2, k_out = jax.random.split(key, 4)
    C = 128
    std_128 = math.sqrt(2.0 / (3 * 3 * C))
    std_out = math.sqrt(2.0 / (3 * 3 * num_channels))
    w_in = std_128 * jax.random.normal(k_in, (3, 3, num_channels, C), jnp.float32)
    w1 = std_128 * jax.random.normal(k1, (3, 3, C, C), jnp.float32)
    w2 = std_128 * jax.random.normal(k2, (3, 3, C, C), jnp.float32)
    w_out = std_out * jax.random.normal(k_out, (3, 3, C, num_channels), jnp.float32)
    return w_in, w1, w2, w_out


if __name__ == "__main__":
    num_channels = 4
    scale_factor = 2

    key = jax.random.PRNGKey(0)
    k_x, k_p = jax.random.split(key)
    x = jax.random.normal(k_x, (2, num_channels, 16, 16), jnp.float32)  # NCHW
    params = init_params(k_p, num_channels)

    fwd = jax.jit(lambda xx: drrn_forward(xx, params, scale_factor))
    y = fwd(x)
    jax.block_until_ready(y)

    assert y.shape == (2, num_channels, 16 * scale_factor, 16 * scale_factor)
    assert y.dtype == jnp.float32
    print("KERNEL_OK")
</pallas_src>

<mosaic_0001>
module attributes {stable_mosaic.version = 11 : i64} {
  func.func @drrn_kernel(%arg0: i32, %arg1: memref<1x32x32x36xbf16, #tpu.memory_space<vmem>>, %arg2: memref<1x32x32x4xf32, #tpu.memory_space<vmem>>, %arg3: memref<36x128xbf16, #tpu.memory_space<vmem>>, %arg4: memref<3x3x128x128xbf16, #tpu.memory_space<vmem>>, %arg5: memref<3x3x128x128xbf16, #tpu.memory_space<vmem>>, %arg6: memref<3x3x128x4xbf16, #tpu.memory_space<vmem>>, %arg7: memref<1x32x32x4xf32, #tpu.memory_space<vmem>>, %arg8: memref<34x48x128xf32, #tpu.memory_space<vmem>>, %arg9: memref<34x48x128xf32, #tpu.memory_space<vmem>>, %arg10: memref<32x32x128xf32, #tpu.memory_space<vmem>>) attributes {dimension_semantics = [#tpu.dimension_semantics<parallel>], iteration_bounds = array<i64: 2>, scalar_prefetch = 0 : i64, scratch_operands = 3 : i64, tpu.core_type = #tpu.core_type<tc>, window_params = [{transform_indices = @transform_0, window_bounds = array<i64: 1, 32, 32, 36>}, {transform_indices = @transform_1, window_bounds = array<i64: 1, 32, 32, 4>}, {pipeline_mode = #tpu.pipeline_mode<synchronous>, transform_indices = @transform_2, window_bounds = array<i64: 36, 128>}, {pipeline_mode = #tpu.pipeline_mode<synchronous>, transform_indices = @transform_3, window_bounds = array<i64: 3, 3, 128, 128>}, {pipeline_mode = #tpu.pipeline_mode<synchronous>, transform_indices = @transform_4, window_bounds = array<i64: 3, 3, 128, 128>}, {pipeline_mode = #tpu.pipeline_mode<synchronous>, transform_indices = @transform_5, window_bounds = array<i64: 3, 3, 128, 4>}, {transform_indices = @transform_6, window_bounds = array<i64: 1, 32, 32, 4>}]} {
    %cst = arith.constant 0.000000e+00 : f32
    %0 = vector.broadcast %cst : f32 to vector<34x48x128xf32>
    %c0 = arith.constant 0 : index
    %c0_0 = arith.constant 0 : index
    %c0_1 = arith.constant 0 : index
    %1 = vector.load %arg8[%c0, %c0_0, %c0_1] : memref<34x48x128xf32, #tpu.memory_space<vmem>>, vector<34x48x128xf32>
    tpu.vector_store %arg8[%c0, %c0_0, %c0_1], %0 {strides = array<i32>} : memref<34x48x128xf32, #tpu.memory_space<vmem>>, vector<34x48x128xf32>,
    %cst_2 = arith.constant 0.000000e+00 : f32
    %2 = vector.broadcast %cst_2 : f32 to vector<34x48x128xf32>
    %c0_3 = arith.constant 0 : index
    %c0_4 = arith.constant 0 : index
    %c0_5 = arith.constant 0 : index
    %3 = vector.load %arg9[%c0_3, %c0_4, %c0_5] : memref<34x48x128xf32, #tpu.memory_space<vmem>>, vector<34x48x128xf32>
    tpu.vector_store %arg9[%c0_3, %c0_4, %c0_5], %2 {strides = array<i32>} : memref<34x48x128xf32, #tpu.memory_space<vmem>>, vector<34x48x128xf32>,
    %c0_i32 = arith.constant 0 : i32
    %c8_i32 = arith.constant 8 : i32
    %4 = arith.addi %c0_i32, %c8_i32 : i32
    %c1_i32 = arith.constant 1 : i32
    scf.for %arg11 = %c0_i32 to %4 step %c1_i32  : i32 {
      %c1_i32_13 = arith.constant 1 : i32
      %7 = arith.muli %arg11, %c1_i32_13 : i32
      %c0_i32_14 = arith.constant 0 : i32
      %8 = arith.addi %c0_i32_14, %7 : i32
      %c4_i32 = arith.constant 4 : i32
      %9 = arith.muli %8, %c4_i32 : i32
      %10 = tpu.assume_multiple %9, 4 : i32
      %c0_15 = arith.constant 0 : index
      %11 = arith.index_cast %10 : i32 to index
      %c0_16 = arith.constant 0 : index
      %c0_17 = arith.constant 0 : index
      %12 = vector.load %arg1[%c0_15, %11, %c0_16, %c0_17] : memref<1x32x32x36xbf16, #tpu.memory_space<vmem>>, vector<1x4x32x36xbf16>
      %13 = vector.shape_cast %12 : vector<1x4x32x36xbf16> to vector<4x32x36xbf16>
      %14 = vector.shape_cast %13 : vector<4x32x36xbf16> to vector<128x36xbf16>
      %c0_18 = arith.constant 0 : index
      %c0_19 = arith.constant 0 : index
      %15 = vector.load %arg3[%c0_18, %c0_19] : memref<36x128xbf16, #tpu.memory_space<vmem>>, vector<36x128xbf16>
      %cst_20 = arith.constant dense<0.000000e+00> : vector<128x128xf32>
      %16 = tpu.matmul %14, %15, %cst_20 {dimension_numbers = #tpu.dot_dimension_numbers<[1], [0], [0], [1], [0, 0, 1, 1], [], []>} : vector<128x36xbf16>, vector<36x128xbf16>, vector<128x128xf32> -> vector<128x128xf32>
      %17 = vector.shape_cast %16 : vector<128x128xf32> to vector<4x32x128xf32>
      %18 = arith.index_cast %10 : i32 to index
      %c0_21 = arith.constant 0 : index
      %c0_22 = arith.constant 0 : index
      %19 = vector.load %arg10[%18, %c0_21, %c0_22] : memref<32x32x128xf32, #tpu.memory_space<vmem>>, vector<4x32x128xf32>
      tpu.vector_store %arg10[%18, %c0_21, %c0_22], %17 {strides = array<i32>} : memref<32x32x128xf32, #tpu.memory_space<vmem>>, vector<4x32x128xf32>,
      %cst_23 = arith.constant 0.000000e+00 : f32
      %20 = vector.broadcast %cst_23 : f32 to vector<4x32x128xf32>
      %21 = arith.maximumf %17, %20 : vector<4x32x128xf32>
      %c1_i32_24 = arith.constant 1 : i32
      %22 = arith.addi %10, %c1_i32_24 : i32
      %23 = arith.index_cast %22 : i32 to index
      %c8 = arith.constant 8 : index
      %c0_25 = arith.constant 0 : index
      %24 = vector.load %arg8[%23, %c8, %c0_25] : memref<34x48x128xf32, #tpu.memory_space<vmem>>, vector<4x32x128xf32>
      tpu.vector_store %arg8[%23, %c8, %c0_25], %21 {strides = array<i32>} : memref<34x48x128xf32, #tpu.memory_space<vmem>>, vector<4x32x128xf32>,
    }
    %c8_i32_6 = arith.constant 8 : i32
    %c0_i32_7 = arith.constant 0 : i32
    %c25_i32 = arith.constant 25 : i32
    %5 = arith.addi %c0_i32_7, %c25_i32 : i32
    %c1_i32_8 = arith.constant 1 : i32
    scf.for %arg11 = %c0_i32_7 to %5 step %c1_i32_8  : i32 {
      %c0_i32_13 = arith.constant 0 : i32
      %c8_i32_14 = arith.constant 8 : i32
      %7 = arith.addi %c0_i32_13, %c8_i32_14 : i32
      %c1_i32_15 = arith.constant 1 : i32
      scf.for %arg12 = %c0_i32_13 to %7 step %c1_i32_15  : i32 {
        %c1_i32_21 = arith.constant 1 : i32
        %9 = arith.muli %arg12, %c1_i32_21 : i32
        %c0_i32_22 = arith.constant 0 : i32
        %10 = arith.addi %c0_i32_22, %9 : i32
        %c4_i32 = arith.constant 4 : i32
        %11 = arith.muli %10, %c4_i32 : i32
        %12 = tpu.assume_multiple %11, 4 : i32
        %cst_23 = arith.constant 0.000000e+00 : f32
        %13 = vector.broadcast %cst_23 : f32 to vector<128x128xf32>
        %c0_i32_24 = arith.constant 0 : i32
        %14 = arith.addi %12, %c0_i32_24 : i32
        %15 = arith.index_cast %14 : i32 to index
        %c7 = arith.constant 7 : index
        %c0_25 = arith.constant 0 : index
        %16 = vector.load %arg8[%15, %c7, %c0_25] : memref<34x48x128xf32, #tpu.memory_space<vmem>>, vector<4x32x128xf32>
        %17 = vector.shape_cast %16 : vector<4x32x128xf32> to vector<128x128xf32>
        %18 = arith.truncf %17 : vector<128x128xf32> to vector<128x128xbf16>
        %c0_26 = arith.constant 0 : index
        %c0_27 = arith.constant 0 : index
        %c0_28 = arith.constant 0 : index
        %c0_29 = arith.constant 0 : index
        %19 = vector.load %arg4[%c0_26, %c0_27, %c0_28, %c0_29] : memref<3x3x128x128xbf16, #tpu.memory_space<vmem>>, vector<1x1x128x128xbf16>
        %20 = vector.shape_cast %19 : vector<1x1x128x128xbf16> to vector<128x128xbf16>
        %cst_30 = arith.constant dense<0.000000e+00> : vector<128x128xf32>
        %21 = tpu.matmul %18, %20, %cst_30 {dimension_numbers = #tpu.dot_dimension_numbers<[1], [0], [0], [1], [0, 0, 1, 1], [], []>} : vector<128x128xbf16>, vector<128x128xbf16>, vector<128x128xf32> -> vector<128x128xf32>
        %22 = arith.addf %13, %21 : vector<128x128xf32>
        %c0_i32_31 = arith.constant 0 : i32
        %23 = arith.addi %12, %c0_i32_31 : i32
        %24 = arith.index_cast %23 : i32 to index
        %c8 = arith.constant 8 : index
        %c0_32 = arith.constant 0 : index
        %25 = vector.load %arg8[%24, %c8, %c0_32] : memref<34x48x128xf32, #tpu.memory_space<vmem>>, vector<4x32x128xf32>
        %26 = vector.shape_cast %25 : vector<4x32x128xf32> to vector<128x128xf32>
        %27 = arith.truncf %26 : vector<128x128xf32> to vector<128x128xbf16>
        %c0_33 = arith.constant 0 : index
        %c1 = arith.constant 1 : index
        %c0_34 = arith.constant 0 : index
        %c0_35 = arith.constant 0 : index
        %28 = vector.load %arg4[%c0_33, %c1, %c0_34, %c0_35] : memref<3x3x128x128xbf16, #tpu.memory_space<vmem>>, vector<1x1x128x128xbf16>
        %29 = vector.shape_cast %28 : vector<1x1x128x128xbf16> to vector<128x128xbf16>
        %cst_36 = arith.constant dense<0.000000e+00> : vector<128x128xf32>
        %30 = tpu.matmul %27, %29, %cst_36 {dimension_numbers = #tpu.dot_dimension_numbers<[1], [0], [0], [1], [0, 0, 1, 1], [], []>} : vector<128x128xbf16>, vector<128x128xbf16>, vector<128x128xf32> -> vector<128x128xf32>
        %31 = arith.addf %22, %30 : vector<128x128xf32>
        %c0_i32_37 = arith.constant 0 : i32
        %32 = arith.addi %12, %c0_i32_37 : i32
        %33 = arith.index_cast %32 : i32 to index
        %c9 = arith.constant 9 : index
        %c0_38 = arith.constant 0 : index
        %34 = vector.load %arg8[%33, %c9, %c0_38] : memref<34x48x128xf32, #tpu.memory_space<vmem>>, vector<4x32x128xf32>
        %35 = vector.shape_cast %34 : vector<4x32x128xf32> to vector<128x128xf32>
        %36 = arith.truncf %35 : vector<128x128xf32> to vector<128x128xbf16>
        %c0_39 = arith.constant 0 : index
        %c2 = arith.constant 2 : index
        %c0_40 = arith.constant 0 : index
        %c0_41 = arith.constant 0 : index
        %37 = vector.load %arg4[%c0_39, %c2, %c0_40, %c0_41] : memref<3x3x128x128xbf16, #tpu.memory_space<vmem>>, vector<1x1x128x128xbf16>
        %38 = vector.shape_cast %37 : vector<1x1x128x128xbf16> to vector<128x128xbf16>
        %cst_42 = arith.constant dense<0.000000e+00> : vector<128x128xf32>
        %39 = tpu.matmul %36, %38, %cst_42 {dimension_numbers = #tpu.dot_dimension_numbers<[1], [0], [0], [1], [0, 0, 1, 1], [], []>} : vector<128x128xbf16>, vector<128x128xbf16>, vector<128x128xf32> -> vector<128x128xf32>
        %40 = arith.addf %31, %39 : vector<128x128xf32>
        %c1_i32_43 = arith.constant 1 : i32
        %41 = arith.addi %12, %c1_i32_43 : i32
        %42 = arith.index_cast %41 : i32 to index
        %c7_44 = arith.constant 7 : index
        %c0_45 = arith.constant 0 : index
        %43 = vector.load %arg8[%42, %c7_44, %c0_45] : memref<34x48x128xf32, #tpu.memory_space<vmem>>, vector<4x32x128xf32>
        %44 = vector.shape_cast %43 : vector<4x32x128xf32> to vector<128x128xf32>
        %45 = arith.truncf %44 : vector<128x128xf32> to vector<128x128xbf16>
        %c1_46 = arith.constant 1 : index
        %c0_47 = arith.constant 0 : index
        %c0_48 = arith.constant 0 : index
        %c0_49 = arith.constant 0 : index
        %46 = vector.load %arg4[%c1_46, %c0_47, %c0_48, %c0_49] : memref<3x3x128x128xbf16, #tpu.memory_space<vmem>>, vector<1x1x128x128xbf16>
        %47 = vector.shape_cast %46 : vector<1x1x128x128xbf16> to vector<128x128xbf16>
        %cst_50 = arith.constant dense<0.000000e+00> : vector<128x128xf32>
        %48 = tpu.matmul %45, %47, %cst_50 {dimension_numbers = #tpu.dot_dimension_numbers<[1], [0], [0], [1], [0, 0, 1, 1], [], []>} : vector<128x128xbf16>, vector<128x128xbf16>, vector<128x128xf32> -> vector<128x128xf32>
        %49 = arith.addf %40, %48 : vector<128x128xf32>
        %c1_i32_51 = arith.constant 1 : i32
        %50 = arith.addi %12, %c1_i32_51 : i32
        %51 = arith.index_cast %50 : i32 to index
        %c8_52 = arith.constant 8 : index
        %c0_53 = arith.constant 0 : index
        %52 = vector.load %arg8[%51, %c8_52, %c0_53] : memref<34x48x128xf32, #tpu.memory_space<vmem>>, vector<4x32x128xf32>
        %53 = vector.shape_cast %52 : vector<4x32x128xf32> to vector<128x128xf32>
        %54 = arith.truncf %53 : vector<128x128xf32> to vector<128x128xbf16>
        %c1_54 = arith.constant 1 : index
        %c1_55 = arith.constant 1 : index
        %c0_56 = arith.constant 0 : index
        %c0_57 = arith.constant 0 : index
        %55 = vector.load %arg4[%c1_54, %c1_55, %c0_56, %c0_57] : memref<3x3x128x128xbf16, #tpu.memory_space<vmem>>, vector<1x1x128x128xbf16>
        %56 = vector.shape_cast %55 : vector<1x1x128x128xbf16> to vector<128x128xbf16>
        %cst_58 = arith.constant dense<0.000000e+00> : vector<128x128xf32>
        %57 = tpu.matmul %54, %56, %cst_58 {dimension_numbers = #tpu.dot_dimension_numbers<[1], [0], [0], [1], [0, 0, 1, 1], [], []>} : vector<128x128xbf16>, vector<128x128xbf16>, vector<128x128xf32> -> vector<128x128xf32>
        %58 = arith.addf %49, %57 : vector<128x128xf32>
        %c1_i32_59 = arith.constant 1 : i32
        %59 = arith.addi %12, %c1_i32_59 : i32
        %60 = arith.index_cast %59 : i32 to index
        %c9_60 = arith.constant 9 : index
        %c0_61 = arith.constant 0 : index
        %61 = vector.load %arg8[%60, %c9_60, %c0_61] : memref<34x48x128xf32, #tpu.memory_space<vmem>>, vector<4x32x128xf32>
        %62 = vector.shape_cast %61 : vector<4x32x128xf32> to vector<128x128xf32>
        %63 = arith.truncf %62 : vector<128x128xf32> to vector<128x128xbf16>
        %c1_62 = arith.constant 1 : index
        %c2_63 = arith.constant 2 : index
        %c0_64 = arith.constant 0 : index
        %c0_65 = arith.constant 0 : index
        %64 = vector.load %arg4[%c1_62, %c2_63, %c0_64, %c0_65] : memref<3x3x128x128xbf16, #tpu.memory_space<vmem>>, vector<1x1x128x128xbf16>
        %65 = vector.shape_cast %64 : vector<1x1x128x128xbf16> to vector<128x128xbf16>
        %cst_66 = arith.constant dense<0.000000e+00> : vector<128x128xf32>
        %66 = tpu.matmul %63, %65, %cst_66 {dimension_numbers = #tpu.dot_dimension_numbers<[1], [0], [0], [1], [0, 0, 1, 1], [], []>} : vector<128x128xbf16>, vector<128x128xbf16>, vector<128x128xf32> -> vector<128x128xf32>
        %67 = arith.addf %58, %66 : vector<128x128xf32>
        %c2_i32 = arith.constant 2 : i32
        %68 = arith.addi %12, %c2_i32 : i32
        %69 = arith.index_cast %68 : i32 to index
        %c7_67 = arith.constant 7 : index
        %c0_68 = arith.constant 0 : index
        %70 = vector.load %arg8[%69, %c7_67, %c0_68] : memref<34x48x128xf32, #tpu.memory_space<vmem>>, vector<4x32x128xf32>
        %71 = vector.shape_cast %70 : vector<4x32x128xf32> to vector<128x128xf32>
        %72 = arith.truncf %71 : vector<128x128xf32> to vector<128x128xbf16>
        %c2_69 = arith.constant 2 : index
        %c0_70 = arith.constant 0 : index
        %c0_71 = arith.constant 0 : index
        %c0_72 = arith.constant 0 : index
        %73 = vector.load %arg4[%c2_69, %c0_70, %c0_71, %c0_72] : memref<3x3x128x128xbf16, #tpu.memory_space<vmem>>, vector<1x1x128x128xbf16>
        %74 = vector.shape_cast %73 : vector<1x1x128x128xbf16> to vector<128x128xbf16>
        %cst_73 = arith.constant dense<0.000000e+00> : vector<128x128xf32>
        %75 = tpu.matmul %72, %74, %cst_73 {dimension_numbers = #tpu.dot_dimension_numbers<[1], [0], [0], [1], [0, 0, 1, 1], [], []>} : vector<128x128xbf16>, vector<128x128xbf16>, vector<128x128xf32> -> vector<128x128xf32>
        %76 = arith.addf %67, %75 : vector<128x128xf32>
        %c2_i32_74 = arith.constant 2 : i32
        %77 = arith.addi %12, %c2_i32_74 : i32
        %78 = arith.index_cast %77 : i32 to index
        %c8_75 = arith.constant 8 : index
        %c0_76 = arith.constant 0 : index
        %79 = vector.load %arg8[%78, %c8_75, %c0_76] : memref<34x48x128xf32, #tpu.memory_space<vmem>>, vector<4x32x128xf32>
        %80 = vector.shape_cast %79 : vector<4x32x128xf32> to vector<128x128xf32>
        %81 = arith.truncf %80 : vector<128x128xf32> to vector<128x128xbf16>
        %c2_77 = arith.constant 2 : index
        %c1_78 = arith.constant 1 : index
        %c0_79 = arith.constant 0 : index
        %c0_80 = arith.constant 0 : index
        %82 = vector.load %arg4[%c2_77, %c1_78, %c0_79, %c0_80] : memref<3x3x128x128xbf16, #tpu.memory_space<vmem>>, vector<1x1x128x128xbf16>
        %83 = vector.shape_cast %82 : vector<1x1x128x128xbf16> to vector<128x128xbf16>
        %cst_81 = arith.constant dense<0.000000e+00> : vector<128x128xf32>
        %84 = tpu.matmul %81, %83, %cst_81 {dimension_numbers = #tpu.dot_dimension_numbers<[1], [0], [0], [1], [0, 0, 1, 1], [], []>} : vector<128x128xbf16>, vector<128x128xbf16>, vector<128x128xf32> -> vector<128x128xf32>
        %85 = arith.addf %76, %84 : vector<128x128xf32>
        %c2_i32_82 = arith.constant 2 : i32
        %86 = arith.addi %12, %c2_i32_82 : i32
        %87 = arith.index_cast %86 : i32 to index
        %c9_83 = arith.constant 9 : index
        %c0_84 = arith.constant 0 : index
        %88 = vector.load %arg8[%87, %c9_83, %c0_84] : memref<34x48x128xf32, #tpu.memory_space<vmem>>, vector<4x32x128xf32>
        %89 = vector.shape_cast %88 : vector<4x32x128xf32> to vector<128x128xf32>
        %90 = arith.truncf %89 : vector<128x128xf32> to vector<128x128xbf16>
        %c2_85 = arith.constant 2 : index
        %c2_86 = arith.constant 2 : index
        %c0_87 = arith.constant 0 : index
        %c0_88 = arith.constant 0 : index
        %91 = vector.load %arg4[%c2_85, %c2_86, %c0_87, %c0_88] : memref<3x3x128x128xbf16, #tpu.memory_space<vmem>>, vector<1x1x128x128xbf16>
        %92 = vector.shape_cast %91 : vector<1x1x128x128xbf16> to vector<128x128xbf16>
        %cst_89 = arith.constant dense<0.000000e+00> : vector<128x128xf32>
        %93 = tpu.matmul %90, %92, %cst_89 {dimension_numbers = #tpu.dot_dimension_numbers<[1], [0], [0], [1], [0, 0, 1, 1], [], []>} : vector<128x128xbf16>, vector<128x128xbf16>, vector<128x128xf32> -> vector<128x128xf32>
        %94 = arith.addf %85, %93 : vector<128x128xf32>
        %95 = vector.shape_cast %94 : vector<128x128xf32> to vector<4x32x128xf32>
        %cst_90 = arith.constant 0.000000e+00 : f32
        %96 = vector.broadcast %cst_90 : f32 to vector<4x32x128xf32>
        %97 = arith.maximumf %95, %96 : vector<4x32x128xf32>
        %c1_i32_91 = arith.constant 1 : i32
        %98 = arith.addi %12, %c1_i32_91 : i32
        %99 = arith.index_cast %98 : i32 to index
        %c8_92 = arith.constant 8 : index
        %c0_93 = arith.constant 0 : index
        %100 = vector.load %arg9[%99, %c8_92, %c0_93] : memref<34x48x128xf32, #tpu.memory_space<vmem>>, vector<4x32x128xf32>
        tpu.vector_store %arg9[%99, %c8_92, %c0_93], %97 {strides = array<i32>} : memref<34x48x128xf32, #tpu.memory_space<vmem>>, vector<4x32x128xf32>,
      }
      %c8_i32_16 = arith.constant 8 : i32
      %c0_i32_17 = arith.constant 0 : i32
      %c8_i32_18 = arith.constant 8 : i32
      %8 = arith.addi %c0_i32_17, %c8_i32_18 : i32
      %c1_i32_19 = arith.constant 1 : i32
      scf.for %arg12 = %c0_i32_17 to %8 step %c1_i32_19  : i32 {
        %c1_i32_21 = arith.constant 1 : i32
        %9 = arith.muli %arg12, %c1_i32_21 : i32
        %c0_i32_22 = arith.constant 0 : i32
        %10 = arith.addi %c0_i32_22, %9 : i32
        %c4_i32 = arith.constant 4 : i32
        %11 = arith.muli %10, %c4_i32 : i32
        %12 = tpu.assume_multiple %11, 4 : i32
        %cst_23 = arith.constant 0.000000e+00 : f32
        %13 = vector.broadcast %cst_23 : f32 to vector<128x128xf32>
        %c0_i32_24 = arith.constant 0 : i32
        %14 = arith.addi %12, %c0_i32_24 : i32
        %15 = arith.index_cast %14 : i32 to index
        %c7 = arith.constant 7 : index
        %c0_25 = arith.constant 0 : index
        %16 = vector.load %arg9[%15, %c7, %c0_25] : memref<34x48x128xf32, #tpu.memory_space<vmem>>, vector<4x32x128xf32>
        %17 = vector.shape_cast %16 : vector<4x32x128xf32> to vector<128x128xf32>
        %18 = arith.truncf %17 : vector<128x128xf32> to vector<128x128xbf16>
        %c0_26 = arith.constant 0 : index
        %c0_27 = arith.constant 0 : index
        %c0_28 = arith.constant 0 : index
        %c0_29 = arith.constant 0 : index
        %19 = vector.load %arg5[%c0_26, %c0_27, %c0_28, %c0_29] : memref<3x3x128x128xbf16, #tpu.memory_space<vmem>>, vector<1x1x128x128xbf16>
        %20 = vector.shape_cast %19 : vector<1x1x128x128xbf16> to vector<128x128xbf16>
        %cst_30 = arith.constant dense<0.000000e+00> : vector<128x128xf32>
        %21 = tpu.matmul %18, %20, %cst_30 {dimension_numbers = #tpu.dot_dimension_numbers<[1], [0], [0], [1], [0, 0, 1, 1], [], []>} : vector<128x128xbf16>, vector<128x128xbf16>, vector<128x128xf32> -> vector<128x128xf32>
        %22 = arith.addf %13, %21 : vector<128x128xf32>
        %c0_i32_31 = arith.constant 0 : i32
        %23 = arith.addi %12, %c0_i32_31 : i32
        %24 = arith.index_cast %23 : i32 to index
        %c8 = arith.constant 8 : index
        %c0_32 = arith.constant 0 : index
        %25 = vector.load %arg9[%24, %c8, %c0_32] : memref<34x48x128xf32, #tpu.memory_space<vmem>>, vector<4x32x128xf32>
        %26 = vector.shape_cast %25 : vector<4x32x128xf32> to vector<128x128xf32>
        %27 = arith.truncf %26 : vector<128x128xf32> to vector<128x128xbf16>
        %c0_33 = arith.constant 0 : index
        %c1 = arith.constant 1 : index
        %c0_34 = arith.constant 0 : index
        %c0_35 = arith.constant 0 : index
        %28 = vector.load %arg5[%c0_33, %c1, %c0_34, %c0_35] : memref<3x3x128x128xbf16, #tpu.memory_space<vmem>>, vector<1x1x128x128xbf16>
        %29 = vector.shape_cast %28 : vector<1x1x128x128xbf16> to vector<128x128xbf16>
        %cst_36 = arith.constant dense<0.000000e+00> : vector<128x128xf32>
        %30 = tpu.matmul %27, %29, %cst_36 {dimension_numbers = #tpu.dot_dimension_numbers<[1], [0], [0], [1], [0, 0, 1, 1], [], []>} : vector<128x128xbf16>, vector<128x128xbf16>, vector<128x128xf32> -> vector<128x128xf32>
        %31 = arith.addf %22, %30 : vector<128x128xf32>
        %c0_i32_37 = arith.constant 0 : i32
        %32 = arith.addi %12, %c0_i32_37 : i32
        %33 = arith.index_cast %32 : i32 to index
        %c9 = arith.constant 9 : index
        %c0_38 = arith.constant 0 : index
        %34 = vector.load %arg9[%33, %c9, %c0_38] : memref<34x48x128xf32, #tpu.memory_space<vmem>>, vector<4x32x128xf32>
        %35 = vector.shape_cast %34 : vector<4x32x128xf32> to vector<128x128xf32>
        %36 = arith.truncf %35 : vector<128x128xf32> to vector<128x128xbf16>
        %c0_39 = arith.constant 0 : index
        %c2 = arith.constant 2 : index
        %c0_40 = arith.constant 0 : index
        %c0_41 = arith.constant 0 : index
        %37 = vector.load %arg5[%c0_39, %c2, %c0_40, %c0_41] : memref<3x3x128x128xbf16, #tpu.memory_space<vmem>>, vector<1x1x128x128xbf16>
        %38 = vector.shape_cast %37 : vector<1x1x128x128xbf16> to vector<128x128xbf16>
        %cst_42 = arith.constant dense<0.000000e+00> : vector<128x128xf32>
        %39 = tpu.matmul %36, %38, %cst_42 {dimension_numbers = #tpu.dot_dimension_numbers<[1], [0], [0], [1], [0, 0, 1, 1], [], []>} : vector<128x128xbf16>, vector<128x128xbf16>, vector<128x128xf32> -> vector<128x128xf32>
        %40 = arith.addf %31, %39 : vector<128x128xf32>
        %c1_i32_43 = arith.constant 1 : i32
        %41 = arith.addi %12, %c1_i32_43 : i32
        %42 = arith.index_cast %41 : i32 to index
        %c7_44 = arith.constant 7 : index
        %c0_45 = arith.constant 0 : index
        %43 = vector.load %arg9[%42, %c7_44, %c0_45] : memref<34x48x128xf32, #tpu.memory_space<vmem>>, vector<4x32x128xf32>
        %44 = vector.shape_cast %43 : vector<4x32x128xf32> to vector<128x128xf32>
        %45 = arith.truncf %44 : vector<128x128xf32> to vector<128x128xbf16>
        %c1_46 = arith.constant 1 : index
        %c0_47 = arith.constant 0 : index
        %c0_48 = arith.constant 0 : index
        %c0_49 = arith.constant 0 : index
        %46 = vector.load %arg5[%c1_46, %c0_47, %c0_48, %c0_49] : memref<3x3x128x128xbf16, #tpu.memory_space<vmem>>, vector<1x1x128x128xbf16>
        %47 = vector.shape_cast %46 : vector<1x1x128x128xbf16> to vector<128x128xbf16>
        %cst_50 = arith.constant dense<0.000000e+00> : vector<128x128xf32>
        %48 = tpu.matmul %45, %47, %cst_50 {dimension_numbers = #tpu.dot_dimension_numbers<[1], [0], [0], [1], [0, 0, 1, 1], [], []>} : vector<128x128xbf16>, vector<128x128xbf16>, vector<128x128xf32> -> vector<128x128xf32>
        %49 = arith.addf %40, %48 : vector<128x128xf32>
        %c1_i32_51 = arith.constant 1 : i32
        %50 = arith.addi %12, %c1_i32_51 : i32
        %51 = arith.index_cast %50 : i32 to index
        %c8_52 = arith.constant 8 : index
        %c0_53 = arith.constant 0 : index
        %52 = vector.load %arg9[%51, %c8_52, %c0_53] : memref<34x48x128xf32, #tpu.memory_space<vmem>>, vector<4x32x128xf32>
        %53 = vector.shape_cast %52 : vector<4x32x128xf32> to vector<128x128xf32>
        %54 = arith.truncf %53 : vector<128x128xf32> to vector<128x128xbf16>
        %c1_54 = arith.constant 1 : index
        %c1_55 = arith.constant 1 : index
        %c0_56 = arith.constant 0 : index
        %c0_57 = arith.constant 0 : index
        %55 = vector.load %arg5[%c1_54, %c1_55, %c0_56, %c0_57] : memref<3x3x128x128xbf16, #tpu.memory_space<vmem>>, vector<1x1x128x128xbf16>
        %56 = vector.shape_cast %55 : vector<1x1x128x128xbf16> to vector<128x128xbf16>
        %cst_58 = arith.constant dense<0.000000e+00> : vector<128x128xf32>
        %57 = tpu.matmul %54, %56, %cst_58 {dimension_numbers = #tpu.dot_dimension_numbers<[1], [0], [0], [1], [0, 0, 1, 1], [], []>} : vector<128x128xbf16>, vector<128x128xbf16>, vector<128x128xf32> -> vector<128x128xf32>
        %58 = arith.addf %49, %57 : vector<128x128xf32>
        %c1_i32_59 = arith.constant 1 : i32
        %59 = arith.addi %12, %c1_i32_59 : i32
        %60 = arith.index_cast %59 : i32 to index
        %c9_60 = arith.constant 9 : index
        %c0_61 = arith.constant 0 : index
        %61 = vector.load %arg9[%60, %c9_60, %c0_61] : memref<34x48x128xf32, #tpu.memory_space<vmem>>, vector<4x32x128xf32>
        %62 = vector.shape_cast %61 : vector<4x32x128xf32> to vector<128x128xf32>
        %63 = arith.truncf %62 : vector<128x128xf32> to vector<128x128xbf16>
        %c1_62 = arith.constant 1 : index
        %c2_63 = arith.constant 2 : index
        %c0_64 = arith.constant 0 : index
        %c0_65 = arith.constant 0 : index
        %64 = vector.load %arg5[%c1_62, %c2_63, %c0_64, %c0_65] : memref<3x3x128x128xbf16, #tpu.memory_space<vmem>>, vector<1x1x128x128xbf16>
        %65 = vector.shape_cast %64 : vector<1x1x128x128xbf16> to vector<128x128xbf16>
        %cst_66 = arith.constant dense<0.000000e+00> : vector<128x128xf32>
        %66 = tpu.matmul %63, %65, %cst_66 {dimension_numbers = #tpu.dot_dimension_numbers<[1], [0], [0], [1], [0, 0, 1, 1], [], []>} : vector<128x128xbf16>, vector<128x128xbf16>, vector<128x128xf32> -> vector<128x128xf32>
        %67 = arith.addf %58, %66 : vector<128x128xf32>
        %c2_i32 = arith.constant 2 : i32
        %68 = arith.addi %12, %c2_i32 : i32
        %69 = arith.index_cast %68 : i32 to index
        %c7_67 = arith.constant 7 : index
        %c0_68 = arith.constant 0 : index
        %70 = vector.load %arg9[%69, %c7_67, %c0_68] : memref<34x48x128xf32, #tpu.memory_space<vmem>>, vector<4x32x128xf32>
        %71 = vector.shape_cast %70 : vector<4x32x128xf32> to vector<128x128xf32>
        %72 = arith.truncf %71 : vector<128x128xf32> to vector<128x128xbf16>
        %c2_69 = arith.constant 2 : index
        %c0_70 = arith.constant 0 : index
        %c0_71 = arith.constant 0 : index
        %c0_72 = arith.constant 0 : index
        %73 = vector.load %arg5[%c2_69, %c0_70, %c0_71, %c0_72] : memref<3x3x128x128xbf16, #tpu.memory_space<vmem>>, vector<1x1x128x128xbf16>
        %74 = vector.shape_cast %73 : vector<1x1x128x128xbf16> to vector<128x128xbf16>
        %cst_73 = arith.constant dense<0.000000e+00> : vector<128x128xf32>
        %75 = tpu.matmul %72, %74, %cst_73 {dimension_numbers = #tpu.dot_dimension_numbers<[1], [0], [0], [1], [0, 0, 1, 1], [], []>} : vector<128x128xbf16>, vector<128x128xbf16>, vector<128x128xf32> -> vector<128x128xf32>
        %76 = arith.addf %67, %75 : vector<128x128xf32>
        %c2_i32_74 = arith.constant 2 : i32
        %77 = arith.addi %12, %c2_i32_74 : i32
        %78 = arith.index_cast %77 : i32 to index
        %c8_75 = arith.constant 8 : index
        %c0_76 = arith.constant 0 : index
        %79 = vector.load %arg9[%78, %c8_75, %c0_76] : memref<34x48x128xf32, #tpu.memory_space<vmem>>, vector<4x32x128xf32>
        %80 = vector.shape_cast %79 : vector<4x32x128xf32> to vector<128x128xf32>
        %81 = arith.truncf %80 : vector<128x128xf32> to vector<128x128xbf16>
        %c2_77 = arith.constant 2 : index
        %c1_78 = arith.constant 1 : index
        %c0_79 = arith.constant 0 : index
        %c0_80 = arith.constant 0 : index
        %82 = vector.load %arg5[%c2_77, %c1_78, %c0_79, %c0_80] : memref<3x3x128x128xbf16, #tpu.memory_space<vmem>>, vector<1x1x128x128xbf16>
        %83 = vector.shape_cast %82 : vector<1x1x128x128xbf16> to vector<128x128xbf16>
        %cst_81 = arith.constant dense<0.000000e+00> : vector<128x128xf32>
        %84 = tpu.matmul %81, %83, %cst_81 {dimension_numbers = #tpu.dot_dimension_numbers<[1], [0], [0], [1], [0, 0, 1, 1], [], []>} : vector<128x128xbf16>, vector<128x128xbf16>, vector<128x128xf32> -> vector<128x128xf32>
        %85 = arith.addf %76, %84 : vector<128x128xf32>
        %c2_i32_82 = arith.constant 2 : i32
        %86 = arith.addi %12, %c2_i32_82 : i32
        %87 = arith.index_cast %86 : i32 to index
        %c9_83 = arith.constant 9 : index
        %c0_84 = arith.constant 0 : index
        %88 = vector.load %arg9[%87, %c9_83, %c0_84] : memref<34x48x128xf32, #tpu.memory_space<vmem>>, vector<4x32x128xf32>
        %89 = vector.shape_cast %88 : vector<4x32x128xf32> to vector<128x128xf32>
        %90 = arith.truncf %89 : vector<128x128xf32> to vector<128x128xbf16>
        %c2_85 = arith.constant 2 : index
        %c2_86 = arith.constant 2 : index
        %c0_87 = arith.constant 0 : index
        %c0_88 = arith.constant 0 : index
        %91 = vector.load %arg5[%c2_85, %c2_86, %c0_87, %c0_88] : memref<3x3x128x128xbf16, #tpu.memory_space<vmem>>, vector<1x1x128x128xbf16>
        %92 = vector.shape_cast %91 : vector<1x1x128x128xbf16> to vector<128x128xbf16>
        %cst_89 = arith.constant dense<0.000000e+00> : vector<128x128xf32>
        %93 = tpu.matmul %90, %92, %cst_89 {dimension_numbers = #tpu.dot_dimension_numbers<[1], [0], [0], [1], [0, 0, 1, 1], [], []>} : vector<128x128xbf16>, vector<128x128xbf16>, vector<128x128xf32> -> vector<128x128xf32>
        %94 = arith.addf %85, %93 : vector<128x128xf32>
        %95 = vector.shape_cast %94 : vector<128x128xf32> to vector<4x32x128xf32>
        %96 = arith.index_cast %12 : i32 to index
        %c0_90 = arith.constant 0 : index
        %c0_91 = arith.constant 0 : index
        %97 = vector.load %arg10[%96, %c0_90, %c0_91] : memref<32x32x128xf32, #tpu.memory_space<vmem>>, vector<4x32x128xf32>
        %98 = arith.addf %95, %97 : vector<4x32x128xf32>
        %cst_92 = arith.constant 0.000000e+00 : f32
        %99 = vector.broadcast %cst_92 : f32 to vector<4x32x128xf32>
        %100 = arith.maximumf %98, %99 : vector<4x32x128xf32>
        %c1_i32_93 = arith.constant 1 : i32
        %101 = arith.addi %12, %c1_i32_93 : i32
        %102 = arith.index_cast %101 : i32 to index
        %c8_94 = arith.constant 8 : index
        %c0_95 = arith.constant 0 : index
        %103 = vector.load %arg8[%102, %c8_94, %c0_95] : memref<34x48x128xf32, #tpu.memory_space<vmem>>, vector<4x32x128xf32>
        tpu.vector_store %arg8[%102, %c8_94, %c0_95], %100 {strides = array<i32>} : memref<34x48x128xf32, #tpu.memory_space<vmem>>, vector<4x32x128xf32>,
      }
      %c8_i32_20 = arith.constant 8 : i32
    }
    %c0_i32_9 = arith.constant 0 : i32
    %c8_i32_10 = arith.constant 8 : i32
    %6 = arith.addi %c0_i32_9, %c8_i32_10 : i32
    %c1_i32_11 = arith.constant 1 : i32
    scf.for %arg11 = %c0_i32_9 to %6 step %c1_i32_11  : i32 {
      %c1_i32_13 = arith.constant 1 : i32
      %7 = arith.muli %arg11, %c1_i32_13 : i32
      %c0_i32_14 = arith.constant 0 : i32
      %8 = arith.addi %c0_i32_14, %7 : i32
      %c4_i32 = arith.constant 4 : i32
      %9 = arith.muli %8, %c4_i32 : i32
      %10 = tpu.assume_multiple %9, 4 : i32
      %cst_15 = arith.constant 0.000000e+00 : f32
      %11 = vector.broadcast %cst_15 : f32 to vector<128x4xf32>
      %c0_i32_16 = arith.constant 0 : i32
      %12 = arith.addi %10, %c0_i32_16 : i32
      %13 = arith.index_cast %12 : i32 to index
      %c7 = arith.constant 7 : index
      %c0_17 = arith.constant 0 : index
      %14 = vector.load %arg8[%13, %c7, %c0_17] : memref<34x48x128xf32, #tpu.memory_space<vmem>>, vector<4x32x128xf32>
      %15 = vector.shape_cast %14 : vector<4x32x128xf32> to vector<128x128xf32>
      %16 = arith.truncf %15 : vector<128x128xf32> to vector<128x128xbf16>
      %c0_18 = arith.constant 0 : index
      %c0_19 = arith.constant 0 : index
      %c0_20 = arith.constant 0 : index
      %c0_21 = arith.constant 0 : index
      %17 = vector.load %arg6[%c0_18, %c0_19, %c0_20, %c0_21] : memref<3x3x128x4xbf16, #tpu.memory_space<vmem>>, vector<1x1x128x4xbf16>
      %18 = vector.shape_cast %17 : vector<1x1x128x4xbf16> to vector<128x4xbf16>
      %cst_22 = arith.constant dense<0.000000e+00> : vector<128x4xf32>
      %19 = tpu.matmul %16, %18, %cst_22 {dimension_numbers = #tpu.dot_dimension_numbers<[1], [0], [0], [1], [0, 0, 1, 1], [], []>} : vector<128x128xbf16>, vector<128x4xbf16>, vector<128x4xf32> -> vector<128x4xf32>
      %20 = arith.addf %11, %19 : vector<128x4xf32>
      %c0_i32_23 = arith.constant 0 : i32
      %21 = arith.addi %10, %c0_i32_23 : i32
      %22 = arith.index_cast %21 : i32 to index
      %c8 = arith.constant 8 : index
      %c0_24 = arith.constant 0 : index
      %23 = vector.load %arg8[%22, %c8, %c0_24] : memref<34x48x128xf32, #tpu.memory_space<vmem>>, vector<4x32x128xf32>
      %24 = vector.shape_cast %23 : vector<4x32x128xf32> to vector<128x128xf32>
      %25 = arith.truncf %24 : vector<128x128xf32> to vector<128x128xbf16>
      %c0_25 = arith.constant 0 : index
      %c1 = arith.constant 1 : index
      %c0_26 = arith.constant 0 : index
      %c0_27 = arith.constant 0 : index
      %26 = vector.load %arg6[%c0_25, %c1, %c0_26, %c0_27] : memref<3x3x128x4xbf16, #tpu.memory_space<vmem>>, vector<1x1x128x4xbf16>
      %27 = vector.shape_cast %26 : vector<1x1x128x4xbf16> to vector<128x4xbf16>
      %cst_28 = arith.constant dense<0.000000e+00> : vector<128x4xf32>
      %28 = tpu.matmul %25, %27, %cst_28 {dimension_numbers = #tpu.dot_dimension_numbers<[1], [0], [0], [1], [0, 0, 1, 1], [], []>} : vector<128x128xbf16>, vector<128x4xbf16>, vector<128x4xf32> -> vector<128x4xf32>
      %29 = arith.addf %20, %28 : vector<128x4xf32>
      %c0_i32_29 = arith.constant 0 : i32
      %30 = arith.addi %10, %c0_i32_29 : i32
      %31 = arith.index_cast %30 : i32 to index
      %c9 = arith.constant 9 : index
      %c0_30 = arith.constant 0 : index
      %32 = vector.load %arg8[%31, %c9, %c0_30] : memref<34x48x128xf32, #tpu.memory_space<vmem>>, vector<4x32x128xf32>
      %33 = vector.shape_cast %32 : vector<4x32x128xf32> to vector<128x128xf32>
      %34 = arith.truncf %33 : vector<128x128xf32> to vector<128x128xbf16>
      %c0_31 = arith.constant 0 : index
      %c2 = arith.constant 2 : index
      %c0_32 = arith.constant 0 : index
      %c0_33 = arith.constant 0 : index
      %35 = vector.load %arg6[%c0_31, %c2, %c0_32, %c0_33] : memref<3x3x128x4xbf16, #tpu.memory_space<vmem>>, vector<1x1x128x4xbf16>
      %36 = vector.shape_cast %35 : vector<1x1x128x4xbf16> to vector<128x4xbf16>
      %cst_34 = arith.constant dense<0.000000e+00> : vector<128x4xf32>
      %37 = tpu.matmul %34, %36, %cst_34 {dimension_numbers = #tpu.dot_dimension_numbers<[1], [0], [0], [1], [0, 0, 1, 1], [], []>} : vector<128x128xbf16>, vector<128x4xbf16>, vector<128x4xf32> -> vector<128x4xf32>
      %38 = arith.addf %29, %37 : vector<128x4xf32>
      %c1_i32_35 = arith.constant 1 : i32
      %39 = arith.addi %10, %c1_i32_35 : i32
      %40 = arith.index_cast %39 : i32 to index
      %c7_36 = arith.constant 7 : index
      %c0_37 = arith.constant 0 : index
      %41 = vector.load %arg8[%40, %c7_36, %c0_37] : memref<34x48x128xf32, #tpu.memory_space<vmem>>, vector<4x32x128xf32>
      %42 = vector.shape_cast %41 : vector<4x32x128xf32> to vector<128x128xf32>
      %43 = arith.truncf %42 : vector<128x128xf32> to vector<128x128xbf16>
      %c1_38 = arith.constant 1 : index
      %c0_39 = arith.constant 0 : index
      %c0_40 = arith.constant 0 : index
      %c0_41 = arith.constant 0 : index
      %44 = vector.load %arg6[%c1_38, %c0_39, %c0_40, %c0_41] : memref<3x3x128x4xbf16, #tpu.memory_space<vmem>>, vector<1x1x128x4xbf16>
      %45 = vector.shape_cast %44 : vector<1x1x128x4xbf16> to vector<128x4xbf16>
      %cst_42 = arith.constant dense<0.000000e+00> : vector<128x4xf32>
      %46 = tpu.matmul %43, %45, %cst_42 {dimension_numbers = #tpu.dot_dimension_numbers<[1], [0], [0], [1], [0, 0, 1, 1], [], []>} : vector<128x128xbf16>, vector<128x4xbf16>, vector<128x4xf32> -> vector<128x4xf32>
      %47 = arith.addf %38, %46 : vector<128x4xf32>
      %c1_i32_43 = arith.constant 1 : i32
      %48 = arith.addi %10, %c1_i32_43 : i32
      %49 = arith.index_cast %48 : i32 to index
      %c8_44 = arith.constant 8 : index
      %c0_45 = arith.constant 0 : index
      %50 = vector.load %arg8[%49, %c8_44, %c0_45] : memref<34x48x128xf32, #tpu.memory_space<vmem>>, vector<4x32x128xf32>
      %51 = vector.shape_cast %50 : vector<4x32x128xf32> to vector<128x128xf32>
      %52 = arith.truncf %51 : vector<128x128xf32> to vector<128x128xbf16>
      %c1_46 = arith.constant 1 : index
      %c1_47 = arith.constant 1 : index
      %c0_48 = arith.constant 0 : index
      %c0_49 = arith.constant 0 : index
      %53 = vector.load %arg6[%c1_46, %c1_47, %c0_48, %c0_49] : memref<3x3x128x4xbf16, #tpu.memory_space<vmem>>, vector<1x1x128x4xbf16>
      %54 = vector.shape_cast %53 : vector<1x1x128x4xbf16> to vector<128x4xbf16>
      %cst_50 = arith.constant dense<0.000000e+00> : vector<128x4xf32>
      %55 = tpu.matmul %52, %54, %cst_50 {dimension_numbers = #tpu.dot_dimension_numbers<[1], [0], [0], [1], [0, 0, 1, 1], [], []>} : vector<128x128xbf16>, vector<128x4xbf16>, vector<128x4xf32> -> vector<128x4xf32>
      %56 = arith.addf %47, %55 : vector<128x4xf32>
      %c1_i32_51 = arith.constant 1 : i32
      %57 = arith.addi %10, %c1_i32_51 : i32
      %58 = arith.index_cast %57 : i32 to index
      %c9_52 = arith.constant 9 : index
      %c0_53 = arith.constant 0 : index
      %59 = vector.load %arg8[%58, %c9_52, %c0_53] : memref<34x48x128xf32, #tpu.memory_space<vmem>>, vector<4x32x128xf32>
      %60 = vector.shape_cast %59 : vector<4x32x128xf32> to vector<128x128xf32>
      %61 = arith.truncf %60 : vector<128x128xf32> to vector<128x128xbf16>
      %c1_54 = arith.constant 1 : index
      %c2_55 = arith.constant 2 : index
      %c0_56 = arith.constant 0 : index
      %c0_57 = arith.constant 0 : index
      %62 = vector.load %arg6[%c1_54, %c2_55, %c0_56, %c0_57] : memref<3x3x128x4xbf16, #tpu.memory_space<vmem>>, vector<1x1x128x4xbf16>
      %63 = vector.shape_cast %62 : vector<1x1x128x4xbf16> to vector<128x4xbf16>
      %cst_58 = arith.constant dense<0.000000e+00> : vector<128x4xf32>
      %64 = tpu.matmul %61, %63, %cst_58 {dimension_numbers = #tpu.dot_dimension_numbers<[1], [0], [0], [1], [0, 0, 1, 1], [], []>} : vector<128x128xbf16>, vector<128x4xbf16>, vector<128x4xf32> -> vector<128x4xf32>
      %65 = arith.addf %56, %64 : vector<128x4xf32>
      %c2_i32 = arith.constant 2 : i32
      %66 = arith.addi %10, %c2_i32 : i32
      %67 = arith.index_cast %66 : i32 to index
      %c7_59 = arith.constant 7 : index
      %c0_60 = arith.constant 0 : index
      %68 = vector.load %arg8[%67, %c7_59, %c0_60] : memref<34x48x128xf32, #tpu.memory_space<vmem>>, vector<4x32x128xf32>
      %69 = vector.shape_cast %68 : vector<4x32x128xf32> to vector<128x128xf32>
      %70 = arith.truncf %69 : vector<128x128xf32> to vector<128x128xbf16>
      %c2_61 = arith.constant 2 : index
      %c0_62 = arith.constant 0 : index
      %c0_63 = arith.constant 0 : index
      %c0_64 = arith.constant 0 : index
      %71 = vector.load %arg6[%c2_61, %c0_62, %c0_63, %c0_64] : memref<3x3x128x4xbf16, #tpu.memory_space<vmem>>, vector<1x1x128x4xbf16>
      %72 = vector.shape_cast %71 : vector<1x1x128x4xbf16> to vector<128x4xbf16>
      %cst_65 = arith.constant dense<0.000000e+00> : vector<128x4xf32>
      %73 = tpu.matmul %70, %72, %cst_65 {dimension_numbers = #tpu.dot_dimension_numbers<[1], [0], [0], [1], [0, 0, 1, 1], [], []>} : vector<128x128xbf16>, vector<128x4xbf16>, vector<128x4xf32> -> vector<128x4xf32>
      %74 = arith.addf %65, %73 : vector<128x4xf32>
      %c2_i32_66 = arith.constant 2 : i32
      %75 = arith.addi %10, %c2_i32_66 : i32
      %76 = arith.index_cast %75 : i32 to index
      %c8_67 = arith.constant 8 : index
      %c0_68 = arith.constant 0 : index
      %77 = vector.load %arg8[%76, %c8_67, %c0_68] : memref<34x48x128xf32, #tpu.memory_space<vmem>>, vector<4x32x128xf32>
      %78 = vector.shape_cast %77 : vector<4x32x128xf32> to vector<128x128xf32>
      %79 = arith.truncf %78 : vector<128x128xf32> to vector<128x128xbf16>
      %c2_69 = arith.constant 2 : index
      %c1_70 = arith.constant 1 : index
      %c0_71 = arith.constant 0 : index
      %c0_72 = arith.constant 0 : index
      %80 = vector.load %arg6[%c2_69, %c1_70, %c0_71, %c0_72] : memref<3x3x128x4xbf16, #tpu.memory_space<vmem>>, vector<1x1x128x4xbf16>
      %81 = vector.shape_cast %80 : vector<1x1x128x4xbf16> to vector<128x4xbf16>
      %cst_73 = arith.constant dense<0.000000e+00> : vector<128x4xf32>
      %82 = tpu.matmul %79, %81, %cst_73 {dimension_numbers = #tpu.dot_dimension_numbers<[1], [0], [0], [1], [0, 0, 1, 1], [], []>} : vector<128x128xbf16>, vector<128x4xbf16>, vector<128x4xf32> -> vector<128x4xf32>
      %83 = arith.addf %74, %82 : vector<128x4xf32>
      %c2_i32_74 = arith.constant 2 : i32
      %84 = arith.addi %10, %c2_i32_74 : i32
      %85 = arith.index_cast %84 : i32 to index
      %c9_75 = arith.constant 9 : index
      %c0_76 = arith.constant 0 : index
      %86 = vector.load %arg8[%85, %c9_75, %c0_76] : memref<34x48x128xf32, #tpu.memory_space<vmem>>, vector<4x32x128xf32>
      %87 = vector.shape_cast %86 : vector<4x32x128xf32> to vector<128x128xf32>
      %88 = arith.truncf %87 : vector<128x128xf32> to vector<128x128xbf16>
      %c2_77 = arith.constant 2 : index
      %c2_78 = arith.constant 2 : index
      %c0_79 = arith.constant 0 : index
      %c0_80 = arith.constant 0 : index
      %89 = vector.load %arg6[%c2_77, %c2_78, %c0_79, %c0_80] : memref<3x3x128x4xbf16, #tpu.memory_space<vmem>>, vector<1x1x128x4xbf16>
      %90 = vector.shape_cast %89 : vector<1x1x128x4xbf16> to vector<128x4xbf16>
      %cst_81 = arith.constant dense<0.000000e+00> : vector<128x4xf32>
      %91 = tpu.matmul %88, %90, %cst_81 {dimension_numbers = #tpu.dot_dimension_numbers<[1], [0], [0], [1], [0, 0, 1, 1], [], []>} : vector<128x128xbf16>, vector<128x4xbf16>, vector<128x4xf32> -> vector<128x4xf32>
      %92 = arith.addf %83, %91 : vector<128x4xf32>
      %93 = vector.shape_cast %92 : vector<128x4xf32> to vector<4x32x4xf32>
      %c0_82 = arith.constant 0 : index
      %94 = arith.index_cast %10 : i32 to index
      %c0_83 = arith.constant 0 : index
      %c0_84 = arith.constant 0 : index
      %95 = vector.load %arg2[%c0_82, %94, %c0_83, %c0_84] : memref<1x32x32x4xf32, #tpu.memory_space<vmem>>, vector<1x4x32x4xf32>
      %96 = vector.shape_cast %95 : vector<1x4x32x4xf32> to vector<4x32x4xf32>
      %97 = arith.addf %93, %96 : vector<4x32x4xf32>
      %c0_85 = arith.constant 0 : index
      %98 = arith.index_cast %10 : i32 to index
      %c0_86 = arith.constant 0 : index
      %c0_87 = arith.constant 0 : index
      %99 = vector.load %arg7[%c0_85, %98, %c0_86, %c0_87] : memref<1x32x32x4xf32, #tpu.memory_space<vmem>>, vector<1x4x32x4xf32>
      %100 = vector.shape_cast %99 : vector<1x4x32x4xf32> to vector<4x32x4xf32>
      %101 = vector.shape_cast %97 : vector<4x32x4xf32> to vector<1x4x32x4xf32>
      tpu.vector_store %arg7[%c0_85, %98, %c0_86, %c0_87], %101 {strides = array<i32>} : memref<1x32x32x4xf32, #tpu.memory_space<vmem>>, vector<1x4x32x4xf32>,
    }
    %c8_i32_12 = arith.constant 8 : i32
    return
  }
  func.func @transform_0(%arg0: i32) -> (i32, i32, i32, i32) {
    %c0_i32 = arith.constant 0 : i32
    %c0_i32_0 = arith.constant 0 : i32
    %c0_i32_1 = arith.constant 0 : i32
    %c0_i32_2 = arith.constant 0 : i32
    return %arg0, %c0_i32, %c0_i32_0, %c0_i32_1 : i32, i32, i32, i32
  }
  func.func @transform_1(%arg0: i32) -> (i32, i32, i32, i32) {
    %c0_i32 = arith.constant 0 : i32
    %c0_i32_0 = arith.constant 0 : i32
    %c0_i32_1 = arith.constant 0 : i32
    %c0_i32_2 = arith.constant 0 : i32
    return %arg0, %c0_i32, %c0_i32_0, %c0_i32_1 : i32, i32, i32, i32
  }
  func.func @transform_2(%arg0: i32) -> (i32, i32) {
    %c0_i32 = arith.constant 0 : i32
    %c0_i32_0 = arith.constant 0 : i32
    %c0_i32_1 = arith.constant 0 : i32
    return %c0_i32, %c0_i32_0 : i32, i32
  }
  func.func @transform_3(%arg0: i32) -> (i32, i32, i32, i32) {
    %c0_i32 = arith.constant 0 : i32
    %c0_i32_0 = arith.constant 0 : i32
    %c0_i32_1 = arith.constant 0 : i32
    %c0_i32_2 = arith.constant 0 : i32
    %c0_i32_3 = arith.constant 0 : i32
    return %c0_i32, %c0_i32_0, %c0_i32_1, %c0_i32_2 : i32, i32, i32, i32
  }
  func.func @transform_4(%arg0: i32) -> (i32, i32, i32, i32) {
    %c0_i32 = arith.constant 0 : i32
    %c0_i32_0 = arith.constant 0 : i32
    %c0_i32_1 = arith.constant 0 : i32
    %c0_i32_2 = arith.constant 0 : i32
    %c0_i32_3 = arith.constant 0 : i32
    return %c0_i32, %c0_i32_0, %c0_i32_1, %c0_i32_2 : i32, i32, i32, i32
  }
  func.func @transform_5(%arg0: i32) -> (i32, i32, i32, i32) {
    %c0_i32 = arith.constant 0 : i32
    %c0_i32_0 = arith.constant 0 : i32
    %c0_i32_1 = arith.constant 0 : i32
    %c0_i32_2 = arith.constant 0 : i32
    %c0_i32_3 = arith.constant 0 : i32
    return %c0_i32, %c0_i32_0, %c0_i32_1, %c0_i32_2 : i32, i32, i32, i32
  }
  func.func @transform_6(%arg0: i32) -> (i32, i32, i32, i32) {
    %c0_i32 = arith.constant 0 : i32
    %c0_i32_0 = arith.constant 0 : i32
    %c0_i32_1 = arith.constant 0 : i32
    %c0_i32_2 = arith.constant 0 : i32
    return %arg0, %c0_i32, %c0_i32_0, %c0_i32_1 : i32, i32, i32, i32
  }
}

</mosaic_0001>

<bundles_post_ra>
// kernel: _lambda_.1
= control target key start
LH: loop header
LB: loop body
LE: loop exit
PB: predicated region body
PF: predicated region fallthrough
CT: control target
= control target key end

     0   :  { %s9399_s21 = smov 0   ;;  %s11681_s0 = inlined_call_operand.vmem [shape: bf16[2,32,32,36], index: 0, kind: input, shape index: {}]   ;;  %s11682_s1 = inlined_call_operand.vmem [shape: f32[2,32,32,4], index: 1, kind: input, shape index: {}]   ;;  %s11683_s2 = inlined_call_operand.vmem [shape: bf16[36,128], index: 2, kind: input, shape index: {}]   ;;  %s11684_s3 = inlined_call_operand.vmem [shape: bf16[3,3,128,128], index: 3, kind: input, shape index: {}]   ;;  %s11685_s4 = inlined_call_operand.vmem [shape: bf16[3,3,128,128], index: 4, kind: input, shape index: {}]   ;;  %s11686_s5 = inlined_call_operand.vmem [shape: bf16[3,3,128,4], index: 5, kind: input, shape index: {}]   ;;  %s11687_s6 = inlined_call_operand.vmem [shape: f32[2,32,32,4], index: 6, kind: output, shape index: {}]  }
   0x1 LB: > { %s6648_s22 = sadd.s32 4294967295, %s9341_s21   ;;  %p6652_p0 = scmp.ge.s32.totalorder %s9341_s21, 1  ;;  %s9341_s21 = sphi %s9399_s21, %s16_s21  }
   0x2   : > { %p222_p1 = scmp.lt.s32.totalorder %s9341_s21, 3 }
   0x4   : > { %p223_p2 = pnand %p6652_p0, %p222_p1 }
   0x5   : > { %p9409_p3 = scmp.lt.s32.totalorder (!%p223_p2), %s6648_s22, 1  ;;  %s9840_s11 = smov (!%p223_p2), 0  }
   0x6   : > { %226 = sbr.rel (%p223_p2) target bundleno = 1569 (0x621), region = 44 }
   0xb   : > { %v9363_v0 = vmov 0.0   ;;  %s11788_s22 = smov (!%p9409_p3, %s6648_s22), 1 }
   0xc   : > { %273 = vst [vmem:[#allocation2] sm:$0xff] %v9363_v0  ;;  %274 = vst [vmem:[#allocation2 + $0x8] sm:$0xff] %v9363_v0  ;;  %s7646_s24 = sshll.u32 %s11788_s22, 9  ;;  %s7647_s25 = sshll.u32 %s11788_s22, 10 }
   0xd   : > { %275 = vst [vmem:[#allocation2 + $0x10] sm:$0xff] %v9363_v0  ;;  %276 = vst [vmem:[#allocation2 + $0x18] sm:$0xff] %v9363_v0  ;;  %s9828_s28 = scalar_lea.vmem %s11681_s0, %s7646_s24  ;;  %s9833_s7 = scalar_lea.vmem %s11682_s1, %s7647_s25 }
   0xe   : > { %277 = vst [vmem:[#allocation2 + $0x20] sm:$0xff] %v9363_v0  ;;  %278 = vst [vmem:[#allocation2 + $0x28] sm:$0xff] %v9363_v0  ;;  %s9838_s10 = scalar_lea.vmem %s11687_s6, %s7647_s25 }
   0xf   : > { %279 = vst [vmem:[#allocation2 + $0x30] sm:$0xff] %v9363_v0  ;;  %280 = vst [vmem:[#allocation2 + $0x38] sm:$0xff] %v9363_v0 }
  0x10   : > { %281 = vst [vmem:[#allocation2 + $0x40] sm:$0xff] %v9363_v0  ;;  %282 = vst [vmem:[#allocation2 + $0x48] sm:$0xff] %v9363_v0 }
  0x11   : > { %283 = vst [vmem:[#allocation2 + $0x50] sm:$0xff] %v9363_v0  ;;  %284 = vst [vmem:[#allocation2 + $0x58] sm:$0xff] %v9363_v0 }
  0x12   : > { %285 = vst [vmem:[#allocation2 + $0x60] sm:$0xff] %v9363_v0  ;;  %286 = vst [vmem:[#allocation2 + $0x68] sm:$0xff] %v9363_v0 }
  0x13   : > { %287 = vst [vmem:[#allocation2 + $0x70] sm:$0xff] %v9363_v0  ;;  %288 = vst [vmem:[#allocation2 + $0x78] sm:$0xff] %v9363_v0 }
  0x14   : > { %289 = vst [vmem:[#allocation2 + $0x80] sm:$0xff] %v9363_v0  ;;  %290 = vst [vmem:[#allocation2 + $0x88] sm:$0xff] %v9363_v0 }
  0x15   : > { %291 = vst [vmem:[#allocation2 + $0x90] sm:$0xff] %v9363_v0  ;;  %292 = vst [vmem:[#allocation2 + $0x98] sm:$0xff] %v9363_v0 }
  0x16   : > { %293 = vst [vmem:[#allocation2 + $0xa0] sm:$0xff] %v9363_v0  ;;  %294 = vst [vmem:[#allocation2 + $0xa8] sm:$0xff] %v9363_v0 }
  0x17   : > { %295 = vst [vmem:[#allocation2 + $0xb0] sm:$0xff] %v9363_v0  ;;  %296 = vst [vmem:[#allocation2 + $0xb8] sm:$0xff] %v9363_v0 }
  0x18   : > { %297 = vst [vmem:[#allocation2 + $0xc0] sm:$0xff] %v9363_v0  ;;  %298 = vst [vmem:[#allocation2 + $0xc8] sm:$0xff] %v9363_v0 }
  0x19   : > { %299 = vst [vmem:[#allocation2 + $0xd0] sm:$0xff] %v9363_v0  ;;  %300 = vst [vmem:[#allocation2 + $0xd8] sm:$0xff] %v9363_v0 }
  0x1a   : > { %301 = vst [vmem:[#allocation2 + $0xe0] sm:$0xff] %v9363_v0  ;;  %302 = vst [vmem:[#allocation2 + $0xe8] sm:$0xff] %v9363_v0 }
  0x1b   : > { %303 = vst [vmem:[#allocation2 + $0xf0] sm:$0xff] %v9363_v0  ;;  %304 = vst [vmem:[#allocation2 + $0xf8] sm:$0xff] %v9363_v0 }
  0x1c   : > { %305 = vst [vmem:[#allocation2 + $0x100] sm:$0xff] %v9363_v0  ;;  %306 = vst [vmem:[#allocation2 + $0x108] sm:$0xff] %v9363_v0 }
  0x1d   : > { %307 = vst [vmem:[#allocation2 + $0x110] sm:$0xff] %v9363_v0  ;;  %308 = vst [vmem:[#allocation2 + $0x118] sm:$0xff] %v9363_v0 }
  0x1e   : > { %309 = vst [vmem:[#allocation2 + $0x120] sm:$0xff] %v9363_v0  ;;  %310 = vst [vmem:[#allocation2 + $0x128] sm:$0xff] %v9363_v0 }
  0x1f   : > { %311 = vst [vmem:[#allocation2 + $0x130] sm:$0xff] %v9363_v0  ;;  %312 = vst [vmem:[#allocation2 + $0x138] sm:$0xff] %v9363_v0 }
  0x20   : > { %313 = vst [vmem:[#allocation2 + $0x140] sm:$0xff] %v9363_v0  ;;  %314 = vst [vmem:[#allocation2 + $0x148] sm:$0xff] %v9363_v0 }
  0x21   : > { %315 = vst [vmem:[#allocation2 + $0x150] sm:$0xff] %v9363_v0  ;;  %316 = vst [vmem:[#allocation2 + $0x158] sm:$0xff] %v9363_v0 }
  0x22   : > { %317 = vst [vmem:[#allocation2 + $0x160] sm:$0xff] %v9363_v0  ;;  %318 = vst [vmem:[#allocation2 + $0x168] sm:$0xff] %v9363_v0 }
  0x23   : > { %319 = vst [vmem:[#allocation2 + $0x170] sm:$0xff] %v9363_v0  ;;  %320 = vst [vmem:[#allocation2 + $0x178] sm:$0xff] %v9363_v0 }
  0x24   : > { %321 = vst [vmem:[#allocation2 + $0x180] sm:$0xff] %v9363_v0  ;;  %322 = vst [vmem:[#allocation2 + $0x188] sm:$0xff] %v9363_v0 }
  0x25   : > { %323 = vst [vmem:[#allocation2 + $0x190] sm:$0xff] %v9363_v0  ;;  %324 = vst [vmem:[#allocation2 + $0x198] sm:$0xff] %v9363_v0 }
  0x26   : > { %325 = vst [vmem:[#allocation2 + $0x1a0] sm:$0xff] %v9363_v0  ;;  %326 = vst [vmem:[#allocation2 + $0x1a8] sm:$0xff] %v9363_v0 }
  0x27   : > { %327 = vst [vmem:[#allocation2 + $0x1b0] sm:$0xff] %v9363_v0  ;;  %328 = vst [vmem:[#allocation2 + $0x1b8] sm:$0xff] %v9363_v0 }
  0x28   : > { %329 = vst [vmem:[#allocation2 + $0x1c0] sm:$0xff] %v9363_v0  ;;  %330 = vst [vmem:[#allocation2 + $0x1c8] sm:$0xff] %v9363_v0 }
  0x29   : > { %331 = vst [vmem:[#allocation2 + $0x1d0] sm:$0xff] %v9363_v0  ;;  %332 = vst [vmem:[#allocation2 + $0x1d8] sm:$0xff] %v9363_v0 }
  0x2a   : > { %333 = vst [vmem:[#allocation2 + $0x1e0] sm:$0xff] %v9363_v0  ;;  %334 = vst [vmem:[#allocation2 + $0x1e8] sm:$0xff] %v9363_v0 }
  0x2b   : > { %335 = vst [vmem:[#allocation2 + $0x1f0] sm:$0xff] %v9363_v0  ;;  %336 = vst [vmem:[#allocation2 + $0x1f8] sm:$0xff] %v9363_v0 }
  0x2c   : > { %337 = vst [vmem:[#allocation2 + $0x200] sm:$0xff] %v9363_v0  ;;  %338 = vst [vmem:[#allocation2 + $0x208] sm:$0xff] %v9363_v0 }
  0x2d   : > { %339 = vst [vmem:[#allocation2 + $0x210] sm:$0xff] %v9363_v0  ;;  %340 = vst [vmem:[#allocation2 + $0x218] sm:$0xff] %v9363_v0 }
  0x2e   : > { %341 = vst [vmem:[#allocation2 + $0x220] sm:$0xff] %v9363_v0  ;;  %342 = vst [vmem:[#allocation2 + $0x228] sm:$0xff] %v9363_v0 }
  0x2f   : > { %343 = vst [vmem:[#allocation2 + $0x230] sm:$0xff] %v9363_v0  ;;  %344 = vst [vmem:[#allocation2 + $0x238] sm:$0xff] %v9363_v0 }
  0x30   : > { %345 = vst [vmem:[#allocation2 + $0x240] sm:$0xff] %v9363_v0  ;;  %346 = vst [vmem:[#allocation2 + $0x248] sm:$0xff] %v9363_v0 }
  0x31   : > { %347 = vst [vmem:[#allocation2 + $0x250] sm:$0xff] %v9363_v0  ;;  %348 = vst [vmem:[#allocation2 + $0x258] sm:$0xff] %v9363_v0 }
  0x32   : > { %349 = vst [vmem:[#allocation2 + $0x260] sm:$0xff] %v9363_v0  ;;  %350 = vst [vmem:[#allocation2 + $0x268] sm:$0xff] %v9363_v0 }
  0x33   : > { %351 = vst [vmem:[#allocation2 + $0x270] sm:$0xff] %v9363_v0  ;;  %352 = vst [vmem:[#allocation2 + $0x278] sm:$0xff] %v9363_v0 }
  0x34   : > { %353 = vst [vmem:[#allocation2 + $0x280] sm:$0xff] %v9363_v0  ;;  %354 = vst [vmem:[#allocation2 + $0x288] sm:$0xff] %v9363_v0 }
  0x35   : > { %355 = vst [vmem:[#allocation2 + $0x290] sm:$0xff] %v9363_v0  ;;  %356 = vst [vmem:[#allocation2 + $0x298] sm:$0xff] %v9363_v0 }
  0x36   : > { %357 = vst [vmem:[#allocation2 + $0x2a0] sm:$0xff] %v9363_v0  ;;  %358 = vst [vmem:[#allocation2 + $0x2a8] sm:$0xff] %v9363_v0 }
  0x37   : > { %359 = vst [vmem:[#allocation2 + $0x2b0] sm:$0xff] %v9363_v0  ;;  %360 = vst [vmem:[#allocation2 + $0x2b8] sm:$0xff] %v9363_v0 }
  0x38   : > { %361 = vst [vmem:[#allocation2 + $0x2c0] sm:$0xff] %v9363_v0  ;;  %362 = vst [vmem:[#allocation2 + $0x2c8] sm:$0xff] %v9363_v0 }
  0x39   : > { %363 = vst [vmem:[#allocation2 + $0x2d0] sm:$0xff] %v9363_v0  ;;  %364 = vst [vmem:[#allocation2 + $0x2d8] sm:$0xff] %v9363_v0 }
  0x3a   : > { %365 = vst [vmem:[#allocation2 + $0x2e0] sm:$0xff] %v9363_v0  ;;  %366 = vst [vmem:[#allocation2 + $0x2e8] sm:$0xff] %v9363_v0 }
  0x3b   : > { %367 = vst [vmem:[#allocation2 + $0x2f0] sm:$0xff] %v9363_v0  ;;  %368 = vst [vmem:[#allocation2 + $0x2f8] sm:$0xff] %v9363_v0 }
  0x3c   : > { %369 = vst [vmem:[#allocation2 + $0x300] sm:$0xff] %v9363_v0  ;;  %370 = vst [vmem:[#allocation2 + $0x308] sm:$0xff] %v9363_v0 }
  0x3d   : > { %371 = vst [vmem:[#allocation2 + $0x310] sm:$0xff] %v9363_v0  ;;  %372 = vst [vmem:[#allocation2 + $0x318] sm:$0xff] %v9363_v0 }
  0x3e   : > { %373 = vst [vmem:[#allocation2 + $0x320] sm:$0xff] %v9363_v0  ;;  %374 = vst [vmem:[#allocation2 + $0x328] sm:$0xff] %v9363_v0 }
  0x3f   : > { %375 = vst [vmem:[#allocation2 + $0x330] sm:$0xff] %v9363_v0  ;;  %376 = vst [vmem:[#allocation2 + $0x338] sm:$0xff] %v9363_v0 }
  0x40   : > { %377 = vst [vmem:[#allocation2 + $0x340] sm:$0xff] %v9363_v0  ;;  %378 = vst [vmem:[#allocation2 + $0x348] sm:$0xff] %v9363_v0 }
  0x41   : > { %379 = vst [vmem:[#allocation2 + $0x350] sm:$0xff] %v9363_v0  ;;  %380 = vst [vmem:[#allocation2 + $0x358] sm:$0xff] %v9363_v0 }
  0x42   : > { %381 = vst [vmem:[#allocation2 + $0x360] sm:$0xff] %v9363_v0  ;;  %382 = vst [vmem:[#allocation2 + $0x368] sm:$0xff] %v9363_v0 }
  0x43   : > { %383 = vst [vmem:[#allocation2 + $0x370] sm:$0xff] %v9363_v0  ;;  %384 = vst [vmem:[#allocation2 + $0x378] sm:$0xff] %v9363_v0 }
  0x44   : > { %385 = vst [vmem:[#allocation2 + $0x380] sm:$0xff] %v9363_v0  ;;  %386 = vst [vmem:[#allocation2 + $0x388] sm:$0xff] %v9363_v0 }
  0x45   : > { %387 = vst [vmem:[#allocation2 + $0x390] sm:$0xff] %v9363_v0  ;;  %388 = vst [vmem:[#allocation2 + $0x398] sm:$0xff] %v9363_v0 }
  0x46   : > { %389 = vst [vmem:[#allocation2 + $0x3a0] sm:$0xff] %v9363_v0  ;;  %390 = vst [vmem:[#allocation2 + $0x3a8] sm:$0xff] %v9363_v0 }
  0x47   : > { %391 = vst [vmem:[#allocation2 + $0x3b0] sm:$0xff] %v9363_v0  ;;  %392 = vst [vmem:[#allocation2 + $0x3b8] sm:$0xff] %v9363_v0 }
  0x48   : > { %393 = vst [vmem:[#allocation2 + $0x3c0] sm:$0xff] %v9363_v0  ;;  %394 = vst [vmem:[#allocation2 + $0x3c8] sm:$0xff] %v9363_v0 }
  0x49   : > { %395 = vst [vmem:[#allocation2 + $0x3d0] sm:$0xff] %v9363_v0  ;;  %396 = vst [vmem:[#allocation2 + $0x3d8] sm:$0xff] %v9363_v0 }
  0x4a   : > { %397 = vst [vmem:[#allocation2 + $0x3e0] sm:$0xff] %v9363_v0  ;;  %398 = vst [vmem:[#allocation2 + $0x3e8] sm:$0xff] %v9363_v0 }
  0x4b   : > { %399 = vst [vmem:[#allocation2 + $0x3f0] sm:$0xff] %v9363_v0  ;;  %400 = vst [vmem:[#allocation2 + $0x3f8] sm:$0xff] %v9363_v0 }
  0x4c   : > { %401 = vst [vmem:[#allocation2 + $0x400] sm:$0xff] %v9363_v0  ;;  %402 = vst [vmem:[#allocation2 + $0x408] sm:$0xff] %v9363_v0 }
  0x4d   : > { %403 = vst [vmem:[#allocation2 + $0x410] sm:$0xff] %v9363_v0  ;;  %404 = vst [vmem:[#allocation2 + $0x418] sm:$0xff] %v9363_v0 }
  0x4e   : > { %405 = vst [vmem:[#allocation2 + $0x420] sm:$0xff] %v9363_v0  ;;  %406 = vst [vmem:[#allocation2 + $0x428] sm:$0xff] %v9363_v0 }
  0x4f   : > { %407 = vst [vmem:[#allocation2 + $0x430] sm:$0xff] %v9363_v0  ;;  %408 = vst [vmem:[#allocation2 + $0x438] sm:$0xff] %v9363_v0 }
  0x50   : > { %409 = vst [vmem:[#allocation2 + $0x440] sm:$0xff] %v9363_v0  ;;  %410 = vst [vmem:[#allocation2 + $0x448] sm:$0xff] %v9363_v0 }
  0x51   : > { %411 = vst [vmem:[#allocation2 + $0x450] sm:$0xff] %v9363_v0  ;;  %412 = vst [vmem:[#allocation2 + $0x458] sm:$0xff] %v9363_v0 }
  0x52   : > { %413 = vst [vmem:[#allocation2 + $0x460] sm:$0xff] %v9363_v0  ;;  %414 = vst [vmem:[#allocation2 + $0x468] sm:$0xff] %v9363_v0 }
  0x53   : > { %415 = vst [vmem:[#allocation2 + $0x470] sm:$0xff] %v9363_v0  ;;  %416 = vst [vmem:[#allocation2 + $0x478] sm:$0xff] %v9363_v0 }
  0x54   : > { %417 = vst [vmem:[#allocation2 + $0x480] sm:$0xff] %v9363_v0  ;;  %418 = vst [vmem:[#allocation2 + $0x488] sm:$0xff] %v9363_v0 }
  0x55   : > { %419 = vst [vmem:[#allocation2 + $0x490] sm:$0xff] %v9363_v0  ;;  %420 = vst [vmem:[#allocation2 + $0x498] sm:$0xff] %v9363_v0 }
  0x56   : > { %421 = vst [vmem:[#allocation2 + $0x4a0] sm:$0xff] %v9363_v0  ;;  %422 = vst [vmem:[#allocation2 + $0x4a8] sm:$0xff] %v9363_v0 }
  0x57   : > { %423 = vst [vmem:[#allocation2 + $0x4b0] sm:$0xff] %v9363_v0  ;;  %424 = vst [vmem:[#allocation2 + $0x4b8] sm:$0xff] %v9363_v0 }
  0x58   : > { %425 = vst [vmem:[#allocation2 + $0x4c0] sm:$0xff] %v9363_v0  ;;  %426 = vst [vmem:[#allocation2 + $0x4c8] sm:$0xff] %v9363_v0 }
  0x59   : > { %427 = vst [vmem:[#allocation2 + $0x4d0] sm:$0xff] %v9363_v0  ;;  %428 = vst [vmem:[#allocation2 + $0x4d8] sm:$0xff] %v9363_v0 }
  0x5a   : > { %429 = vst [vmem:[#allocation2 + $0x4e0] sm:$0xff] %v9363_v0  ;;  %430 = vst [vmem:[#allocation2 + $0x4e8] sm:$0xff] %v9363_v0 }
  0x5b   : > { %431 = vst [vmem:[#allocation2 + $0x4f0] sm:$0xff] %v9363_v0  ;;  %432 = vst [vmem:[#allocation2 + $0x4f8] sm:$0xff] %v9363_v0 }
  0x5c   : > { %433 = vst [vmem:[#allocation2 + $0x500] sm:$0xff] %v9363_v0  ;;  %434 = vst [vmem:[#allocation2 + $0x508] sm:$0xff] %v9363_v0 }
  0x5d   : > { %435 = vst [vmem:[#allocation2 + $0x510] sm:$0xff] %v9363_v0  ;;  %436 = vst [vmem:[#allocation2 + $0x518] sm:$0xff] %v9363_v0 }
  0x5e   : > { %437 = vst [vmem:[#allocation2 + $0x520] sm:$0xff] %v9363_v0  ;;  %438 = vst [vmem:[#allocation2 + $0x528] sm:$0xff] %v9363_v0 }
  0x5f   : > { %439 = vst [vmem:[#allocation2 + $0x530] sm:$0xff] %v9363_v0  ;;  %440 = vst [vmem:[#allocation2 + $0x538] sm:$0xff] %v9363_v0 }
  0x60   : > { %441 = vst [vmem:[#allocation2 + $0x540] sm:$0xff] %v9363_v0  ;;  %442 = vst [vmem:[#allocation2 + $0x548] sm:$0xff] %v9363_v0 }
  0x61   : > { %443 = vst [vmem:[#allocation2 + $0x550] sm:$0xff] %v9363_v0  ;;  %444 = vst [vmem:[#allocation2 + $0x558] sm:$0xff] %v9363_v0 }
  0x62   : > { %445 = vst [vmem:[#allocation2 + $0x560] sm:$0xff] %v9363_v0  ;;  %446 = vst [vmem:[#allocation2 + $0x568] sm:$0xff] %v9363_v0 }
  0x63   : > { %447 = vst [vmem:[#allocation2 + $0x570] sm:$0xff] %v9363_v0  ;;  %448 = vst [vmem:[#allocation2 + $0x578] sm:$0xff] %v9363_v0 }
  0x64   : > { %449 = vst [vmem:[#allocation2 + $0x580] sm:$0xff] %v9363_v0  ;;  %450 = vst [vmem:[#allocation2 + $0x588] sm:$0xff] %v9363_v0 }
  0x65   : > { %451 = vst [vmem:[#allocation2 + $0x590] sm:$0xff] %v9363_v0  ;;  %452 = vst [vmem:[#allocation2 + $0x598] sm:$0xff] %v9363_v0 }
  0x66   : > { %453 = vst [vmem:[#allocation2 + $0x5a0] sm:$0xff] %v9363_v0  ;;  %454 = vst [vmem:[#allocation2 + $0x5a8] sm:$0xff] %v9363_v0 }
  0x67   : > { %455 = vst [vmem:[#allocation2 + $0x5b0] sm:$0xff] %v9363_v0  ;;  %456 = vst [vmem:[#allocation2 + $0x5b8] sm:$0xff] %v9363_v0 }
  0x68   : > { %457 = vst [vmem:[#allocation2 + $0x5c0] sm:$0xff] %v9363_v0  ;;  %458 = vst [vmem:[#allocation2 + $0x5c8] sm:$0xff] %v9363_v0 }
  0x69   : > { %459 = vst [vmem:[#allocation2 + $0x5d0] sm:$0xff] %v9363_v0  ;;  %460 = vst [vmem:[#allocation2 + $0x5d8] sm:$0xff] %v9363_v0 }
  0x6a   : > { %461 = vst [vmem:[#allocation2 + $0x5e0] sm:$0xff] %v9363_v0  ;;  %462 = vst [vmem:[#allocation2 + $0x5e8] sm:$0xff] %v9363_v0 }
  0x6b   : > { %463 = vst [vmem:[#allocation2 + $0x5f0] sm:$0xff] %v9363_v0  ;;  %464 = vst [vmem:[#allocation2 + $0x5f8] sm:$0xff] %v9363_v0 }
  0x6c   : > { %465 = vst [vmem:[#allocation2 + $0x600] sm:$0xff] %v9363_v0  ;;  %466 = vst [vmem:[#allocation2 + $0x608] sm:$0xff] %v9363_v0 }
  0x6d   : > { %467 = vst [vmem:[#allocation2 + $0x610] sm:$0xff] %v9363_v0  ;;  %468 = vst [vmem:[#allocation2 + $0x618] sm:$0xff] %v9363_v0 }
  0x6e   : > { %469 = vst [vmem:[#allocation2 + $0x620] sm:$0xff] %v9363_v0  ;;  %470 = vst [vmem:[#allocation2 + $0x628] sm:$0xff] %v9363_v0 }
  0x6f   : > { %471 = vst [vmem:[#allocation2 + $0x630] sm:$0xff] %v9363_v0  ;;  %472 = vst [vmem:[#allocation2 + $0x638] sm:$0xff] %v9363_v0 }
  0x70   : > { %473 = vst [vmem:[#allocation2 + $0x640] sm:$0xff] %v9363_v0  ;;  %474 = vst [vmem:[#allocation2 + $0x648] sm:$0xff] %v9363_v0 }
  0x71   : > { %475 = vst [vmem:[#allocation2 + $0x650] sm:$0xff] %v9363_v0  ;;  %476 = vst [vmem:[#allocation2 + $0x658] sm:$0xff] %v9363_v0 }
  0x72   : > { %477 = vst [vmem:[#allocation3] sm:$0xff] %v9363_v0  ;;  %478 = vst [vmem:[#allocation3 + $0x8] sm:$0xff] %v9363_v0 }
  0x73   : > { %479 = vst [vmem:[#allocation3 + $0x10] sm:$0xff] %v9363_v0  ;;  %480 = vst [vmem:[#allocation3 + $0x18] sm:$0xff] %v9363_v0 }
  0x74   : > { %481 = vst [vmem:[#allocation3 + $0x20] sm:$0xff] %v9363_v0  ;;  %482 = vst [vmem:[#allocation3 + $0x28] sm:$0xff] %v9363_v0 }
  0x75   : > { %483 = vst [vmem:[#allocation3 + $0x30] sm:$0xff] %v9363_v0  ;;  %484 = vst [vmem:[#allocation3 + $0x38] sm:$0xff] %v9363_v0 }
  0x76   : > { %485 = vst [vmem:[#allocation3 + $0x40] sm:$0xff] %v9363_v0  ;;  %486 = vst [vmem:[#allocation3 + $0x48] sm:$0xff] %v9363_v0 }
  0x77   : > { %487 = vst [vmem:[#allocation3 + $0x50] sm:$0xff] %v9363_v0  ;;  %488 = vst [vmem:[#allocation3 + $0x58] sm:$0xff] %v9363_v0 }
  0x78   : > { %489 = vst [vmem:[#allocation3 + $0x60] sm:$0xff] %v9363_v0  ;;  %490 = vst [vmem:[#allocation3 + $0x68] sm:$0xff] %v9363_v0 }
  0x79   : > { %491 = vst [vmem:[#allocation3 + $0x70] sm:$0xff] %v9363_v0  ;;  %492 = vst [vmem:[#allocation3 + $0x78] sm:$0xff] %v9363_v0 }
  0x7a   : > { %493 = vst [vmem:[#allocation3 + $0x80] sm:$0xff] %v9363_v0  ;;  %494 = vst [vmem:[#allocation3 + $0x88] sm:$0xff] %v9363_v0 }
  0x7b   : > { %495 = vst [vmem:[#allocation3 + $0x90] sm:$0xff] %v9363_v0  ;;  %496 = vst [vmem:[#allocation3 + $0x98] sm:$0xff] %v9363_v0 }
  0x7c   : > { %497 = vst [vmem:[#allocation3 + $0xa0] sm:$0xff] %v9363_v0  ;;  %498 = vst [vmem:[#allocation3 + $0xa8] sm:$0xff] %v9363_v0 }
  0x7d   : > { %499 = vst [vmem:[#allocation3 + $0xb0] sm:$0xff] %v9363_v0  ;;  %500 = vst [vmem:[#allocation3 + $0xb8] sm:$0xff] %v9363_v0 }
  0x7e   : > { %501 = vst [vmem:[#allocation3 + $0xc0] sm:$0xff] %v9363_v0  ;;  %502 = vst [vmem:[#allocation3 + $0xc8] sm:$0xff] %v9363_v0 }
  0x7f   : > { %503 = vst [vmem:[#allocation3 + $0xd0] sm:$0xff] %v9363_v0  ;;  %504 = vst [vmem:[#allocation3 + $0xd8] sm:$0xff] %v9363_v0 }
  0x80   : > { %505 = vst [vmem:[#allocation3 + $0xe0] sm:$0xff] %v9363_v0  ;;  %506 = vst [vmem:[#allocation3 + $0xe8] sm:$0xff] %v9363_v0 }
  0x81   : > { %507 = vst [vmem:[#allocation3 + $0xf0] sm:$0xff] %v9363_v0  ;;  %508 = vst [vmem:[#allocation3 + $0xf8] sm:$0xff] %v9363_v0 }
  0x82   : > { %509 = vst [vmem:[#allocation3 + $0x100] sm:$0xff] %v9363_v0  ;;  %510 = vst [vmem:[#allocation3 + $0x108] sm:$0xff] %v9363_v0 }
  0x83   : > { %511 = vst [vmem:[#allocation3 + $0x110] sm:$0xff] %v9363_v0  ;;  %512 = vst [vmem:[#allocation3 + $0x118] sm:$0xff] %v9363_v0 }
  0x84   : > { %513 = vst [vmem:[#allocation3 + $0x120] sm:$0xff] %v9363_v0  ;;  %514 = vst [vmem:[#allocation3 + $0x128] sm:$0xff] %v9363_v0 }
  0x85   : > { %515 = vst [vmem:[#allocation3 + $0x130] sm:$0xff] %v9363_v0  ;;  %516 = vst [vmem:[#allocation3 + $0x138] sm:$0xff] %v9363_v0 }
  0x86   : > { %517 = vst [vmem:[#allocation3 + $0x140] sm:$0xff] %v9363_v0  ;;  %518 = vst [vmem:[#allocation3 + $0x148] sm:$0xff] %v9363_v0 }
  0x87   : > { %519 = vst [vmem:[#allocation3 + $0x150] sm:$0xff] %v9363_v0  ;;  %520 = vst [vmem:[#allocation3 + $0x158] sm:$0xff] %v9363_v0 }
  0x88   : > { %521 = vst [vmem:[#allocation3 + $0x160] sm:$0xff] %v9363_v0  ;;  %522 = vst [vmem:[#allocation3 + $0x168] sm:$0xff] %v9363_v0 }
  0x89   : > { %523 = vst [vmem:[#allocation3 + $0x170] sm:$0xff] %v9363_v0  ;;  %524 = vst [vmem:[#allocation3 + $0x178] sm:$0xff] %v9363_v0 }
  0x8a   : > { %525 = vst [vmem:[#allocation3 + $0x180] sm:$0xff] %v9363_v0  ;;  %526 = vst [vmem:[#allocation3 + $0x188] sm:$0xff] %v9363_v0 }
  0x8b   : > { %527 = vst [vmem:[#allocation3 + $0x190] sm:$0xff] %v9363_v0  ;;  %528 = vst [vmem:[#allocation3 + $0x198] sm:$0xff] %v9363_v0 }
  0x8c   : > { %529 = vst [vmem:[#allocation3 + $0x1a0] sm:$0xff] %v9363_v0  ;;  %530 = vst [vmem:[#allocation3 + $0x1a8] sm:$0xff] %v9363_v0 }
  0x8d   : > { %531 = vst [vmem:[#allocation3 + $0x1b0] sm:$0xff] %v9363_v0  ;;  %532 = vst [vmem:[#allocation3 + $0x1b8] sm:$0xff] %v9363_v0 }
  0x8e   : > { %533 = vst [vmem:[#allocation3 + $0x1c0] sm:$0xff] %v9363_v0  ;;  %534 = vst [vmem:[#allocation3 + $0x1c8] sm:$0xff] %v9363_v0 }
  0x8f   : > { %535 = vst [vmem:[#allocation3 + $0x1d0] sm:$0xff] %v9363_v0  ;;  %536 = vst [vmem:[#allocation3 + $0x1d8] sm:$0xff] %v9363_v0 }
  0x90   : > { %537 = vst [vmem:[#allocation3 + $0x1e0] sm:$0xff] %v9363_v0  ;;  %538 = vst [vmem:[#allocation3 + $0x1e8] sm:$0xff] %v9363_v0 }
  0x91   : > { %539 = vst [vmem:[#allocation3 + $0x1f0] sm:$0xff] %v9363_v0  ;;  %540 = vst [vmem:[#allocation3 + $0x1f8] sm:$0xff] %v9363_v0 }
  0x92   : > { %541 = vst [vmem:[#allocation3 + $0x200] sm:$0xff] %v9363_v0  ;;  %542 = vst [vmem:[#allocation3 + $0x208] sm:$0xff] %v9363_v0 }
  0x93   : > { %543 = vst [vmem:[#allocation3 + $0x210] sm:$0xff] %v9363_v0  ;;  %544 = vst [vmem:[#allocation3 + $0x218] sm:$0xff] %v9363_v0 }
  0x94   : > { %545 = vst [vmem:[#allocation3 + $0x220] sm:$0xff] %v9363_v0  ;;  %546 = vst [vmem:[#allocation3 + $0x228] sm:$0xff] %v9363_v0 }
  0x95   : > { %547 = vst [vmem:[#allocation3 + $0x230] sm:$0xff] %v9363_v0  ;;  %548 = vst [vmem:[#allocation3 + $0x238] sm:$0xff] %v9363_v0 }
  0x96   : > { %549 = vst [vmem:[#allocation3 + $0x240] sm:$0xff] %v9363_v0  ;;  %550 = vst [vmem:[#allocation3 + $0x248] sm:$0xff] %v9363_v0 }
  0x97   : > { %551 = vst [vmem:[#allocation3 + $0x250] sm:$0xff] %v9363_v0  ;;  %552 = vst [vmem:[#allocation3 + $0x258] sm:$0xff] %v9363_v0 }
  0x98   : > { %553 = vst [vmem:[#allocation3 + $0x260] sm:$0xff] %v9363_v0  ;;  %554 = vst [vmem:[#allocation3 + $0x268] sm:$0xff] %v9363_v0 }
  0x99   : > { %555 = vst [vmem:[#allocation3 + $0x270] sm:$0xff] %v9363_v0  ;;  %556 = vst [vmem:[#allocation3 + $0x278] sm:$0xff] %v9363_v0 }
  0x9a   : > { %557 = vst [vmem:[#allocation3 + $0x280] sm:$0xff] %v9363_v0  ;;  %558 = vst [vmem:[#allocation3 + $0x288] sm:$0xff] %v9363_v0 }
  0x9b   : > { %559 = vst [vmem:[#allocation3 + $0x290] sm:$0xff] %v9363_v0  ;;  %560 = vst [vmem:[#allocation3 + $0x298] sm:$0xff] %v9363_v0 }
  0x9c   : > { %561 = vst [vmem:[#allocation3 + $0x2a0] sm:$0xff] %v9363_v0  ;;  %562 = vst [vmem:[#allocation3 + $0x2a8] sm:$0xff] %v9363_v0 }
  0x9d   : > { %563 = vst [vmem:[#allocation3 + $0x2b0] sm:$0xff] %v9363_v0  ;;  %564 = vst [vmem:[#allocation3 + $0x2b8] sm:$0xff] %v9363_v0 }
  0x9e   : > { %565 = vst [vmem:[#allocation3 + $0x2c0] sm:$0xff] %v9363_v0  ;;  %566 = vst [vmem:[#allocation3 + $0x2c8] sm:$0xff] %v9363_v0 }
  0x9f   : > { %567 = vst [vmem:[#allocation3 + $0x2d0] sm:$0xff] %v9363_v0  ;;  %568 = vst [vmem:[#allocation3 + $0x2d8] sm:$0xff] %v9363_v0 }
  0xa0   : > { %569 = vst [vmem:[#allocation3 + $0x2e0] sm:$0xff] %v9363_v0  ;;  %570 = vst [vmem:[#allocation3 + $0x2e8] sm:$0xff] %v9363_v0 }
  0xa1   : > { %571 = vst [vmem:[#allocation3 + $0x2f0] sm:$0xff] %v9363_v0  ;;  %572 = vst [vmem:[#allocation3 + $0x2f8] sm:$0xff] %v9363_v0 }
  0xa2   : > { %573 = vst [vmem:[#allocation3 + $0x300] sm:$0xff] %v9363_v0  ;;  %574 = vst [vmem:[#allocation3 + $0x308] sm:$0xff] %v9363_v0 }
  0xa3   : > { %575 = vst [vmem:[#allocation3 + $0x310] sm:$0xff] %v9363_v0  ;;  %576 = vst [vmem:[#allocation3 + $0x318] sm:$0xff] %v9363_v0 }
  0xa4   : > { %577 = vst [vmem:[#allocation3 + $0x320] sm:$0xff] %v9363_v0  ;;  %578 = vst [vmem:[#allocation3 + $0x328] sm:$0xff] %v9363_v0 }
  0xa5   : > { %579 = vst [vmem:[#allocation3 + $0x330] sm:$0xff] %v9363_v0  ;;  %580 = vst [vmem:[#allocation3 + $0x338] sm:$0xff] %v9363_v0 }
  0xa6   : > { %581 = vst [vmem:[#allocation3 + $0x340] sm:$0xff] %v9363_v0  ;;  %582 = vst [vmem:[#allocation3 + $0x348] sm:$0xff] %v9363_v0 }
  0xa7   : > { %583 = vst [vmem:[#allocation3 + $0x350] sm:$0xff] %v9363_v0  ;;  %584 = vst [vmem:[#allocation3 + $0x358] sm:$0xff] %v9363_v0 }
  0xa8   : > { %585 = vst [vmem:[#allocation3 + $0x360] sm:$0xff] %v9363_v0  ;;  %586 = vst [vmem:[#allocation3 + $0x368] sm:$0xff] %v9363_v0 }
  0xa9   : > { %587 = vst [vmem:[#allocation3 + $0x370] sm:$0xff] %v9363_v0  ;;  %588 = vst [vmem:[#allocation3 + $0x378] sm:$0xff] %v9363_v0 }
  0xaa   : > { %589 = vst [vmem:[#allocation3 + $0x380] sm:$0xff] %v9363_v0  ;;  %590 = vst [vmem:[#allocation3 + $0x388] sm:$0xff] %v9363_v0 }
  0xab   : > { %591 = vst [vmem:[#allocation3 + $0x390] sm:$0xff] %v9363_v0  ;;  %592 = vst [vmem:[#allocation3 + $0x398] sm:$0xff] %v9363_v0 }
  0xac   : > { %593 = vst [vmem:[#allocation3 + $0x3a0] sm:$0xff] %v9363_v0  ;;  %594 = vst [vmem:[#allocation3 + $0x3a8] sm:$0xff] %v9363_v0 }
  0xad   : > { %595 = vst [vmem:[#allocation3 + $0x3b0] sm:$0xff] %v9363_v0  ;;  %596 = vst [vmem:[#allocation3 + $0x3b8] sm:$0xff] %v9363_v0 }
  0xae   : > { %597 = vst [vmem:[#allocation3 + $0x3c0] sm:$0xff] %v9363_v0  ;;  %598 = vst [vmem:[#allocation3 + $0x3c8] sm:$0xff] %v9363_v0 }
  0xaf   : > { %599 = vst [vmem:[#allocation3 + $0x3d0] sm:$0xff] %v9363_v0  ;;  %600 = vst [vmem:[#allocation3 + $0x3d8] sm:$0xff] %v9363_v0 }
  0xb0   : > { %601 = vst [vmem:[#allocation3 + $0x3e0] sm:$0xff] %v9363_v0  ;;  %602 = vst [vmem:[#allocation3 + $0x3e8] sm:$0xff] %v9363_v0 }
  0xb1   : > { %603 = vst [vmem:[#allocation3 + $0x3f0] sm:$0xff] %v9363_v0  ;;  %604 = vst [vmem:[#allocation3 + $0x3f8] sm:$0xff] %v9363_v0 }
  0xb2   : > { %605 = vst [vmem:[#allocation3 + $0x400] sm:$0xff] %v9363_v0  ;;  %606 = vst [vmem:[#allocation3 + $0x408] sm:$0xff] %v9363_v0 }
  0xb3   : > { %607 = vst [vmem:[#allocation3 + $0x410] sm:$0xff] %v9363_v0  ;;  %608 = vst [vmem:[#allocation3 + $0x418] sm:$0xff] %v9363_v0 }
  0xb4   : > { %609 = vst [vmem:[#allocation3 + $0x420] sm:$0xff] %v9363_v0  ;;  %610 = vst [vmem:[#allocation3 + $0x428] sm:$0xff] %v9363_v0 }
  0xb5   : > { %611 = vst [vmem:[#allocation3 + $0x430] sm:$0xff] %v9363_v0  ;;  %612 = vst [vmem:[#allocation3 + $0x438] sm:$0xff] %v9363_v0 }
  0xb6   : > { %613 = vst [vmem:[#allocation3 + $0x440] sm:$0xff] %v9363_v0  ;;  %614 = vst [vmem:[#allocation3 + $0x448] sm:$0xff] %v9363_v0 }
  0xb7   : > { %615 = vst [vmem:[#allocation3 + $0x450] sm:$0xff] %v9363_v0  ;;  %616 = vst [vmem:[#allocation3 + $0x458] sm:$0xff] %v9363_v0 }
  0xb8   : > { %617 = vst [vmem:[#allocation3 + $0x460] sm:$0xff] %v9363_v0  ;;  %618 = vst [vmem:[#allocation3 + $0x468] sm:$0xff] %v9363_v0 }
  0xb9   : > { %619 = vst [vmem:[#allocation3 + $0x470] sm:$0xff] %v9363_v0  ;;  %620 = vst [vmem:[#allocation3 + $0x478] sm:$0xff] %v9363_v0 }
  0xba   : > { %621 = vst [vmem:[#allocation3 + $0x480] sm:$0xff] %v9363_v0  ;;  %622 = vst [vmem:[#allocation3 + $0x488] sm:$0xff] %v9363_v0 }
  0xbb   : > { %623 = vst [vmem:[#allocation3 + $0x490] sm:$0xff] %v9363_v0  ;;  %624 = vst [vmem:[#allocation3 + $0x498] sm:$0xff] %v9363_v0 }
  0xbc   : > { %625 = vst [vmem:[#allocation3 + $0x4a0] sm:$0xff] %v9363_v0  ;;  %626 = vst [vmem:[#allocation3 + $0x4a8] sm:$0xff] %v9363_v0 }
  0xbd   : > { %627 = vst [vmem:[#allocation3 + $0x4b0] sm:$0xff] %v9363_v0  ;;  %628 = vst [vmem:[#allocation3 + $0x4b8] sm:$0xff] %v9363_v0 }
  0xbe   : > { %629 = vst [vmem:[#allocation3 + $0x4c0] sm:$0xff] %v9363_v0  ;;  %630 = vst [vmem:[#allocation3 + $0x4c8] sm:$0xff] %v9363_v0 }
  0xbf   : > { %631 = vst [vmem:[#allocation3 + $0x4d0] sm:$0xff] %v9363_v0  ;;  %632 = vst [vmem:[#allocation3 + $0x4d8] sm:$0xff] %v9363_v0 }
  0xc0   : > { %633 = vst [vmem:[#allocation3 + $0x4e0] sm:$0xff] %v9363_v0  ;;  %634 = vst [vmem:[#allocation3 + $0x4e8] sm:$0xff] %v9363_v0 }
  0xc1   : > { %635 = vst [vmem:[#allocation3 + $0x4f0] sm:$0xff] %v9363_v0  ;;  %636 = vst [vmem:[#allocation3 + $0x4f8] sm:$0xff] %v9363_v0 }
  0xc2   : > { %637 = vst [vmem:[#allocation3 + $0x500] sm:$0xff] %v9363_v0  ;;  %638 = vst [vmem:[#allocation3 + $0x508] sm:$0xff] %v9363_v0 }
  0xc3   : > { %639 = vst [vmem:[#allocation3 + $0x510] sm:$0xff] %v9363_v0  ;;  %640 = vst [vmem:[#allocation3 + $0x518] sm:$0xff] %v9363_v0 }
  0xc4   : > { %641 = vst [vmem:[#allocation3 + $0x520] sm:$0xff] %v9363_v0  ;;  %642 = vst [vmem:[#allocation3 + $0x528] sm:$0xff] %v9363_v0 }
  0xc5   : > { %643 = vst [vmem:[#allocation3 + $0x530] sm:$0xff] %v9363_v0  ;;  %644 = vst [vmem:[#allocation3 + $0x538] sm:$0xff] %v9363_v0 }
  0xc6   : > { %645 = vst [vmem:[#allocation3 + $0x540] sm:$0xff] %v9363_v0  ;;  %646 = vst [vmem:[#allocation3 + $0x548] sm:$0xff] %v9363_v0 }
  0xc7   : > { %647 = vst [vmem:[#allocation3 + $0x550] sm:$0xff] %v9363_v0  ;;  %648 = vst [vmem:[#allocation3 + $0x558] sm:$0xff] %v9363_v0 }
  0xc8   : > { %649 = vst [vmem:[#allocation3 + $0x560] sm:$0xff] %v9363_v0  ;;  %650 = vst [vmem:[#allocation3 + $0x568] sm:$0xff] %v9363_v0 }
  0xc9   : > { %651 = vst [vmem:[#allocation3 + $0x570] sm:$0xff] %v9363_v0  ;;  %652 = vst [vmem:[#allocation3 + $0x578] sm:$0xff] %v9363_v0 }
  0xca   : > { %653 = vst [vmem:[#allocation3 + $0x580] sm:$0xff] %v9363_v0  ;;  %654 = vst [vmem:[#allocation3 + $0x588] sm:$0xff] %v9363_v0 }
  0xcb   : > { %655 = vst [vmem:[#allocation3 + $0x590] sm:$0xff] %v9363_v0  ;;  %656 = vst [vmem:[#allocation3 + $0x598] sm:$0xff] %v9363_v0 }
  0xcc   : > { %657 = vst [vmem:[#allocation3 + $0x5a0] sm:$0xff] %v9363_v0  ;;  %658 = vst [vmem:[#allocation3 + $0x5a8] sm:$0xff] %v9363_v0 }
  0xcd   : > { %659 = vst [vmem:[#allocation3 + $0x5b0] sm:$0xff] %v9363_v0  ;;  %660 = vst [vmem:[#allocation3 + $0x5b8] sm:$0xff] %v9363_v0 }
  0xce   : > { %661 = vst [vmem:[#allocation3 + $0x5c0] sm:$0xff] %v9363_v0  ;;  %662 = vst [vmem:[#allocation3 + $0x5c8] sm:$0xff] %v9363_v0 }
  0xcf   : > { %663 = vst [vmem:[#allocation3 + $0x5d0] sm:$0xff] %v9363_v0  ;;  %664 = vst [vmem:[#allocation3 + $0x5d8] sm:$0xff] %v9363_v0 }
  0xd0   : > { %665 = vst [vmem:[#allocation3 + $0x5e0] sm:$0xff] %v9363_v0  ;;  %666 = vst [vmem:[#allocation3 + $0x5e8] sm:$0xff] %v9363_v0 }
  0xd1   : > { %667 = vst [vmem:[#allocation3 + $0x5f0] sm:$0xff] %v9363_v0  ;;  %668 = vst [vmem:[#allocation3 + $0x5f8] sm:$0xff] %v9363_v0 }
  0xd2   : > { %669 = vst [vmem:[#allocation3 + $0x600] sm:$0xff] %v9363_v0  ;;  %670 = vst [vmem:[#allocation3 + $0x608] sm:$0xff] %v9363_v0 }
  0xd3   : > { %671 = vst [vmem:[#allocation3 + $0x610] sm:$0xff] %v9363_v0  ;;  %672 = vst [vmem:[#allocation3 + $0x618] sm:$0xff] %v9363_v0 }
  0xd4   : > { %673 = vst [vmem:[#allocation3 + $0x620] sm:$0xff] %v9363_v0  ;;  %674 = vst [vmem:[#allocation3 + $0x628] sm:$0xff] %v9363_v0 }
  0xd5   : > { %675 = vst [vmem:[#allocation3 + $0x630] sm:$0xff] %v9363_v0  ;;  %676 = vst [vmem:[#allocation3 + $0x638] sm:$0xff] %v9363_v0 }
  0xd6   : > { %677 = vst [vmem:[#allocation3 + $0x640] sm:$0xff] %v9363_v0  ;;  %678 = vst [vmem:[#allocation3 + $0x648] sm:$0xff] %v9363_v0 }
  0xd7   : > { %679 = vst [vmem:[#allocation3 + $0x650] sm:$0xff] %v9363_v0  ;;  %680 = vst [vmem:[#allocation3 + $0x658] sm:$0xff] %v9363_v0 }
  0xd8 LB: >> { %v9088_v1 = vld [vmem:[%s11683_s2 + $0x10] ss:$0 sps:$4 sm:$0x33]   ;;  %vm792_vm0 = vcmask 1041408   ;;  %v9089_v2 = vld [vmem:[%s11683_s2 + $0x8] sm:$0xff]   ;;  %s7650_s16 = sshll.u32 %s9345_s11, 6  ;;  %s9345_s11 = sphi %s9840_s11, %s686_s11  }
  0xd9   : >> { %9037 = vmatprep.subr.msk.bf16.mxu0 %vm792_vm0, %v9088_v1  ;;  %9038 = vmatprep.subr.msk.bf16.mxu1 %vm792_vm0, %v9088_v1  ;;  %v794_v3 = vsel %vm792_vm0, %v9088_v1, 0  ;;  %v9090_v4 = vld [vmem:[%s11683_s2] sm:$0xff]   ;;  %s690_s19 = scalar_lea.vmem %s9828_s28, %s7650_s16  ;;  %vm767_vm1 = vcmask 293888   ;;  %s7651_s20 = sshll.u32 %s9345_s11, 7 }
  0xda   : >> { %8098 = vmatpush3.bf16.msra.mxu0 %v794_v3  ;;  %8986 = vmatpush3.bf16.msra.mxu1 %v794_v3  ;;  %v9091_v5 = vld [vmem:[%s690_s19] sm:$0xff]   ;;  %v9093_v7 = vld [vmem:[%s690_s19 + $0x8] sm:$0xff]   ;;  %v9095_v9 = vld [vmem:[%s690_s19 + $0x10] sm:$0xff]   ;;  %s6683_s22 = smul.u32 192, %s9345_s11  ;;  %s9866_s23 = scalar_lea.vmem [#allocation4], %s7651_s20 }
  0xdb   : >> { %8099 = vmatprep.subr.bf16.mxu0 %v9089_v2  ;;  %8984 = vmatprep.subr.bf16.mxu1 %v9089_v2  ;;  %v9092_v6 = vld [vmem:[%s690_s19 + $0x20] sm:$0xff]   ;;  %v9094_v8 = vld [vmem:[%s690_s19 + $0x28] sm:$0xff]   ;;  %v9096_v10 = vld [vmem:[%s690_s19 + $0x30] sm:$0xff]   ;;  %s686_s11 = sadd.s32 1, %s9345_s11  }
  0xdc   : >> { %8103 = vmatprep.mubr.msk.bf16.mxu0 %vm767_vm1, %v9091_v5  ;;  %8111 = vmatprep.mubr.msk.bf16.mxu1 %vm767_vm1, %v9092_v6  ;;  %v9097_v11 = vld [vmem:[%s690_s19 + $0x18] sm:$0xff]   ;;  %s9870_s24 = scalar_lea.vmem [#allocation2], %s6683_s22  ;;  %p683_p4 = scmp.ge.s32.totalorder %s686_s11, 8  }
  0xdd   : >> { %v9098_v12 = vld [vmem:[%s690_s19 + $0x38] sm:$0xff]   ;;  %s9905_s25 = smov (%p683_p4), 0  }
  0xde   : >> { %8100 = vmatpush3.bf16.msra.mxu0 %v9089_v2  ;;  %8987 = vmatpush3.bf16.msra.mxu1 %v9089_v2 }
  0xdf   : >> { %8101 = vmatprep.subr.bf16.mxu0 %v9090_v4  ;;  %8985 = vmatprep.subr.bf16.mxu1 %v9090_v4 }
  0xe2   : >> { %8102 = vmatpush3.bf16.msra.mxu0 %v9090_v4  ;;  %8988 = vmatpush3.bf16.msra.mxu1 %v9090_v4 }
  0xe5   : >> { %8104 = vmatmul.mubr.msk.bf16.vlgmr.msra.gmra.mxu0 %vm767_vm1, %v9093_v7  ;;  %8112 = vmatmul.mubr.msk.bf16.vlgmr.msra.gmra.mxu1 %vm767_vm1, %v9094_v8 }
  0xe6   : >> { %8107 = vmatprep.mubr.msk.bf16.mxu0 %vm767_vm1, %v9095_v9  ;;  %8115 = vmatprep.mubr.msk.bf16.mxu1 %vm767_vm1, %v9096_v10 }
  0xed   : >> { %8108 = vmatmul.mubr.msk.bf16.gmra.mxu0 %vm767_vm1, %v9097_v11  ;;  %8116 = vmatmul.mubr.msk.bf16.gmra.mxu1 %vm767_vm1, %v9098_v12 }
 0x1a5   : >> { %v8105_v13 = vpop.f32.mrf.mxu0  ;;  %v8113_v14 = vpop.f32.mrf.mxu1 }
 0x1a6   : >> { %897 = vst [vmem:[%s9866_s23 + $0x10] sm:$0xff] %v8105_v13  ;;  %v913_v15 = vmax.f32 %v8105_v13, 0.0  ;;  %905 = vst [vmem:[%s9866_s23 + $0x50] sm:$0xff] %v8113_v14  ;;  %v921_v16 = vmax.f32 %v8113_v14, 0.0 }
 0x1a7   : >> { %v830_v17 = vpop.f32.mrf.mxu0  ;;  %v862_v18 = vpop.f32.mrf.mxu1 }
 0x1a8   : >> { %6686 = vst [vmem:[%s9870_s24 + $0x48] sm:$0xff] %v913_v15  ;;  %6694 = vst [vmem:[%s9870_s24 + $0xa8] sm:$0xff] %v921_v16  ;;  %v911_v19 = vmax.f32 %v830_v17, 0.0  ;;  %v919_v20 = vmax.f32 %v862_v18, 0.0 }
 0x1a9   : >> { %895 = vst [vmem:[%s9866_s23] sm:$0xff] %v830_v17  ;;  %903 = vst [vmem:[%s9866_s23 + $0x40] sm:$0xff] %v862_v18  ;;  %v8106_v21 = vpop.f32.mrf.mxu0  ;;  %v8114_v22 = vpop.f32.mrf.mxu1 }
 0x1aa   : >> { %6684 = vst [vmem:[%s9870_s24 + $0x38] sm:$0xff] %v911_v19  ;;  %6692 = vst [vmem:[%s9870_s24 + $0x98] sm:$0xff] %v919_v20  ;;  %v914_v23 = vmax.f32 %v8106_v21, 0.0  ;;  %v922_v24 = vmax.f32 %v8114_v22, 0.0 }
 0x1ab   : >> { %898 = vst [vmem:[%s9866_s23 + $0x18] sm:$0xff] %v8106_v21  ;;  %906 = vst [vmem:[%s9866_s23 + $0x58] sm:$0xff] %v8114_v22  ;;  %v833_v25 = vpop.f32.mrf.mxu0  ;;  %v865_v26 = vpop.f32.mrf.mxu1 }
 0x1ac   : >> { %6687 = vst [vmem:[%s9870_s24 + $0x50] sm:$0xff] %v914_v23  ;;  %6695 = vst [vmem:[%s9870_s24 + $0xb0] sm:$0xff] %v922_v24  ;;  %v912_v27 = vmax.f32 %v833_v25, 0.0  ;;  %v920_v28 = vmax.f32 %v865_v26, 0.0 }
 0x1ad   : >> { %896 = vst [vmem:[%s9866_s23 + $0x8] sm:$0xff] %v833_v25  ;;  %904 = vst [vmem:[%s9866_s23 + $0x48] sm:$0xff] %v865_v26  ;;  %v8109_v29 = vpop.f32.mrf.mxu0  ;;  %v8117_v30 = vpop.f32.mrf.mxu1 }
 0x1ae   : >> { %6685 = vst [vmem:[%s9870_s24 + $0x40] sm:$0xff] %v912_v27  ;;  %6693 = vst [vmem:[%s9870_s24 + $0xa0] sm:$0xff] %v920_v28  ;;  %v917_v31 = vmax.f32 %v8109_v29, 0.0  ;;  %v925_v32 = vmax.f32 %v8117_v30, 0.0 }
 0x1af   : >> { %901 = vst [vmem:[%s9866_s23 + $0x30] sm:$0xff] %v8109_v29  ;;  %909 = vst [vmem:[%s9866_s23 + $0x70] sm:$0xff] %v8117_v30  ;;  %v846_v33 = vpop.f32.mrf.mxu0  ;;  %v878_v34 = vpop.f32.mrf.mxu1 }
 0x1b0   : >> { %6690 = vst [vmem:[%s9870_s24 + $0x78] sm:$0xff] %v917_v31  ;;  %6698 = vst [vmem:[%s9870_s24 + $0xd8] sm:$0xff] %v925_v32  ;;  %v915_v35 = vmax.f32 %v846_v33, 0.0  ;;  %v923_v36 = vmax.f32 %v878_v34, 0.0 }
 0x1b1   : >> { %899 = vst [vmem:[%s9866_s23 + $0x20] sm:$0xff] %v846_v33  ;;  %907 = vst [vmem:[%s9866_s23 + $0x60] sm:$0xff] %v878_v34  ;;  %v8110_v37 = vpop.f32.mrf.mxu0  ;;  %v8118_v38 = vpop.f32.mrf.mxu1 }
 0x1b2   : >> { %6688 = vst [vmem:[%s9870_s24 + $0x68] sm:$0xff] %v915_v35  ;;  %6696 = vst [vmem:[%s9870_s24 + $0xc8] sm:$0xff] %v923_v36  ;;  %v918_v39 = vmax.f32 %v8110_v37, 0.0  ;;  %v926_v40 = vmax.f32 %v8118_v38, 0.0  ;;  %685 = sbr.rel (!%p683_p4) target bundleno = 216 (0xd8), region = 153 }
 0x1b3   : >> { %902 = vst [vmem:[%s9866_s23 + $0x38] sm:$0xff] %v8110_v37  ;;  %910 = vst [vmem:[%s9866_s23 + $0x78] sm:$0xff] %v8118_v38  ;;  %v849_v41 = vpop.f32.mrf.mxu0  ;;  %v881_v42 = vpop.f32.mrf.mxu1 }
 0x1b4   : >> { %6691 = vst [vmem:[%s9870_s24 + $0x80] sm:$0xff] %v918_v39  ;;  %6699 = vst [vmem:[%s9870_s24 + $0xe0] sm:$0xff] %v926_v40  ;;  %v916_v43 = vmax.f32 %v849_v41, 0.0  ;;  %v924_v44 = vmax.f32 %v881_v42, 0.0 }
 0x1b5   : >> { %900 = vst [vmem:[%s9866_s23 + $0x28] sm:$0xff] %v849_v41  ;;  %908 = vst [vmem:[%s9866_s23 + $0x68] sm:$0xff] %v881_v42 }
 0x1b6   : >> { %6689 = vst [vmem:[%s9870_s24 + $0x70] sm:$0xff] %v916_v43  ;;  %6697 = vst [vmem:[%s9870_s24 + $0xd0] sm:$0xff] %v924_v44 }
 0x1b7 LB: >> { %s9910_s26 = smov 0   ;;  %s9349_s25 = sphi %s9905_s25, %s951_s25  }
 0x1b8 LB: >>> { %v9099_v45 = vld [vmem:[%s11684_s3 + $0x78] sm:$0xff]   ;;  %v9101_v47 = vld [vmem:[%s11684_s3 + $0x70] sm:$0xff]   ;;  %v9103_v49 = vld [vmem:[%s11684_s3 + $0x68] sm:$0xff]   ;;  %s6701_s22 = smul.u32 192, %s9353_s26  ;;  %s957_s26 = sadd.s32 1, %s9353_s26   ;;  %s9353_s26 = sphi %s9910_s26, %s957_s26  }
 0x1b9   : >>> { %v9100_v46 = vld [vmem:[%s11684_s3 + $0x38] sm:$0xff]   ;;  %8119 = vmatprep.subr.bf16.mxu0 %v9099_v45  ;;  %v9102_v48 = vld [vmem:[%s11684_s3 + $0x30] sm:$0xff]   ;;  %v9104_v50 = vld [vmem:[%s11684_s3 + $0x28] sm:$0xff]   ;;  %p954_p5 = scmp.ge.s32.totalorder %s957_s26, 8  }
 0x1ba   : >>> { %8151 = vmatprep.subr.bf16.mxu1 %v9100_v46  ;;  %8120 = vmatpush3.bf16.msra.mxu0 %v9099_v45  ;;  %v9105_v51 = vld [vmem:[%s11684_s3 + $0x60] sm:$0xff]   ;;  %v9107_v53 = vld [vmem:[%s11684_s3 + $0x58] sm:$0xff]   ;;  %v9109_v55 = vld [vmem:[%s11684_s3 + $0x50] sm:$0xff]   ;;  %s9951_s28 = scalar_lea.vmem [#allocation2], %s6701_s22 }
 0x1bb   : >>> { %8152 = vmatpush3.bf16.msra.mxu1 %v9100_v46  ;;  %8121 = vmatprep.subr.bf16.mxu0 %v9101_v47  ;;  %v9106_v52 = vld [vmem:[%s11684_s3 + $0x20] sm:$0xff]   ;;  %v9108_v54 = vld [vmem:[%s11684_s3 + $0x18] sm:$0xff]   ;;  %v9110_v59 = vld [vmem:[%s11684_s3 + $0x10] sm:$0xff]  }
 0x1bc   : >>> { %8153 = vmatprep.subr.bf16.mxu1 %v9102_v48  ;;  %v9111_v63 = vld [vmem:[%s11684_s3 + $0x48] sm:$0xff]   ;;  %v9113_v1 = vld [vmem:[%s11684_s3 + $0x40] sm:$0xff]   ;;  %v9115_v7 = vld [vmem:[%s11684_s3 + $0xb8] sm:$0xff]  }
 0x1bd   : >>> { %v1001_v56 = vld [vmem:[%s9951_s28 + $0x8] sm:$0xff]  ;;  %v1002_v57 = vld [vmem:[%s9951_s28 + $0x10] sm:$0xff]  ;;  %v9114_v2 = vld [vmem:[%s11684_s3] sm:$0xff]  }
 0x1be   : >>> { %8122 = vmatpush3.bf16.msra.mxu0 %v9101_v47  ;;  %v961_v58 = vld [vmem:[%s9951_s28 + $0x7] sm:$0xff]  ;;  %v1017_v60 = vpack.c.bf16 %v1002_v57, %v1001_v56  ;;  %v962_v61 = vld [vmem:[%s9951_s28 + $0xf] sm:$0xff]  ;;  %v1003_v3 = vld [vmem:[%s9951_s28 + $0x18] sm:$0xff] }
 0x1bf   : >>> { %8154 = vmatpush3.bf16.msra.mxu1 %v9102_v48  ;;  %8123 = vmatprep.subr.bf16.mxu0 %v9103_v49  ;;  %v977_v62 = vpack.c.bf16 %v962_v61, %v961_v58  ;;  %v9112_v0 = vld [vmem:[%s11684_s3 + $0x8] sm:$0xff]   ;;  %v1004_v4 = vld [vmem:[%s9951_s28 + $0x20] sm:$0xff]  ;;  %v963_v5 = vld [vmem:[%s9951_s28 + $0x17] sm:$0xff] }
 0x1c0   : >>> { %8155 = vmatprep.subr.bf16.mxu1 %v9104_v50  ;;  %8135 = vmatprep.mubr.bf16.mxu0 %v1017_v60  ;;  %v964_v6 = vld [vmem:[%s9951_s28 + $0x1f] sm:$0xff]  ;;  %v1018_v9 = vpack.c.bf16 %v1004_v4, %v1003_v3  ;;  %v965_v13 = vld [vmem:[%s9951_s28 + $0x37] sm:$0xff]  ;;  %v1007_v19 = vld [vmem:[%s9951_s28 + $0x48] sm:$0xff] }
 0x1c1   : >>> { %8167 = vmatprep.mubr.bf16.mxu1 %v977_v62  ;;  %v9116_v8 = vld [vmem:[%s11684_s3 + $0xf8] sm:$0xff]   ;;  %v1006_v11 = vld [vmem:[%s9951_s28 + $0x40] sm:$0xff]  ;;  %v978_v12 = vpack.c.bf16 %v964_v6, %v963_v5  ;;  %v9117_v15 = vld [vmem:[%s11684_s3 + $0xb0] sm:$0xff]  }
 0x1c2   : >>> { %8124 = vmatpush3.bf16.msra.mxu0 %v9103_v49  ;;  %v1005_v10 = vld [vmem:[%s9951_s28 + $0x38] sm:$0xff]  ;;  %v9118_v16 = vld [vmem:[%s11684_s3 + $0xf0] sm:$0xff]   ;;  %v967_v21 = vld [vmem:[%s9951_s28 + $0x47] sm:$0xff] }
 0x1c3   : >>> { %8156 = vmatpush3.bf16.msra.mxu1 %v9104_v50  ;;  %8125 = vmatprep.subr.bf16.mxu0 %v9105_v51  ;;  %v966_v14 = vld [vmem:[%s9951_s28 + $0x3f] sm:$0xff]  ;;  %v9992_v17 = vpack.c.bf16 %v1006_v11, %v1005_v10  ;;  %v1008_v20 = vld [vmem:[%s9951_s28 + $0x50] sm:$0xff]  ;;  %v9119_v23 = vld [vmem:[%s11684_s3 + $0xa8] sm:$0xff]  }
 0x1c4   : >>> { %8157 = vmatprep.subr.bf16.mxu1 %v9106_v52  ;;  %v9994_v18 = vpack.c.bf16 %v966_v14, %v965_v13  ;;  %v968_v22 = vld [vmem:[%s9951_s28 + $0x4f] sm:$0xff]  ;;  %v10009_v26 = vpack.c.bf16 %v1008_v20, %v1007_v19  ;;  %v9121_v27 = vld [vmem:[%s11684_s3 + $0xa0] sm:$0xff]   ;;  %v1011_v34 = vld [vmem:[%s9951_s28 + $0x78] sm:$0xff] }
 0x1c5   : >>> { %v9120_v24 = vld [vmem:[%s11684_s3 + $0xe8] sm:$0xff]   ;;  %v1010_v28 = vld [vmem:[%s9951_s28 + $0x70] sm:$0xff]  ;;  %v10016_v30 = vpack.c.bf16 %v968_v22, %v967_v21  ;;  %v9122_v32 = vld [vmem:[%s11684_s3 + $0xe0] sm:$0xff]  }
 0x1c6   : >>> { %8126 = vmatpush3.bf16.msra.mxu0 %v9105_v51  ;;  %v1009_v25 = vld [vmem:[%s9951_s28 + $0x68] sm:$0xff]  ;;  %v1012_v36 = vld [vmem:[%s9951_s28 + $0x80] sm:$0xff]  ;;  %v971_v37 = vld [vmem:[%s9951_s28 + $0x77] sm:$0xff] }
 0x1c7   : >>> { %8158 = vmatpush3.bf16.msra.mxu1 %v9106_v52  ;;  %8127 = vmatprep.subr.bf16.mxu0 %v9107_v53  ;;  %v969_v29 = vld [vmem:[%s9951_s28 + $0x67] sm:$0xff]  ;;  %v970_v31 = vld [vmem:[%s9951_s28 + $0x6f] sm:$0xff]  ;;  %v10022_v33 = vpack.c.bf16 %v1010_v28, %v1009_v25  ;;  %v972_v38 = vld [vmem:[%s9951_s28 + $0x7f] sm:$0xff]  ;;  %v10042_v43 = vpack.c.bf16 %v1012_v36, %v1011_v34 }
 0x1c8   : >>> { %8159 = vmatprep.subr.bf16.mxu1 %v9108_v54  ;;  %v10026_v35 = vpack.c.bf16 %v970_v31, %v969_v29  ;;  %v9123_v39 = vld [vmem:[%s11684_s3 + $0x98] sm:$0xff]   ;;  %v1014_v42 = vld [vmem:[%s9951_s28 + $0xa0] sm:$0xff]  ;;  %v10045_v45 = vpack.c.bf16 %v972_v38, %v971_v37  ;;  %v9125_v47 = vld [vmem:[%s11684_s3 + $0x90] sm:$0xff]  }
 0x1c9   : >>> { %v9124_v40 = vld [vmem:[%s11684_s3 + $0xd8] sm:$0xff]   ;;  %v9126_v48 = vld [vmem:[%s11684_s3 + $0xd0] sm:$0xff]   ;;  %v1015_v50 = vld [vmem:[%s9951_s28 + $0xa8] sm:$0xff] }
 0x1ca   : >>> { %8128 = vmatpush3.bf16.msra.mxu0 %v9107_v53  ;;  %v1013_v41 = vld [vmem:[%s9951_s28 + $0x98] sm:$0xff]  ;;  %v1016_v51 = vld [vmem:[%s9951_s28 + $0xb0] sm:$0xff]  ;;  %v975_v53 = vld [vmem:[%s9951_s28 + $0xa7] sm:$0xff] }
 0x1cb   : >>> { %8160 = vmatpush3.bf16.msra.mxu1 %v9108_v54  ;;  %8129 = vmatprep.subr.bf16.mxu0 %v9109_v55  ;;  %v973_v44 = vld [vmem:[%s9951_s28 + $0x97] sm:$0xff]  ;;  %v974_v46 = vld [vmem:[%s9951_s28 + $0x9f] sm:$0xff]  ;;  %v10054_v49 = vpack.c.bf16 %v1014_v42, %v1013_v41  ;;  %v976_v54 = vld [vmem:[%s9951_s28 + $0xaf] sm:$0xff]  ;;  %v10072_v57 = vpack.c.bf16 %v1016_v51, %v1015_v50 }
 0x1cc   : >>> { %8161 = vmatprep.subr.bf16.mxu1 %v9110_v59  ;;  %v10059_v52 = vpack.c.bf16 %v974_v46, %v973_v44  ;;  %v9128_v56 = vld [vmem:[%s11684_s3 + $0xc8] sm:$0xff]   ;;  %v10076_v60 = vpack.c.bf16 %v976_v54, %v975_v53  ;;  %v9129_v61 = vld [vmem:[%s11684_s3 + $0x80] sm:$0xff]   ;;  %v9132_v3 = vld [vmem:[%s11684_s3 + $0x178] sm:$0xff]  }
 0x1cd   : >>> { %v1332_v58 = vld [vmem:[%s9951_s28 + $0x9] sm:$0xff]  ;;  %v9130_v62 = vld [vmem:[%s11684_s3 + $0xc0] sm:$0xff]   ;;  %v1339_v11 = vld [vmem:[%s9951_s28 + $0x51] sm:$0xff] }
 0x1ce   : >>> { %8130 = vmatpush3.bf16.msra.mxu0 %v9109_v55  ;;  %v9127_v55 = vld [vmem:[%s11684_s3 + $0x88] sm:$0xff]   ;;  %v1336_v4 = vld [vmem:[%s9951_s28 + $0x39] sm:$0xff]  ;;  %v9141_v29 = vld [vmem:[%s11684_s3 + $0x110] sm:$0xff]  }
 0x1cf   : >>> { %8162 = vmatpush3.bf16.msra.mxu1 %v9110_v59  ;;  %8131 = vmatprep.subr.bf16.mxu0 %v9111_v63  ;;  %v1333_v59 = vld [vmem:[%s9951_s28 + $0x11] sm:$0xff]  ;;  %v1337_v6 = vld [vmem:[%s9951_s28 + $0x41] sm:$0xff]  ;;  %v1338_v10 = vld [vmem:[%s9951_s28 + $0x49] sm:$0xff] }
 0x1d0   : >>> { %8163 = vmatprep.subr.bf16.mxu1 %v9112_v0  ;;  %v9136_v13 = vld [vmem:[%s11684_s3 + $0x168] sm:$0xff]   ;;  %v9138_v19 = vld [vmem:[%s11684_s3 + $0x160] sm:$0xff]   ;;  %v1347_v37 = vld [vmem:[%s9951_s28 + $0xb1] sm:$0xff] }
 0x1d1   : >>> { %v1340_v14 = vld [vmem:[%s9951_s28 + $0x69] sm:$0xff]  ;;  %v1342_v21 = vld [vmem:[%s9951_s28 + $0x79] sm:$0xff]  ;;  %v1343_v22 = vld [vmem:[%s9951_s28 + $0x81] sm:$0xff] }
 0x1d2   : >>> { %8132 = vmatpush3.bf16.msra.mxu0 %v9111_v63  ;;  %v1348_v63 = vpack.c.bf16 %v1333_v59, %v1332_v58  ;;  %v10140_v25 = vpack.c.bf16 %v1343_v22, %v1342_v21  ;;  %v1345_v28 = vld [vmem:[%s9951_s28 + $0xa1] sm:$0xff]  ;;  %v6773_v31 = vld [vmem:[%s9951_s28 + $0xcf] sm:$0xff]  ;;  %v9147_v50 = vld [vmem:[%s11684_s3 + $0x1b8] sm:$0xff]  }
 0x1d3   : >>> { %8164 = vmatpush3.bf16.msra.mxu1 %v9112_v0  ;;  %8133 = vmatprep.subr.bf16.mxu0 %v9113_v1  ;;  %v1334_v0 = vld [vmem:[%s9951_s28 + $0x19] sm:$0xff]  ;;  %v1346_v36 = vld [vmem:[%s9951_s28 + $0xa9] sm:$0xff] }
 0x1d4   : >>> { %8165 = vmatprep.subr.bf16.mxu1 %v9114_v2  ;;  %v9143_v41 = vld [vmem:[%s11684_s3 + $0x108] sm:$0xff]   ;;  %v10170_v44 = vpack.c.bf16 %v1347_v37, %v1346_v36  ;;  %v9148_v51 = vld [vmem:[%s11684_s3 + $0x1f8] sm:$0xff]   ;;  %v9149_v53 = vld [vmem:[%s11684_s3 + $0x1b0] sm:$0xff]  }
 0x1d5   : >>> { %v9144_v42 = vld [vmem:[%s11684_s3 + $0x148] sm:$0xff]   ;;  %v9150_v54 = vld [vmem:[%s11684_s3 + $0x1f0] sm:$0xff]   ;;  %v9155_v58 = vld [vmem:[%s11684_s3 + $0x198] sm:$0xff]  }
 0x1d6   : >>> { %8134 = vmatpush3.bf16.msra.mxu0 %v9113_v1  ;;  %v1335_v1 = vld [vmem:[%s9951_s28 + $0x21] sm:$0xff]  ;;  %v9156_v59 = vld [vmem:[%s11684_s3 + $0x1d8] sm:$0xff]   ;;  %v6897_v22 = vld [vmem:[%s9951_s28 + $0x10f] sm:$0xff] }
 0x1d7   : >>> { %8166 = vmatpush3.bf16.msra.mxu1 %v9114_v2  ;;  %8183 = vmatprep.subr.bf16.mxu0 %v9115_v7  ;;  %v9131_v2 = vld [vmem:[%s11684_s3 + $0x138] sm:$0xff]   ;;  %v1349_v5 = vpack.c.bf16 %v1335_v1, %v1334_v0  ;;  %v9157_v1 = vld [vmem:[%s11684_s3 + $0x190] sm:$0xff]   ;;  %v6896_v21 = vld [vmem:[%s9951_s28 + $0x107] sm:$0xff] }
 0x1d8   : >>> { %8215 = vmatprep.subr.bf16.mxu1 %v9116_v8  ;;  %v6853_v0 = vld [vmem:[%s9951_s28 + $0xd1] sm:$0xff]  ;;  %v6976_v37 = vld [vmem:[%s9951_s28 + $0x109] sm:$0xff] }
 0x1d9   : >>> { %8136 = vmatmul.mubr.bf16.vlgmr.msra.gmra.mxu0 %v1018_v9  ;;  %v10103_v9 = vpack.c.bf16 %v1337_v6, %v1336_v4  ;;  %v6815_v6 = vld [vmem:[%s9951_s28 + $0xe0] sm:$0xff] }
 0x1da   : >>> { %8168 = vmatmul.mubr.bf16.vlgmr.msra.gmra.mxu1 %v978_v12  ;;  %8184 = vmatpush3.bf16.msra.mxu0 %v9115_v7  ;;  %v9133_v7 = vld [vmem:[%s11684_s3 + $0x130] sm:$0xff]   ;;  %v9135_v12 = vld [vmem:[%s11684_s3 + $0x128] sm:$0xff]  }
 0x1db   : >>> { %8216 = vmatpush3.bf16.msra.mxu1 %v9116_v8  ;;  %8185 = vmatprep.subr.bf16.mxu0 %v9117_v15  ;;  %v9134_v8 = vld [vmem:[%s11684_s3 + $0x170] sm:$0xff]  }
 0x1dc   : >>> { %8217 = vmatprep.subr.bf16.mxu1 %v9118_v16  ;;  %8139 = vmatprep.mubr.bf16.mxu0 %v9992_v17 }
 0x1dd   : >>> { %8171 = vmatprep.mubr.bf16.mxu1 %v9994_v18 }
 0x1de   : >>> { %8186 = vmatpush3.bf16.msra.mxu0 %v9117_v15  ;;  %v10117_v15 = vpack.c.bf16 %v1339_v11, %v1338_v10  ;;  %v9160_v10 = vld [vmem:[%s11684_s3 + $0x1c8] sm:$0xff]  }
 0x1df   : >>> { %8218 = vmatpush3.bf16.msra.mxu1 %v9118_v16  ;;  %8187 = vmatprep.subr.bf16.mxu0 %v9119_v23  ;;  %v1341_v16 = vld [vmem:[%s9951_s28 + $0x71] sm:$0xff] }
 0x1e0   : >>> { %8219 = vmatprep.subr.bf16.mxu1 %v9120_v24  ;;  %v10126_v20 = vpack.c.bf16 %v1341_v16, %v1340_v14  ;;  %v9162_v14 = vld [vmem:[%s11684_s3 + $0x1c0] sm:$0xff]   ;;  %v9164_v16 = vld [vmem:[%s11684_s3 + $0x230] sm:$0xff]  }
 0x1e1   : >>> { %8140 = vmatmul.mubr.bf16.gmra.mxu0 %v10009_v26 }
 0x1e2   : >>> { %8172 = vmatmul.mubr.bf16.gmra.mxu1 %v10016_v30  ;;  %8188 = vmatpush3.bf16.msra.mxu0 %v9119_v23  ;;  %v9139_v23 = vld [vmem:[%s11684_s3 + $0x118] sm:$0xff]  }
 0x1e3   : >>> { %8220 = vmatpush3.bf16.msra.mxu1 %v9120_v24  ;;  %8189 = vmatprep.subr.bf16.mxu0 %v9121_v27  ;;  %v9140_v24 = vld [vmem:[%s11684_s3 + $0x158] sm:$0xff]  }
 0x1e4   : >>> { %8221 = vmatprep.subr.bf16.mxu1 %v9122_v32  ;;  %8143 = vmatprep.mubr.bf16.mxu0 %v10022_v33 }
 0x1e5   : >>> { %8175 = vmatprep.mubr.bf16.mxu1 %v10026_v35 }
 0x1e6   : >>> { %8190 = vmatpush3.bf16.msra.mxu0 %v9121_v27  ;;  %v1344_v27 = vld [vmem:[%s9951_s28 + $0x99] sm:$0xff] }
 0x1e7   : >>> { %8222 = vmatpush3.bf16.msra.mxu1 %v9122_v32  ;;  %8191 = vmatprep.subr.bf16.mxu0 %v9123_v39  ;;  %v9142_v32 = vld [vmem:[%s11684_s3 + $0x150] sm:$0xff]   ;;  %v10152_v34 = vpack.c.bf16 %v1345_v28, %v1344_v27  ;;  %v9169_v27 = vld [vmem:[%s11684_s3 + $0x208] sm:$0xff]   ;;  %v2169_v28 = vpack.c.bf16 %v6897_v22, %v6896_v21 }
 0x1e8   : >>> { %8223 = vmatprep.subr.bf16.mxu1 %v9124_v40 }
 0x1e9   : >>> { %8144 = vmatmul.mubr.bf16.gmra.mxu0 %v10042_v43 }
 0x1ea   : >>> { %8176 = vmatmul.mubr.bf16.gmra.mxu1 %v10045_v45  ;;  %8192 = vmatpush3.bf16.msra.mxu0 %v9123_v39  ;;  %v6774_v39 = vld [vmem:[%s9951_s28 + $0xd7] sm:$0xff] }
 0x1eb   : >>> { %8224 = vmatpush3.bf16.msra.mxu1 %v9124_v40  ;;  %8193 = vmatprep.subr.bf16.mxu0 %v9125_v47  ;;  %v6775_v40 = vld [vmem:[%s9951_s28 + $0xdf] sm:$0xff] }
 0x1ec   : >>> { %8225 = vmatprep.subr.bf16.mxu1 %v9126_v48  ;;  %8147 = vmatprep.mubr.bf16.mxu0 %v10054_v49  ;;  %v10172_v46 = vpack.c.bf16 %v6775_v40, %v6774_v39 }
 0x1ed   : >>> { %8179 = vmatprep.mubr.bf16.mxu1 %v10059_v52 }
 0x1ee   : >>> { %8194 = vmatpush3.bf16.msra.mxu0 %v9125_v47  ;;  %v9145_v47 = vld [vmem:[%s11684_s3 + $0x100] sm:$0xff]  }
 0x1ef   : >>> { %8226 = vmatpush3.bf16.msra.mxu1 %v9126_v48  ;;  %8195 = vmatprep.subr.bf16.mxu0 %v9127_v55  ;;  %v9146_v48 = vld [vmem:[%s11684_s3 + $0x140] sm:$0xff]  }
 0x1f0   : >>> { %8227 = vmatprep.subr.bf16.mxu1 %v9128_v56 }
 0x1f1   : >>> { %8148 = vmatmul.mubr.bf16.gmra.mxu0 %v10072_v57 }
 0x1f2   : >>> { %8180 = vmatmul.mubr.bf16.gmra.mxu1 %v10076_v60  ;;  %8196 = vmatpush3.bf16.msra.mxu0 %v9127_v55  ;;  %v9152_v55 = vld [vmem:[%s11684_s3 + $0x1e8] sm:$0xff]  }
 0x1f3   : >>> { %8228 = vmatpush3.bf16.msra.mxu1 %v9128_v56  ;;  %8197 = vmatprep.subr.bf16.mxu0 %v9129_v61  ;;  %v9154_v56 = vld [vmem:[%s11684_s3 + $0x1e0] sm:$0xff]  }
 0x1f4   : >>> { %8229 = vmatprep.subr.bf16.mxu1 %v9130_v62  ;;  %8199 = vmatprep.mubr.bf16.mxu0 %v1348_v63  ;;  %v6852_v63 = vld [vmem:[%s9951_s28 + $0xc9] sm:$0xff] }
 0x1f5   : >>> { %8231 = vmatprep.mubr.bf16.mxu1 %v9994_v18  ;;  %v9137_v18 = vld [vmem:[%s11684_s3 + $0x120] sm:$0xff]   ;;  %v10233_v4 = vpack.c.bf16 %v6853_v0, %v6852_v63 }
 0x1f6   : >>> { %8198 = vmatpush3.bf16.msra.mxu0 %v9129_v61  ;;  %v6812_v61 = vld [vmem:[%s9951_s28 + $0xc8] sm:$0xff] }
 0x1f7   : >>> { %8230 = vmatpush3.bf16.msra.mxu1 %v9130_v62  ;;  %8247 = vmatprep.subr.bf16.mxu0 %v9131_v2  ;;  %v6813_v62 = vld [vmem:[%s9951_s28 + $0xd0] sm:$0xff] }
 0x1f8   : >>> { %8279 = vmatprep.subr.bf16.mxu1 %v9132_v3 }
 0x1f9   : >>> { %8200 = vmatmul.mubr.bf16.vlgmr.msra.gmra.mxu0 %v1349_v5  ;;  %v6814_v5 = vld [vmem:[%s9951_s28 + $0xd8] sm:$0xff] }
 0x1fa   : >>> { %8232 = vmatmul.mubr.bf16.vlgmr.msra.gmra.mxu1 %v10016_v30  ;;  %8248 = vmatpush3.bf16.msra.mxu0 %v9131_v2  ;;  %v6772_v30 = vld [vmem:[%s9951_s28 + $0xc7] sm:$0xff]  ;;  %v9158_v2 = vld [vmem:[%s11684_s3 + $0x1d0] sm:$0xff]   ;;  %v1762_v11 = vpack.c.bf16 %v6815_v6, %v6814_v5 }
 0x1fb   : >>> { %8280 = vmatpush3.bf16.msra.mxu1 %v9132_v3  ;;  %8249 = vmatprep.subr.bf16.mxu0 %v9133_v7  ;;  %v10157_v38 = vpack.c.bf16 %v6773_v31, %v6772_v30  ;;  %v1761_v3 = vpack.c.bf16 %v6813_v62, %v6812_v61  ;;  %v9170_v30 = vld [vmem:[%s11684_s3 + $0x200] sm:$0xff]  }
 0x1fc   : >>> { %8281 = vmatprep.subr.bf16.mxu1 %v9134_v8  ;;  %8203 = vmatprep.mubr.bf16.mxu0 %v10103_v9  ;;  %v6974_v31 = vld [vmem:[%s9951_s28 + $0xf9] sm:$0xff] }
 0x1fd   : >>> { %8235 = vmatprep.mubr.bf16.mxu1 %v10026_v35 }
 0x1fe   : >>> { %8250 = vmatpush3.bf16.msra.mxu0 %v9133_v7  ;;  %v6854_v7 = vld [vmem:[%s9951_s28 + $0xd9] sm:$0xff] }
 0x1ff   : >>> { %8282 = vmatpush3.bf16.msra.mxu1 %v9134_v8  ;;  %8251 = vmatprep.subr.bf16.mxu0 %v9135_v12  ;;  %v6855_v8 = vld [vmem:[%s9951_s28 + $0xe1] sm:$0xff] }
 0x200   : >>> { %8283 = vmatprep.subr.bf16.mxu1 %v9136_v13 }
 0x201   : >>> { %8204 = vmatmul.mubr.bf16.gmra.mxu0 %v10117_v15 }
 0x202   : >>> { %8236 = vmatmul.mubr.bf16.gmra.mxu1 %v10045_v45  ;;  %8252 = vmatpush3.bf16.msra.mxu0 %v9135_v12  ;;  %v10247_v12 = vpack.c.bf16 %v6855_v8, %v6854_v7 }
 0x203   : >>> { %8284 = vmatpush3.bf16.msra.mxu1 %v9136_v13  ;;  %8253 = vmatprep.subr.bf16.mxu0 %v9137_v18  ;;  %v9161_v13 = vld [vmem:[%s11684_s3 + $0x180] sm:$0xff]  }
 0x204   : >>> { %8285 = vmatprep.subr.bf16.mxu1 %v9138_v19  ;;  %8207 = vmatprep.mubr.bf16.mxu0 %v10126_v20 }
 0x205   : >>> { %8239 = vmatprep.mubr.bf16.mxu1 %v10059_v52 }
 0x206   : >>> { %8254 = vmatpush3.bf16.msra.mxu0 %v9137_v18 }
 0x207   : >>> { %8286 = vmatpush3.bf16.msra.mxu1 %v9138_v19  ;;  %8255 = vmatprep.subr.bf16.mxu0 %v9139_v23 }
 0x208   : >>> { %8287 = vmatprep.subr.bf16.mxu1 %v9140_v24 }
 0x209   : >>> { %8208 = vmatmul.mubr.bf16.gmra.mxu0 %v10140_v25 }
 0x20a   : >>> { %8240 = vmatmul.mubr.bf16.gmra.mxu1 %v10076_v60  ;;  %8256 = vmatpush3.bf16.msra.mxu0 %v9139_v23  ;;  %v6936_v23 = vld [vmem:[%s9951_s28 + $0x108] sm:$0xff] }
 0x20b   : >>> { %8288 = vmatpush3.bf16.msra.mxu1 %v9140_v24  ;;  %8257 = vmatprep.subr.bf16.mxu0 %v9141_v29  ;;  %v6937_v24 = vld [vmem:[%s9951_s28 + $0x110] sm:$0xff] }
 0x20c   : >>> { %8289 = vmatprep.subr.bf16.mxu1 %v9142_v32  ;;  %8211 = vmatprep.mubr.bf16.mxu0 %v10152_v34 }
 0x20d   : >>> { %8243 = vmatprep.mubr.bf16.mxu1 %v10157_v38 }
 0x20e   : >>> { %8258 = vmatpush3.bf16.msra.mxu0 %v9141_v29  ;;  %v2371_v29 = vpack.c.bf16 %v6937_v24, %v6936_v23 }
 0x20f   : >>> { %8290 = vmatpush3.bf16.msra.mxu1 %v9142_v32  ;;  %8259 = vmatprep.subr.bf16.mxu0 %v9143_v41  ;;  %v6975_v32 = vld [vmem:[%s9951_s28 + $0x101] sm:$0xff] }
 0x210   : >>> { %8291 = vmatprep.subr.bf16.mxu1 %v9144_v42  ;;  %v2572_v36 = vpack.c.bf16 %v6975_v32, %v6974_v31 }
 0x211   : >>> { %8212 = vmatmul.mubr.bf16.gmra.mxu0 %v10170_v44 }
 0x212   : >>> { %8244 = vmatmul.mubr.bf16.gmra.mxu1 %v10172_v46  ;;  %8260 = vmatpush3.bf16.msra.mxu0 %v9143_v41 }
 0x213   : >>> { %8292 = vmatpush3.bf16.msra.mxu1 %v9144_v42  ;;  %8261 = vmatprep.subr.bf16.mxu0 %v9145_v47 }
 0x214   : >>> { %8293 = vmatprep.subr.bf16.mxu1 %v9146_v48  ;;  %8263 = vmatprep.mubr.bf16.mxu0 %v9992_v17  ;;  %v9151_v17 = vld [vmem:[%s11684_s3 + $0x1a8] sm:$0xff]  }
 0x215   : >>> { %8295 = vmatprep.mubr.bf16.mxu1 %v10103_v9  ;;  %v9159_v9 = vld [vmem:[%s11684_s3 + $0x188] sm:$0xff]  }
 0x216   : >>> { %8262 = vmatpush3.bf16.msra.mxu0 %v9145_v47 }
 0x217   : >>> { %8294 = vmatpush3.bf16.msra.mxu1 %v9146_v48  ;;  %8311 = vmatprep.subr.bf16.mxu0 %v9147_v50 }
 0x218   : >>> { %8343 = vmatprep.subr.bf16.mxu1 %v9148_v51 }
 0x219   : >>> { %8264 = vmatmul.mubr.bf16.vlgmr.msra.gmra.mxu0 %v10009_v26  ;;  %v9153_v26 = vld [vmem:[%s11684_s3 + $0x1a0] sm:$0xff]  }
 0x21a   : >>> { %8296 = vmatmul.mubr.bf16.vlgmr.msra.gmra.mxu1 %v10117_v15  ;;  %8312 = vmatpush3.bf16.msra.mxu0 %v9147_v50  ;;  %v9163_v15 = vld [vmem:[%s11684_s3 + $0x238] sm:$0xff]  }
 0x21b   : >>> { %8344 = vmatpush3.bf16.msra.mxu1 %v9148_v51  ;;  %8313 = vmatprep.subr.bf16.mxu0 %v9149_v53 }
 0x21c   : >>> { %8345 = vmatprep.subr.bf16.mxu1 %v9150_v54  ;;  %8267 = vmatprep.mubr.bf16.mxu0 %v10022_v33 }
 0x21d   : >>> { %8299 = vmatprep.mubr.bf16.mxu1 %v10126_v20 }
 0x21e   : >>> { %8314 = vmatpush3.bf16.msra.mxu0 %v9149_v53 }
 0x21f   : >>> { %8346 = vmatpush3.bf16.msra.mxu1 %v9150_v54  ;;  %8315 = vmatprep.subr.bf16.mxu0 %v9151_v17 }
 0x220   : >>> { %8347 = vmatprep.subr.bf16.mxu1 %v9152_v55 }
 0x221   : >>> { %8268 = vmatmul.mubr.bf16.gmra.mxu0 %v10042_v43 }
 0x222   : >>> { %8300 = vmatmul.mubr.bf16.gmra.mxu1 %v10140_v25  ;;  %8316 = vmatpush3.bf16.msra.mxu0 %v9151_v17 }
 0x223   : >>> { %8348 = vmatpush3.bf16.msra.mxu1 %v9152_v55  ;;  %8317 = vmatprep.subr.bf16.mxu0 %v9153_v26 }
 0x224   : >>> { %8349 = vmatprep.subr.bf16.mxu1 %v9154_v56  ;;  %8271 = vmatprep.mubr.bf16.mxu0 %v10054_v49 }
 0x225   : >>> { %8303 = vmatprep.mubr.bf16.mxu1 %v10152_v34 }
 0x226   : >>> { %8318 = vmatpush3.bf16.msra.mxu0 %v9153_v26 }
 0x227   : >>> { %8350 = vmatpush3.bf16.msra.mxu1 %v9154_v56  ;;  %8319 = vmatprep.subr.bf16.mxu0 %v9155_v58 }
 0x228   : >>> { %8351 = vmatprep.subr.bf16.mxu1 %v9156_v59 }
 0x229   : >>> { %8272 = vmatmul.mubr.bf16.gmra.mxu0 %v10072_v57 }
 0x22a   : >>> { %8304 = vmatmul.mubr.bf16.gmra.mxu1 %v10170_v44  ;;  %8320 = vmatpush3.bf16.msra.mxu0 %v9155_v58 }
 0x22b   : >>> { %8352 = vmatpush3.bf16.msra.mxu1 %v9156_v59  ;;  %8321 = vmatprep.subr.bf16.mxu0 %v9157_v1 }
 0x22c   : >>> { %8353 = vmatprep.subr.bf16.mxu1 %v9158_v2  ;;  %8275 = vmatprep.mubr.bf16.mxu0 %v1761_v3 }
 0x22d   : >>> { %8307 = vmatprep.mubr.bf16.mxu1 %v10233_v4 }
 0x22e   : >>> { %8322 = vmatpush3.bf16.msra.mxu0 %v9157_v1 }
 0x22f   : >>> { %8354 = vmatpush3.bf16.msra.mxu1 %v9158_v2  ;;  %8323 = vmatprep.subr.bf16.mxu0 %v9159_v9 }
 0x230   : >>> { %8355 = vmatprep.subr.bf16.mxu1 %v9160_v10 }
 0x231   : >>> { %8276 = vmatmul.mubr.bf16.gmra.mxu0 %v1762_v11 }
 0x232   : >>> { %8308 = vmatmul.mubr.bf16.gmra.mxu1 %v10247_v12  ;;  %8324 = vmatpush3.bf16.msra.mxu0 %v9159_v9 }
 0x233   : >>> { %8356 = vmatpush3.bf16.msra.mxu1 %v9160_v10  ;;  %8325 = vmatprep.subr.bf16.mxu0 %v9161_v13 }
 0x234   : >>> { %8357 = vmatprep.subr.bf16.mxu1 %v9162_v14  ;;  %8327 = vmatprep.mubr.bf16.mxu0 %v10026_v35  ;;  %v9165_v35 = vld [vmem:[%s11684_s3 + $0x228] sm:$0xff]  }
 0x235   : >>> { %8359 = vmatprep.mubr.bf16.mxu1 %v10022_v33  ;;  %v9166_v33 = vld [vmem:[%s11684_s3 + $0x220] sm:$0xff]  }
 0x236   : >>> { %8326 = vmatpush3.bf16.msra.mxu0 %v9161_v13 }
 0x237   : >>> { %8358 = vmatpush3.bf16.msra.mxu1 %v9162_v14  ;;  %8375 = vmatprep.subr.bf16.mxu0 %v9163_v15 }
 0x238   : >>> { %8989 = vmatprep.subr.bf16.mxu1 %v9163_v15 }
 0x239   : >>> { %8328 = vmatmul.mubr.bf16.vlgmr.msra.gmra.mxu0 %v10045_v45  ;;  %v6894_v45 = vld [vmem:[%s9951_s28 + $0xf7] sm:$0xff] }
 0x23a   : >>> { %8360 = vmatmul.mubr.bf16.vlgmr.msra.gmra.mxu1 %v10042_v43  ;;  %8376 = vmatpush3.bf16.msra.mxu0 %v9163_v15  ;;  %v9167_v43 = vld [vmem:[%s11684_s3 + $0x218] sm:$0xff]  }
 0x23b   : >>> { %8997 = vmatpush3.bf16.msra.mxu1 %v9163_v15  ;;  %8377 = vmatprep.subr.bf16.mxu0 %v9164_v16 }
 0x23c   : >>> { %8990 = vmatprep.subr.bf16.mxu1 %v9164_v16  ;;  %8331 = vmatprep.mubr.bf16.mxu0 %v10059_v52  ;;  %v6934_v52 = vld [vmem:[%s9951_s28 + $0xf8] sm:$0xff] }
 0x23d   : >>> { %8363 = vmatprep.mubr.bf16.mxu1 %v10054_v49  ;;  %v6895_v49 = vld [vmem:[%s9951_s28 + $0xff] sm:$0xff] }
 0x23e   : >>> { %8378 = vmatpush3.bf16.msra.mxu0 %v9164_v16  ;;  %v2168_v18 = vpack.c.bf16 %v6895_v49, %v6894_v45 }
 0x23f   : >>> { %8998 = vmatpush3.bf16.msra.mxu1 %v9164_v16  ;;  %8379 = vmatprep.subr.bf16.mxu0 %v9165_v35 }
 0x240   : >>> { %8991 = vmatprep.subr.bf16.mxu1 %v9165_v35 }
 0x241   : >>> { %8332 = vmatmul.mubr.bf16.gmra.mxu0 %v10076_v60  ;;  %v9168_v60 = vld [vmem:[%s11684_s3 + $0x210] sm:$0xff]  }
 0x242   : >>> { %8364 = vmatmul.mubr.bf16.gmra.mxu1 %v10072_v57  ;;  %8380 = vmatpush3.bf16.msra.mxu0 %v9165_v35  ;;  %v6935_v57 = vld [vmem:[%s9951_s28 + $0x100] sm:$0xff] }
 0x243   : >>> { %8999 = vmatpush3.bf16.msra.mxu1 %v9165_v35  ;;  %8381 = vmatprep.subr.bf16.mxu0 %v9166_v33  ;;  %v2370_v19 = vpack.c.bf16 %v6935_v57, %v6934_v52 }
 0x244   : >>> { %8992 = vmatprep.subr.bf16.mxu1 %v9166_v33  ;;  %8335 = vmatprep.mubr.bf16.mxu0 %v10157_v38  ;;  %v6977_v38 = vld [vmem:[%s9951_s28 + $0x111] sm:$0xff]  ;;  %s10439_s28 = scalar_lea.vmem [#allocation3], %s6701_s22  ;;  %s10472_s22 = smov (%p954_p5), 0  }
 0x245   : >>> { %8367 = vmatprep.mubr.bf16.mxu1 %v1761_v3  ;;  %v2573_v39 = vpack.c.bf16 %v6977_v38, %v6976_v37 }
 0x246   : >>> { %8382 = vmatpush3.bf16.msra.mxu0 %v9166_v33 }
 0x247   : >>> { %9000 = vmatpush3.bf16.msra.mxu1 %v9166_v33  ;;  %8383 = vmatprep.subr.bf16.mxu0 %v9167_v43 }
 0x248   : >>> { %8993 = vmatprep.subr.bf16.mxu1 %v9167_v43 }
 0x249   : >>> { %8336 = vmatmul.mubr.bf16.gmra.mxu0 %v10172_v46 }
 0x24a   : >>> { %8368 = vmatmul.mubr.bf16.gmra.mxu1 %v1762_v11  ;;  %8384 = vmatpush3.bf16.msra.mxu0 %v9167_v43 }
 0x24b   : >>> { %9001 = vmatpush3.bf16.msra.mxu1 %v9167_v43  ;;  %8385 = vmatprep.subr.bf16.mxu0 %v9168_v60 }
 0x24c   : >>> { %8994 = vmatprep.subr.bf16.mxu1 %v9168_v60  ;;  %8339 = vmatprep.mubr.bf16.mxu0 %v2168_v18 }
 0x24d   : >>> { %8371 = vmatprep.mubr.bf16.mxu1 %v2370_v19 }
 0x24e   : >>> { %8386 = vmatpush3.bf16.msra.mxu0 %v9168_v60 }
 0x24f   : >>> { %9002 = vmatpush3.bf16.msra.mxu1 %v9168_v60  ;;  %8387 = vmatprep.subr.bf16.mxu0 %v9169_v27 }
 0x250   : >>> { %8995 = vmatprep.subr.bf16.mxu1 %v9169_v27 }
 0x251   : >>> { %8340 = vmatmul.mubr.bf16.gmra.mxu0 %v2169_v28 }
 0x252   : >>> { %8372 = vmatmul.mubr.bf16.gmra.mxu1 %v2371_v29  ;;  %8388 = vmatpush3.bf16.msra.mxu0 %v9169_v27 }
 0x253   : >>> { %9003 = vmatpush3.bf16.msra.mxu1 %v9169_v27  ;;  %8389 = vmatprep.subr.bf16.mxu0 %v9170_v30 }
 0x254   : >>> { %8996 = vmatprep.subr.bf16.mxu1 %v9170_v30  ;;  %8391 = vmatprep.mubr.bf16.mxu0 %v10126_v20 }
 0x255   : >>> { %8399 = vmatprep.mubr.bf16.mxu1 %v10233_v4 }
 0x256   : >>> { %8390 = vmatpush3.bf16.msra.mxu0 %v9170_v30 }
 0x257   : >>> { %9004 = vmatpush3.bf16.msra.mxu1 %v9170_v30 }
 0x259   : >>> { %8392 = vmatmul.mubr.bf16.vlgmr.msra.gmra.mxu0 %v10140_v25 }
 0x25a   : >>> { %8400 = vmatmul.mubr.bf16.vlgmr.msra.gmra.mxu1 %v10247_v12  ;;  %8395 = vmatprep.mubr.bf16.mxu0 %v10152_v34 }
 0x25b   : >>> { %8403 = vmatprep.mubr.bf16.mxu1 %v2572_v36 }
 0x261   : >>> { %8396 = vmatmul.mubr.bf16.gmra.mxu0 %v10170_v44 }
 0x262   : >>> { %8404 = vmatmul.mubr.bf16.gmra.mxu1 %v2573_v39 }
 0x299   : >>> { %v8137_v20 = vpop.f32.mrf.mxu0 }
 0x29a   : >>> { %v8169_v40 = vpop.f32.mrf.mxu1 }
 0x29b   : >>> { %v1278_v41 = vadd.f32 %v8169_v40, %v8137_v20  ;;  %v1124_v42 = vpop.f32.mrf.mxu0 }
 0x29c   : >>> { %v1269_v46 = vpop.f32.mrf.mxu1 }
 0x29d   : >>> { %v1270_v47 = vadd.f32 %v1269_v46, %v1124_v42  ;;  %v8138_v48 = vpop.f32.mrf.mxu0 }
 0x29e   : >>> { %v8170_v50 = vpop.f32.mrf.mxu1 }
 0x29f   : >>> { %v1281_v25 = vadd.f32 %v8170_v50, %v8138_v48  ;;  %v1127_v51 = vpop.f32.mrf.mxu0 }
 0x2a0   : >>> { %v1272_v53 = vpop.f32.mrf.mxu1 }
 0x2a1   : >>> { %v1273_v54 = vadd.f32 %v1272_v53, %v1127_v51  ;;  %v8141_v34 = vpop.f32.mrf.mxu0 }
 0x2a2   : >>> { %v8173_v17 = vpop.f32.mrf.mxu1 }
 0x2a3   : >>> { %v1294_v55 = vadd.f32 %v8173_v17, %v8141_v34  ;;  %v1140_v26 = vpop.f32.mrf.mxu0 }
 0x2a4   : >>> { %v1285_v56 = vpop.f32.mrf.mxu1 }
 0x2a5   : >>> { %v1286_v58 = vadd.f32 %v1285_v56, %v1140_v26  ;;  %v8142_v44 = vpop.f32.mrf.mxu0 }
 0x2a6   : >>> { %v8174_v59 = vpop.f32.mrf.mxu1 }
 0x2a7   : >>> { %v1297_v61 = vadd.f32 %v8174_v59, %v8142_v44  ;;  %v1143_v62 = vpop.f32.mrf.mxu0 }
 0x2a8   : >>> { %v1288_v63 = vpop.f32.mrf.mxu1 }
 0x2a9   : >>> { %v1289_v0 = vadd.f32 %v1288_v63, %v1143_v62  ;;  %v8145_v1 = vpop.f32.mrf.mxu0 }
 0x2aa   : >>> { %v8177_v2 = vpop.f32.mrf.mxu1 }
 0x2ab   : >>> { %v1310_v3 = vadd.f32 %v8177_v2, %v8145_v1  ;;  %v1156_v4 = vpop.f32.mrf.mxu0 }
 0x2ac   : >>> { %v1301_v5 = vpop.f32.mrf.mxu1 }
 0x2ad   : >>> { %v1302_v6 = vadd.f32 %v1301_v5, %v1156_v4  ;;  %v8146_v7 = vpop.f32.mrf.mxu0 }
 0x2ae   : >>> { %v8178_v8 = vpop.f32.mrf.mxu1 }
 0x2af   : >>> { %v1313_v9 = vadd.f32 %v8178_v8, %v8146_v7  ;;  %v1159_v10 = vpop.f32.mrf.mxu0 }
 0x2b0   : >>> { %v1304_v11 = vpop.f32.mrf.mxu1 }
 0x2b1   : >>> { %v1305_v12 = vadd.f32 %v1304_v11, %v1159_v10  ;;  %v8149_v13 = vpop.f32.mrf.mxu0 }
 0x2b2   : >>> { %v8181_v14 = vpop.f32.mrf.mxu1 }
 0x2b3   : >>> { %v1326_v15 = vadd.f32 %v8181_v14, %v8149_v13  ;;  %v1172_v16 = vpop.f32.mrf.mxu0 }
 0x2b4   : >>> { %v1317_v35 = vpop.f32.mrf.mxu1 }
 0x2b5   : >>> { %v1318_v33 = vadd.f32 %v1317_v35, %v1172_v16  ;;  %v8150_v43 = vpop.f32.mrf.mxu0 }
 0x2b6   : >>> { %v8182_v45 = vpop.f32.mrf.mxu1 }
 0x2b7   : >>> { %v1329_v49 = vadd.f32 %v8182_v45, %v8150_v43  ;;  %v1175_v52 = vpop.f32.mrf.mxu0 }
 0x2b8   : >>> { %v1320_v57 = vpop.f32.mrf.mxu1 }
 0x2b9   : >>> { %v1321_v60 = vadd.f32 %v1320_v57, %v1175_v52  ;;  %v8201_v18 = vpop.f32.mrf.mxu0 }
 0x2ba   : >>> { %v1520_v19 = vadd.f32 %v8201_v18, %v1278_v41  ;;  %v8233_v21 = vpop.f32.mrf.mxu1 }
 0x2bb   : >>> { %v1455_v22 = vpop.f32.mrf.mxu0 }
 0x2bc   : >>> { %v10308_v23 = vadd.f32 %v8233_v21, %v1520_v19  ;;  %v1518_v24 = vadd.f32 %v1455_v22, %v1270_v47  ;;  %v1660_v27 = vpop.f32.mrf.mxu1 }
 0x2bd   : >>> { %v8202_v28 = vpop.f32.mrf.mxu0 }
 0x2be   : >>> { %v10310_v29 = vadd.f32 %v1660_v27, %v1518_v24  ;;  %v1521_v30 = vadd.f32 %v8202_v28, %v1281_v25  ;;  %v8234_v31 = vpop.f32.mrf.mxu1 }
 0x2bf   : >>> { %v1458_v32 = vpop.f32.mrf.mxu0 }
 0x2c0   : >>> { %v10312_v36 = vadd.f32 %v8234_v31, %v1521_v30  ;;  %v1519_v37 = vadd.f32 %v1458_v32, %v1273_v54  ;;  %v1663_v38 = vpop.f32.mrf.mxu1 }
 0x2c1   : >>> { %v8205_v39 = vpop.f32.mrf.mxu0 }
 0x2c2   : >>> { %v10314_v20 = vadd.f32 %v1663_v38, %v1519_v37  ;;  %v1524_v40 = vadd.f32 %v8205_v39, %v1294_v55  ;;  %v8237_v41 = vpop.f32.mrf.mxu1 }
 0x2c3   : >>> { %v1471_v42 = vpop.f32.mrf.mxu0 }
 0x2c4   : >>> { %v10316_v46 = vadd.f32 %v8237_v41, %v1524_v40  ;;  %v1522_v47 = vadd.f32 %v1471_v42, %v1286_v58  ;;  %v1676_v48 = vpop.f32.mrf.mxu1 }
 0x2c5   : >>> { %v8206_v50 = vpop.f32.mrf.mxu0 }
 0x2c6   : >>> { %v10318_v51 = vadd.f32 %v1676_v48, %v1522_v47  ;;  %v1525_v25 = vadd.f32 %v8206_v50, %v1297_v61  ;;  %v8238_v53 = vpop.f32.mrf.mxu1 }
 0x2c7   : >>> { %v1474_v34 = vpop.f32.mrf.mxu0 }
 0x2c8   : >>> { %v10320_v17 = vadd.f32 %v8238_v53, %v1525_v25  ;;  %v1523_v54 = vadd.f32 %v1474_v34, %v1289_v0  ;;  %v1679_v26 = vpop.f32.mrf.mxu1 }
 0x2c9   : >>> { %v8209_v56 = vpop.f32.mrf.mxu0 }
 0x2ca   : >>> { %v10322_v44 = vadd.f32 %v1679_v26, %v1523_v54  ;;  %v1528_v55 = vadd.f32 %v8209_v56, %v1310_v3  ;;  %v8241_v59 = vpop.f32.mrf.mxu1 }
 0x2cb   : >>> { %v1487_v62 = vpop.f32.mrf.mxu0 }
 0x2cc   : >>> { %v10324_v63 = vadd.f32 %v8241_v59, %v1528_v55  ;;  %v1526_v58 = vadd.f32 %v1487_v62, %v1302_v6  ;;  %v1692_v1 = vpop.f32.mrf.mxu1 }
 0x2cd   : >>> { %v8210_v2 = vpop.f32.mrf.mxu0 }
 0x2ce   : >>> { %v10326_v4 = vadd.f32 %v1692_v1, %v1526_v58  ;;  %v1529_v61 = vadd.f32 %v8210_v2, %v1313_v9  ;;  %v8242_v5 = vpop.f32.mrf.mxu1 }
 0x2cf   : >>> { %v1490_v7 = vpop.f32.mrf.mxu0 }
 0x2d0   : >>> { %v10328_v8 = vadd.f32 %v8242_v5, %v1529_v61  ;;  %v1527_v0 = vadd.f32 %v1490_v7, %v1305_v12  ;;  %v1695_v10 = vpop.f32.mrf.mxu1 }
 0x2d1   : >>> { %v8213_v11 = vpop.f32.mrf.mxu0 }
 0x2d2   : >>> { %v10330_v13 = vadd.f32 %v1695_v10, %v1527_v0  ;;  %v1532_v3 = vadd.f32 %v8213_v11, %v1326_v15  ;;  %v8245_v14 = vpop.f32.mrf.mxu1 }
 0x2d3   : >>> { %v1503_v16 = vpop.f32.mrf.mxu0 }
 0x2d4   : >>> { %v10332_v35 = vadd.f32 %v8245_v14, %v1532_v3  ;;  %v1530_v6 = vadd.f32 %v1503_v16, %v1318_v33  ;;  %v1708_v43 = vpop.f32.mrf.mxu1 }
 0x2d5   : >>> { %v8214_v45 = vpop.f32.mrf.mxu0 }
 0x2d6   : >>> { %v10334_v52 = vadd.f32 %v1708_v43, %v1530_v6  ;;  %v1533_v9 = vadd.f32 %v8214_v45, %v1329_v49  ;;  %v8246_v57 = vpop.f32.mrf.mxu1 }
 0x2d7   : >>> { %v1506_v18 = vpop.f32.mrf.mxu0 }
 0x2d8   : >>> { %v10336_v19 = vadd.f32 %v8246_v57, %v1533_v9  ;;  %v1531_v12 = vadd.f32 %v1506_v18, %v1321_v60  ;;  %v1711_v21 = vpop.f32.mrf.mxu1 }
 0x2d9   : >>> { %v8265_v22 = vpop.f32.mrf.mxu0 }
 0x2da   : >>> { %v10338_v24 = vadd.f32 %v1711_v21, %v1531_v12  ;;  %v8297_v15 = vpop.f32.mrf.mxu1 }
 0x2db   : >>> { %v1862_v27 = vpop.f32.mrf.mxu0 }
 0x2dc   : >>> { %v2064_v28 = vpop.f32.mrf.mxu1 }
 0x2dd   : >>> { %v8266_v30 = vpop.f32.mrf.mxu0 }
 0x2de   : >>> { %v10340_v31 = vpop.f32.mrf.mxu1 }
 0x2df   : >>> { %v1865_v33 = vpop.f32.mrf.mxu0 }
 0x2e0   : >>> { %v10342_v32 = vpop.f32.mrf.mxu1 }
 0x2e1   : >>> { %v8269_v37 = vpop.f32.mrf.mxu0 }
 0x2e2   : >>> { %v10344_v49 = vpop.f32.mrf.mxu1 }
 0x2e3   : >>> { %v1878_v38 = vpop.f32.mrf.mxu0 }
 0x2e4   : >>> { %v10346_v39 = vpop.f32.mrf.mxu1 }
 0x2e5   : >>> { %v8270_v60 = vpop.f32.mrf.mxu0 }
 0x2e6   : >>> { %v10348_v40 = vpop.f32.mrf.mxu1 }
 0x2e7   : >>> { %v1881_v41 = vpop.f32.mrf.mxu0 }
 0x2e8   : >>> { %v10350_v42 = vpop.f32.mrf.mxu1 }
 0x2e9   : >>> { %v8273_v47 = vpop.f32.mrf.mxu0 }
 0x2ea   : >>> { %v8305_v48 = vpop.f32.mrf.mxu1 }
 0x2eb   : >>> { %v1894_v50 = vpop.f32.mrf.mxu0 }
 0x2ec   : >>> { %v2096_v25 = vpop.f32.mrf.mxu1 }
 0x2ed   : >>> { %v8274_v53 = vpop.f32.mrf.mxu0 }
 0x2ee   : >>> { %v10352_v34 = vpop.f32.mrf.mxu1 }
 0x2ef   : >>> { %v1897_v54 = vpop.f32.mrf.mxu0 }
 0x2f0   : >>> { %v10354_v26 = vpop.f32.mrf.mxu1 }
 0x2f1   : >>> { %11689 = vst [vmem:[#allocation5_spill] sm:$0xff] %v10354_v26  ;;  %v8277_v56 = vpop.f32.mrf.mxu0 }
 0x2f2   : >>> { %v10356_v55 = vpop.f32.mrf.mxu1 }
 0x2f3   : >>> { %11690 = vst [vmem:[#allocation6_spill] sm:$0xff] %v10356_v55  ;;  %v1910_v59 = vpop.f32.mrf.mxu0 }
 0x2f4   : >>> { %v10358_v62 = vpop.f32.mrf.mxu1 }
 0x2f5   : >>> { %11691 = vst [vmem:[#allocation7_spill] sm:$0xff] %v10358_v62  ;;  %v8278_v58 = vpop.f32.mrf.mxu0 }
 0x2f6   : >>> { %v10360_v1 = vpop.f32.mrf.mxu1 }
 0x2f7   : >>> { %11692 = vst [vmem:[#allocation8_spill] sm:$0xff] %v10360_v1  ;;  %v1913_v2 = vpop.f32.mrf.mxu0 }
 0x2f8   : >>> { %v10362_v61 = vpop.f32.mrf.mxu1 }
 0x2f9   : >>> { %11693 = vst [vmem:[#allocation9_spill] sm:$0xff] %v10362_v61  ;;  %v8329_v5 = vpop.f32.mrf.mxu0 }
 0x2fa   : >>> { %v8361_v7 = vpop.f32.mrf.mxu1 }
 0x2fb   : >>> { %v2269_v0 = vpop.f32.mrf.mxu0 }
 0x2fc   : >>> { %v10364_v10 = vpop.f32.mrf.mxu1 }
 0x2fd   : >>> { %11694 = vst [vmem:[#allocation10_spill] sm:$0xff] %v10364_v10  ;;  %v8330_v11 = vpop.f32.mrf.mxu0 }
 0x2fe   : >>> { %v10366_v3 = vpop.f32.mrf.mxu1 }
 0x2ff   : >>> { %11695 = vst [vmem:[#allocation11_spill] sm:$0xff] %v10366_v3  ;;  %v10368_v14 = vpop.f32.mrf.mxu0 }
 0x300   : >>> { %11696 = vst [vmem:[#allocation12_spill] sm:$0xff] %v10368_v14  ;;  %v10370_v16 = vpop.f32.mrf.mxu1 }
 0x301   : >>> { %11697 = vst [vmem:[#allocation13_spill] sm:$0xff] %v10370_v16  ;;  %v10372_v6 = vpop.f32.mrf.mxu0 }
 0x302   : >>> { %11698 = vst [vmem:[#allocation14_spill] sm:$0xff] %v10372_v6  ;;  %v10374_v43 = vpop.f32.mrf.mxu1  ;;  %v1927_v6 = vadd.f32 %v8265_v22, %v10308_v23  ;;  %v1931_v23 = vadd.f32 %v8269_v37, %v10316_v46  ;;  %v1939_v37 = vadd.f32 %v8277_v56, %v10332_v35  ;;  %v11708_v56 = vld [vmem:[#allocation7_spill] sm:$0xff] }
 0x303   : >>> { %11699 = vst [vmem:[#allocation15_spill] sm:$0xff] %v10374_v43  ;;  %v10376_v45 = vpop.f32.mrf.mxu0  ;;  %v1925_v43 = vadd.f32 %v1862_v27, %v10310_v29  ;;  %v1929_v29 = vadd.f32 %v1878_v38, %v10318_v51 }
 0x304   : >>> { %11700 = vst [vmem:[#allocation16_spill] sm:$0xff] %v10376_v45  ;;  %v10378_v9 = vpop.f32.mrf.mxu1  ;;  %v2129_v55 = vadd.f32 %v8297_v15, %v1927_v6  ;;  %v1934_v15 = vadd.f32 %v1897_v54, %v10330_v13  ;;  %v11712_v6 = vld [vmem:[#allocation9_spill] sm:$0xff] }
 0x305   : >>> { %11701 = vst [vmem:[#allocation17_spill] sm:$0xff] %v10378_v9  ;;  %v10380_v57 = vpop.f32.mrf.mxu0  ;;  %v1928_v9 = vadd.f32 %v8266_v30, %v10312_v36  ;;  %v2127_v26 = vadd.f32 %v2064_v28, %v1925_v43 }
 0x306   : >>> { %11702 = vst [vmem:[#allocation18_spill] sm:$0xff] %v10380_v57  ;;  %v10382_v18 = vpop.f32.mrf.mxu1  ;;  %v1935_v57 = vadd.f32 %v8273_v47, %v10324_v63  ;;  %v1932_v63 = vadd.f32 %v8270_v60, %v10320_v17  ;;  %v2334_v28 = vadd.f32 %v8329_v5, %v2129_v55  ;;  %v2133_v60 = vadd.f32 %v10344_v49, %v1931_v23 }
 0x307   : >>> { %11703 = vst [vmem:[#allocation19_spill] sm:$0xff] %v10382_v18  ;;  %v10384_v12 = vpop.f32.mrf.mxu0  ;;  %v2130_v36 = vadd.f32 %v10340_v31, %v1928_v9  ;;  %v1937_v31 = vadd.f32 %v1910_v59, %v10334_v52  ;;  %v2332_v47 = vadd.f32 %v2269_v0, %v2127_v26  ;;  %v11711_v0 = vld [vmem:[#allocation12_spill] sm:$0xff] }
 0x308   : >>> { %11704 = vst [vmem:[#allocation20_spill] sm:$0xff] %v10384_v12  ;;  %v10386_v21 = vpop.f32.mrf.mxu1  ;;  %v1926_v12 = vadd.f32 %v1865_v33, %v10314_v20  ;;  %v2137_v27 = vadd.f32 %v8305_v48, %v1935_v57  ;;  %v1936_v20 = vadd.f32 %v8274_v53, %v10328_v8  ;;  %v2131_v8 = vadd.f32 %v10346_v39, %v1929_v29 }
 0x309   : >>> { %11705 = vst [vmem:[#allocation21_spill] sm:$0xff] %v10386_v21  ;;  %v8337_v3 = vpop.f32.mrf.mxu0  ;;  %v1933_v21 = vadd.f32 %v1894_v50, %v10326_v4  ;;  %v1930_v4 = vadd.f32 %v1881_v41, %v10322_v44  ;;  %v2134_v13 = vadd.f32 %v10348_v40, %v1932_v63  ;;  %v1938_v48 = vadd.f32 %v1913_v2, %v10338_v24  ;;  %v11710_v2 = vld [vmem:[#allocation10_spill] sm:$0xff] }
 0x30a   : >>> { %v8369_v61 = vpop.f32.mrf.mxu1  ;;  %v2128_v33 = vadd.f32 %v10342_v32, %v1926_v12  ;;  %v2342_v38 = vadd.f32 %v8337_v3, %v2137_v27  ;;  %v1940_v32 = vadd.f32 %v8278_v58, %v10336_v19  ;;  %v2138_v41 = vadd.f32 %v10352_v34, %v1936_v20  ;;  %v11707_v19 = vld [vmem:[#allocation6_spill] sm:$0xff]  ;;  %v11709_v58 = vld [vmem:[#allocation8_spill] sm:$0xff]  ;;  %v11713_v12 = vld [vmem:[#allocation11_spill] sm:$0xff] }
 0x30b   : >>> { %v2301_v14 = vpop.f32.mrf.mxu0  ;;  %v2135_v51 = vadd.f32 %v2096_v25, %v1933_v21  ;;  %v2132_v52 = vadd.f32 %v10350_v42, %v1930_v4  ;;  %v11706_v25 = vld [vmem:[#allocation5_spill] sm:$0xff]  ;;  %v2536_v53 = vadd.f32 %v8361_v7, %v2334_v28  ;;  %v2335_v39 = vadd.f32 %v8330_v11, %v2130_v36 }
 0x30c   : >>> { %v2503_v16 = vpop.f32.mrf.mxu1  ;;  %v2136_v49 = vadd.f32 %v11706_v25, %v1934_v15  ;;  %v2141_v26 = vadd.f32 %v11707_v19, %v1939_v37  ;;  %v2139_v55 = vadd.f32 %v11708_v56, %v1937_v31  ;;  %v2544_v40 = vadd.f32 %v8369_v61, %v2342_v38  ;;  %v11714_v61 = vld [vmem:[#allocation14_spill] sm:$0xff]  ;;  %v11715_v15 = vld [vmem:[#allocation13_spill] sm:$0xff] }
 0x30d   : >>> { %v8338_v10 = vpop.f32.mrf.mxu0  ;;  %v2340_v35 = vadd.f32 %v2301_v14, %v2135_v51  ;;  %v2142_v24 = vadd.f32 %v11709_v58, %v1940_v32  ;;  %v2534_v5 = vadd.f32 %v11710_v2, %v2332_v47  ;;  %v2333_v3 = vadd.f32 %v11711_v0, %v2128_v33 }
 0x30e   : >>> { %v10390_v45 = vpop.f32.mrf.mxu1  ;;  %v2343_v59 = vadd.f32 %v8338_v10, %v2138_v41  ;;  %v2140_v7 = vadd.f32 %v11712_v6, %v1938_v48  ;;  %v2537_v21 = vadd.f32 %v11713_v12, %v2335_v39  ;;  %v2338_v10 = vadd.f32 %v11714_v61, %v2133_v60  ;;  %v11718_v41 = vld [vmem:[#allocation18_spill] sm:$0xff] }
 0x30f   : >>> { %v2304_v18 = vpop.f32.mrf.mxu0  ;;  %v2542_v11 = vadd.f32 %v2503_v16, %v2340_v35  ;;  %v2535_v28 = vadd.f32 %v11715_v15, %v2333_v3  ;;  %v11716_v16 = vld [vmem:[#allocation16_spill] sm:$0xff]  ;;  %v2339_v48 = vadd.f32 %v11718_v41, %v2134_v13 }
 0x310   : >>> { %v10395_v1 = vpop.f32.mrf.mxu1  ;;  %v2341_v43 = vadd.f32 %v2304_v18, %v2136_v49  ;;  %v2545_v63 = vadd.f32 %v10390_v45, %v2343_v59  ;;  %v2336_v51 = vadd.f32 %v11716_v16, %v2131_v8  ;;  %v11717_v8 = vld [vmem:[#allocation15_spill] sm:$0xff] }
 0x311   : >>> { %v8341_v62 = vpop.f32.mrf.mxu0  ;;  %v2540_v47 = vadd.f32 %v11717_v8, %v2338_v10 }
 0x312   : >>> { %v10400_v22 = vpop.f32.mrf.mxu1  ;;  %v2346_v27 = vadd.f32 %v8341_v62, %v2141_v26  ;;  %v2543_v62 = vadd.f32 %v10395_v1, %v2341_v43  ;;  %v11719_v26 = vld [vmem:[#allocation17_spill] sm:$0xff] }
 0x313   : >>> { %v2317_v30 = vpop.f32.mrf.mxu0  ;;  %v2538_v56 = vadd.f32 %v11719_v26, %v2336_v51 }
 0x314   : >>> { %v10408_v46 = vpop.f32.mrf.mxu1  ;;  %v2344_v45 = vadd.f32 %v2317_v30, %v2139_v55  ;;  %v11720_v55 = vld [vmem:[#allocation20_spill] sm:$0xff] }
 0x315   : >>> { %v8342_v17 = vpop.f32.mrf.mxu0 }
 0x316   : >>> { %v10415_v44 = vpop.f32.mrf.mxu1  ;;  %v2347_v39 = vadd.f32 %v8342_v17, %v2142_v24  ;;  %v2546_v58 = vadd.f32 %v10408_v46, %v2344_v45 }
 0x317   : >>> { %v10420_v50 = vpop.f32.mrf.mxu0 }
 0x318   : >>> { %v10424_v54 = vpop.f32.mrf.mxu1  ;;  %v2345_v2 = vadd.f32 %v10420_v50, %v2140_v7  ;;  %v11722_v7 = vld [vmem:[#allocation21_spill] sm:$0xff] }
 0x319   : >>> { %v8393_v34 = vpop.f32.mrf.mxu0 }
 0x31a   : >>> { %v2738_v42 = vadd.f32 %v8393_v34, %v2536_v53  ;;  %v8401_v14 = vpop.f32.mrf.mxu1  ;;  %v2548_v53 = vadd.f32 %v10400_v22, %v2346_v27  ;;  %v2547_v12 = vadd.f32 %v10424_v54, %v2345_v2 }
 0x31b   : >>> { %v2746_v9 = vadd.f32 %v8401_v14, %v2544_v40  ;;  %v2673_v57 = vpop.f32.mrf.mxu0  ;;  %v2337_v40 = vadd.f32 %v11720_v55, %v2132_v52  ;;  %v2549_v14 = vadd.f32 %v10415_v44, %v2347_v39 }
 0x31c   : >>> { %v2754_v23 = vmax.f32 %v2738_v42, 0.0  ;;  %v2736_v29 = vadd.f32 %v2673_v57, %v2534_v5  ;;  %v2705_v36 = vpop.f32.mrf.mxu1  ;;  %v11721_v5 = vld [vmem:[#allocation19_spill] sm:$0xff] }
 0x31d   : >>> { %v2762_v20 = vmax.f32 %v2746_v9, 0.0  ;;  %v2744_v33 = vadd.f32 %v2705_v36, %v2542_v11  ;;  %v8394_v4 = vpop.f32.mrf.mxu0  ;;  %v2541_v0 = vadd.f32 %v11721_v5, %v2339_v48  ;;  %v2539_v11 = vadd.f32 %v11722_v7, %v2337_v40 }
 0x31e   : >>> { %7006 = vst [vmem:[%s10439_s28 + $0x48] sm:$0xff] %v2754_v23  ;;  %v2752_v18 = vmax.f32 %v2736_v29, 0.0  ;;  %v2739_v37 = vadd.f32 %v8394_v4, %v2537_v21  ;;  %v8402_v31 = vpop.f32.mrf.mxu1 }
 0x31f   : >>> { %7014 = vst [vmem:[%s10439_s28 + $0xa8] sm:$0xff] %v2762_v20  ;;  %v2760_v38 = vmax.f32 %v2744_v33, 0.0  ;;  %v2747_v60 = vadd.f32 %v8402_v31, %v2545_v63  ;;  %v2676_v32 = vpop.f32.mrf.mxu0 }
 0x320   : >>> { %7004 = vst [vmem:[%s10439_s28 + $0x38] sm:$0xff] %v2752_v18  ;;  %v2755_v35 = vmax.f32 %v2739_v37, 0.0  ;;  %v2737_v25 = vadd.f32 %v2676_v32, %v2535_v28  ;;  %v2708_v49 = vpop.f32.mrf.mxu1 }
 0x321   : >>> { %7012 = vst [vmem:[%s10439_s28 + $0x98] sm:$0xff] %v2760_v38  ;;  %v2763_v1 = vmax.f32 %v2747_v60, 0.0  ;;  %v2745_v30 = vadd.f32 %v2708_v49, %v2543_v62  ;;  %v8397_v19 = vpop.f32.mrf.mxu0 }
 0x322   : >>> { %7007 = vst [vmem:[%s10439_s28 + $0x50] sm:$0xff] %v2755_v35  ;;  %v2753_v13 = vmax.f32 %v2737_v25, 0.0  ;;  %v2742_v59 = vadd.f32 %v8397_v19, %v2540_v47  ;;  %v8405_v34 = vpop.f32.mrf.mxu1 }
 0x323   : >>> { %7015 = vst [vmem:[%s10439_s28 + $0xb0] sm:$0xff] %v2763_v1  ;;  %v2761_v22 = vmax.f32 %v2745_v30, 0.0  ;;  %v2750_v17 = vadd.f32 %v8405_v34, %v2548_v53  ;;  %v2689_v24 = vpop.f32.mrf.mxu0 }
 0x324   : >>> { %7005 = vst [vmem:[%s10439_s28 + $0x40] sm:$0xff] %v2753_v13  ;;  %v2758_v3 = vmax.f32 %v2742_v59, 0.0  ;;  %v2740_v52 = vadd.f32 %v2689_v24, %v2538_v56  ;;  %v2721_v42 = vpop.f32.mrf.mxu1 }
 0x325   : >>> { %7013 = vst [vmem:[%s10439_s28 + $0xa0] sm:$0xff] %v2761_v22  ;;  %v2766_v6 = vmax.f32 %v2750_v17, 0.0  ;;  %v2748_v46 = vadd.f32 %v2721_v42, %v2546_v58  ;;  %v8398_v50 = vpop.f32.mrf.mxu0 }
 0x326   : >>> { %7010 = vst [vmem:[%s10439_s28 + $0x78] sm:$0xff] %v2758_v3  ;;  %v2756_v43 = vmax.f32 %v2740_v52, 0.0  ;;  %v2743_v9 = vadd.f32 %v8398_v50, %v2541_v0  ;;  %v8406_v57 = vpop.f32.mrf.mxu1 }
 0x327   : >>> { %7018 = vst [vmem:[%s10439_s28 + $0xd8] sm:$0xff] %v2766_v6  ;;  %v2764_v21 = vmax.f32 %v2748_v46, 0.0  ;;  %v2751_v44 = vadd.f32 %v8406_v57, %v2549_v14  ;;  %v2692_v61 = vpop.f32.mrf.mxu0 }
 0x328   : >>> { %7008 = vst [vmem:[%s10439_s28 + $0x68] sm:$0xff] %v2756_v43  ;;  %v2759_v10 = vmax.f32 %v2743_v9, 0.0  ;;  %v2741_v23 = vadd.f32 %v2692_v61, %v2539_v11  ;;  %v2724_v29 = vpop.f32.mrf.mxu1 }
 0x329   : >>> { %7016 = vst [vmem:[%s10439_s28 + $0xc8] sm:$0xff] %v2764_v21  ;;  %v2767_v36 = vmax.f32 %v2751_v44, 0.0  ;;  %v2749_v63 = vadd.f32 %v2724_v29, %v2547_v12  ;;  %956 = sbr.rel (!%p954_p5) target bundleno = 440 (0x1b8), region = 164 }
 0x32a   : >>> { %7011 = vst [vmem:[%s10439_s28 + $0x80] sm:$0xff] %v2759_v10  ;;  %v2757_v27 = vmax.f32 %v2741_v23, 0.0 }
 0x32b   : >>> { %7019 = vst [vmem:[%s10439_s28 + $0xe0] sm:$0xff] %v2767_v36  ;;  %v2765_v20 = vmax.f32 %v2749_v63, 0.0 }
 0x32c   : >>> { %7009 = vst [vmem:[%s10439_s28 + $0x70] sm:$0xff] %v2757_v27 }
 0x32d   : >>> { %7017 = vst [vmem:[%s10439_s28 + $0xd0] sm:$0xff] %v2765_v20 }
 0x32e LB: >>> { %v9171_v54 = vld [vmem:[%s11685_s4 + $0x78] sm:$0xff]   ;;  %v9173_v4 = vld [vmem:[%s11685_s4 + $0x70] sm:$0xff]   ;;  %v9175_v28 = vld [vmem:[%s11685_s4 + $0x68] sm:$0xff]   ;;  %s7021_s11 = smul.u32 192, %s9357_s22  ;;  %s9357_s22 = sphi %s10472_s22, %s2790_s22  }
 0x32f   : >>> { %v9172_v33 = vld [vmem:[%s11685_s4 + $0x38] sm:$0xff]   ;;  %8407 = vmatprep.subr.bf16.mxu0 %v9171_v54  ;;  %v9174_v15 = vld [vmem:[%s11685_s4 + $0x30] sm:$0xff]   ;;  %v9176_v16 = vld [vmem:[%s11685_s4 + $0x28] sm:$0xff]  }
 0x330   : >>> { %8439 = vmatprep.subr.bf16.mxu1 %v9172_v33  ;;  %8408 = vmatpush3.bf16.msra.mxu0 %v9171_v54  ;;  %v9177_v51 = vld [vmem:[%s11685_s4 + $0x60] sm:$0xff]   ;;  %v9179_v37 = vld [vmem:[%s11685_s4 + $0x58] sm:$0xff]   ;;  %v9181_v62 = vld [vmem:[%s11685_s4 + $0x50] sm:$0xff]   ;;  %s10513_s17 = scalar_lea.vmem [#allocation3], %s7021_s11  ;;  %s11013_s23 = scalar_lea.vmem [#allocation2], %s7021_s11 }
 0x331   : >>> { %8440 = vmatpush3.bf16.msra.mxu1 %v9172_v33  ;;  %8409 = vmatprep.subr.bf16.mxu0 %v9173_v4  ;;  %v9178_v18 = vld [vmem:[%s11685_s4 + $0x20] sm:$0xff]   ;;  %v9180_v31 = vld [vmem:[%s11685_s4 + $0x18] sm:$0xff]   ;;  %v9182_v32 = vld [vmem:[%s11685_s4 + $0x10] sm:$0xff]  }
 0x332   : >>> { %8441 = vmatprep.subr.bf16.mxu1 %v9174_v15  ;;  %v9183_v48 = vld [vmem:[%s11685_s4 + $0x48] sm:$0xff]   ;;  %v9185_v25 = vld [vmem:[%s11685_s4 + $0x40] sm:$0xff]   ;;  %v9187_v19 = vld [vmem:[%s11685_s4 + $0xb8] sm:$0xff]  }
 0x333   : >>> { %v9184_v35 = vld [vmem:[%s11685_s4 + $0x8] sm:$0xff]   ;;  %v9186_v49 = vld [vmem:[%s11685_s4] sm:$0xff]   ;;  %v9188_v26 = vld [vmem:[%s11685_s4 + $0xf8] sm:$0xff]  }
 0x334   : >>> { %8410 = vmatpush3.bf16.msra.mxu0 %v9173_v4  ;;  %v2834_v45 = vld [vmem:[%s10513_s17 + $0x8] sm:$0xff]  ;;  %v2835_v38 = vld [vmem:[%s10513_s17 + $0x10] sm:$0xff]  ;;  %v2836_v53 = vld [vmem:[%s10513_s17 + $0x18] sm:$0xff] }
 0x335   : >>> { %8442 = vmatpush3.bf16.msra.mxu1 %v9174_v15  ;;  %8411 = vmatprep.subr.bf16.mxu0 %v9175_v28  ;;  %v2794_v60 = vld [vmem:[%s10513_s17 + $0x7] sm:$0xff]  ;;  %v2850_v8 = vpack.c.bf16 %v2835_v38, %v2834_v45  ;;  %v2795_v47 = vld [vmem:[%s10513_s17 + $0xf] sm:$0xff]  ;;  %v2796_v1 = vld [vmem:[%s10513_s17 + $0x17] sm:$0xff] }
 0x336   : >>> { %8443 = vmatprep.subr.bf16.mxu1 %v9176_v16  ;;  %v2810_v41 = vpack.c.bf16 %v2795_v47, %v2794_v60  ;;  %v2837_v39 = vld [vmem:[%s10513_s17 + $0x20] sm:$0xff]  ;;  %v2838_v55 = vld [vmem:[%s10513_s17 + $0x38] sm:$0xff]  ;;  %v9189_v58 = vld [vmem:[%s11685_s4 + $0xb0] sm:$0xff]  }
 0x337   : >>> { %8423 = vmatprep.mubr.bf16.mxu0 %v2850_v8  ;;  %v2797_v30 = vld [vmem:[%s10513_s17 + $0x1f] sm:$0xff]  ;;  %v2851_v56 = vpack.c.bf16 %v2837_v39, %v2836_v53  ;;  %v2798_v59 = vld [vmem:[%s10513_s17 + $0x37] sm:$0xff]  ;;  %v2840_v24 = vld [vmem:[%s10513_s17 + $0x48] sm:$0xff] }
 0x338   : >>> { %8412 = vmatpush3.bf16.msra.mxu0 %v9175_v28  ;;  %8455 = vmatprep.mubr.bf16.mxu1 %v2810_v41  ;;  %v2839_v40 = vld [vmem:[%s10513_s17 + $0x40] sm:$0xff]  ;;  %v2811_v13 = vpack.c.bf16 %v2797_v30, %v2796_v1  ;;  %v9190_v2 = vld [vmem:[%s11685_s4 + $0xf0] sm:$0xff]   ;;  %v9191_v52 = vld [vmem:[%s11685_s4 + $0xa8] sm:$0xff]  }
 0x339   : >>> { %8444 = vmatpush3.bf16.msra.mxu1 %v9176_v16  ;;  %8413 = vmatprep.subr.bf16.mxu0 %v9177_v51  ;;  %v2799_v34 = vld [vmem:[%s10513_s17 + $0x3f] sm:$0xff]  ;;  %v10554_v22 = vpack.c.bf16 %v2839_v40, %v2838_v55  ;;  %v2841_v5 = vld [vmem:[%s10513_s17 + $0x50] sm:$0xff]  ;;  %v2800_v0 = vld [vmem:[%s10513_s17 + $0x47] sm:$0xff] }
 0x33a   : >>> { %8445 = vmatprep.subr.bf16.mxu1 %v9178_v18  ;;  %v10556_v17 = vpack.c.bf16 %v2799_v34, %v2798_v59  ;;  %v2801_v3 = vld [vmem:[%s10513_s17 + $0x4f] sm:$0xff]  ;;  %v10571_v6 = vpack.c.bf16 %v2841_v5, %v2840_v24  ;;  %v9193_v46 = vld [vmem:[%s11685_s4 + $0xa0] sm:$0xff]   ;;  %v2844_v12 = vld [vmem:[%s10513_s17 + $0x78] sm:$0xff] }
 0x33b   : >>> { %v9192_v42 = vld [vmem:[%s11685_s4 + $0xe8] sm:$0xff]   ;;  %v2843_v50 = vld [vmem:[%s10513_s17 + $0x70] sm:$0xff]  ;;  %v10578_v11 = vpack.c.bf16 %v2801_v3, %v2800_v0  ;;  %v9194_v9 = vld [vmem:[%s11685_s4 + $0xe0] sm:$0xff]  }
 0x33c   : >>> { %8414 = vmatpush3.bf16.msra.mxu0 %v9177_v51  ;;  %v2842_v14 = vld [vmem:[%s10513_s17 + $0x68] sm:$0xff]  ;;  %v2845_v44 = vld [vmem:[%s10513_s17 + $0x80] sm:$0xff]  ;;  %v2804_v61 = vld [vmem:[%s10513_s17 + $0x77] sm:$0xff] }
 0x33d   : >>> { %8446 = vmatpush3.bf16.msra.mxu1 %v9178_v18  ;;  %8415 = vmatprep.subr.bf16.mxu0 %v9179_v37  ;;  %v2802_v7 = vld [vmem:[%s10513_s17 + $0x67] sm:$0xff]  ;;  %v2803_v43 = vld [vmem:[%s10513_s17 + $0x6f] sm:$0xff]  ;;  %v10584_v57 = vpack.c.bf16 %v2843_v50, %v2842_v14  ;;  %v2805_v10 = vld [vmem:[%s10513_s17 + $0x7f] sm:$0xff]  ;;  %v10604_v27 = vpack.c.bf16 %v2845_v44, %v2844_v12 }
 0x33e   : >>> { %8447 = vmatprep.subr.bf16.mxu1 %v9180_v31  ;;  %v10588_v21 = vpack.c.bf16 %v2803_v43, %v2802_v7  ;;  %v9195_v23 = vld [vmem:[%s11685_s4 + $0x98] sm:$0xff]   ;;  %v2847_v63 = vld [vmem:[%s10513_s17 + $0xa0] sm:$0xff]  ;;  %v10607_v54 = vpack.c.bf16 %v2805_v10, %v2804_v61  ;;  %v9197_v4 = vld [vmem:[%s11685_s4 + $0x90] sm:$0xff]  }
 0x33f   : >>> { %v9196_v29 = vld [vmem:[%s11685_s4 + $0xd8] sm:$0xff]   ;;  %v9198_v15 = vld [vmem:[%s11685_s4 + $0xd0] sm:$0xff]   ;;  %v2848_v16 = vld [vmem:[%s10513_s17 + $0xa8] sm:$0xff] }
 0x340   : >>> { %8416 = vmatpush3.bf16.msra.mxu0 %v9179_v37  ;;  %v2846_v36 = vld [vmem:[%s10513_s17 + $0x98] sm:$0xff]  ;;  %v2849_v51 = vld [vmem:[%s10513_s17 + $0xb0] sm:$0xff]  ;;  %v2808_v37 = vld [vmem:[%s10513_s17 + $0xa7] sm:$0xff] }
 0x341   : >>> { %8448 = vmatpush3.bf16.msra.mxu1 %v9180_v31  ;;  %8417 = vmatprep.subr.bf16.mxu0 %v9181_v62  ;;  %v2806_v20 = vld [vmem:[%s10513_s17 + $0x97] sm:$0xff]  ;;  %v2807_v33 = vld [vmem:[%s10513_s17 + $0x9f] sm:$0xff]  ;;  %v10616_v28 = vpack.c.bf16 %v2847_v63, %v2846_v36  ;;  %v2809_v31 = vld [vmem:[%s10513_s17 + $0xaf] sm:$0xff]  ;;  %v10634_v38 = vpack.c.bf16 %v2849_v51, %v2848_v16 }
 0x342   : >>> { %8449 = vmatprep.subr.bf16.mxu1 %v9182_v32  ;;  %v10621_v18 = vpack.c.bf16 %v2807_v33, %v2806_v20  ;;  %v9200_v45 = vld [vmem:[%s11685_s4 + $0xc8] sm:$0xff]   ;;  %v10638_v8 = vpack.c.bf16 %v2809_v31, %v2808_v37  ;;  %v9201_v47 = vld [vmem:[%s11685_s4 + $0x80] sm:$0xff]   ;;  %v9204_v53 = vld [vmem:[%s11685_s4 + $0x178] sm:$0xff]  }
 0x343   : >>> { %v3165_v60 = vld [vmem:[%s10513_s17 + $0x9] sm:$0xff]  ;;  %v9202_v41 = vld [vmem:[%s11685_s4 + $0xc0] sm:$0xff]   ;;  %v3172_v40 = vld [vmem:[%s10513_s17 + $0x51] sm:$0xff] }
 0x344   : >>> { %8418 = vmatpush3.bf16.msra.mxu0 %v9181_v62  ;;  %v9199_v62 = vld [vmem:[%s11685_s4 + $0x88] sm:$0xff]   ;;  %v3169_v39 = vld [vmem:[%s10513_s17 + $0x39] sm:$0xff]  ;;  %v9213_v7 = vld [vmem:[%s11685_s4 + $0x110] sm:$0xff]  }
 0x345   : >>> { %8450 = vmatpush3.bf16.msra.mxu1 %v9182_v32  ;;  %8419 = vmatprep.subr.bf16.mxu0 %v9183_v48  ;;  %v3166_v32 = vld [vmem:[%s10513_s17 + $0x11] sm:$0xff]  ;;  %v3170_v30 = vld [vmem:[%s10513_s17 + $0x41] sm:$0xff]  ;;  %v3171_v55 = vld [vmem:[%s10513_s17 + $0x49] sm:$0xff] }
 0x346   : >>> { %8451 = vmatprep.subr.bf16.mxu1 %v9184_v35  ;;  %v9208_v59 = vld [vmem:[%s11685_s4 + $0x168] sm:$0xff]   ;;  %v9210_v24 = vld [vmem:[%s11685_s4 + $0x160] sm:$0xff]   ;;  %v3180_v61 = vld [vmem:[%s10513_s17 + $0xb1] sm:$0xff] }
 0x347   : >>> { %v3173_v34 = vld [vmem:[%s10513_s17 + $0x69] sm:$0xff]  ;;  %v3175_v0 = vld [vmem:[%s10513_s17 + $0x79] sm:$0xff]  ;;  %v3176_v3 = vld [vmem:[%s10513_s17 + $0x81] sm:$0xff] }
 0x348   : >>> { %8420 = vmatpush3.bf16.msra.mxu0 %v9183_v48  ;;  %v3181_v48 = vpack.c.bf16 %v3166_v32, %v3165_v60  ;;  %v10702_v14 = vpack.c.bf16 %v3176_v3, %v3175_v0  ;;  %v3178_v50 = vld [vmem:[%s10513_s17 + $0xa1] sm:$0xff]  ;;  %v7093_v43 = vld [vmem:[%s10513_s17 + $0xcf] sm:$0xff]  ;;  %v9219_v16 = vld [vmem:[%s11685_s4 + $0x1b8] sm:$0xff]  }
 0x349   : >>> { %8452 = vmatpush3.bf16.msra.mxu1 %v9184_v35  ;;  %8421 = vmatprep.subr.bf16.mxu0 %v9185_v25  ;;  %v3167_v35 = vld [vmem:[%s10513_s17 + $0x19] sm:$0xff]  ;;  %v3179_v44 = vld [vmem:[%s10513_s17 + $0xa9] sm:$0xff] }
 0x34a   : >>> { %8453 = vmatprep.subr.bf16.mxu1 %v9186_v49  ;;  %v9215_v36 = vld [vmem:[%s11685_s4 + $0x108] sm:$0xff]   ;;  %v10732_v20 = vpack.c.bf16 %v3180_v61, %v3179_v44  ;;  %v9220_v51 = vld [vmem:[%s11685_s4 + $0x1f8] sm:$0xff]   ;;  %v9221_v37 = vld [vmem:[%s11685_s4 + $0x1b0] sm:$0xff]  }
 0x34b   : >>> { %v9216_v63 = vld [vmem:[%s11685_s4 + $0x148] sm:$0xff]   ;;  %v9222_v31 = vld [vmem:[%s11685_s4 + $0x1f0] sm:$0xff]   ;;  %v9227_v60 = vld [vmem:[%s11685_s4 + $0x198] sm:$0xff]  }
 0x34c   : >>> { %8422 = vmatpush3.bf16.msra.mxu0 %v9185_v25  ;;  %v3168_v25 = vld [vmem:[%s10513_s17 + $0x21] sm:$0xff]  ;;  %v9228_v32 = vld [vmem:[%s11685_s4 + $0x1d8] sm:$0xff]   ;;  %v7217_v3 = vld [vmem:[%s10513_s17 + $0x10f] sm:$0xff] }
 0x34d   : >>> { %8454 = vmatpush3.bf16.msra.mxu1 %v9186_v49  ;;  %8471 = vmatprep.subr.bf16.mxu0 %v9187_v19  ;;  %v9203_v49 = vld [vmem:[%s11685_s4 + $0x138] sm:$0xff]   ;;  %v3182_v1 = vpack.c.bf16 %v3168_v25, %v3167_v35  ;;  %v9229_v25 = vld [vmem:[%s11685_s4 + $0x190] sm:$0xff]   ;;  %v7216_v0 = vld [vmem:[%s10513_s17 + $0x107] sm:$0xff] }
 0x34e   : >>> { %8503 = vmatprep.subr.bf16.mxu1 %v9188_v26  ;;  %v7173_v35 = vld [vmem:[%s10513_s17 + $0xd1] sm:$0xff]  ;;  %v7296_v61 = vld [vmem:[%s10513_s17 + $0x109] sm:$0xff] }
 0x34f   : >>> { %8424 = vmatmul.mubr.bf16.vlgmr.msra.gmra.mxu0 %v2851_v56  ;;  %v10665_v56 = vpack.c.bf16 %v3170_v30, %v3169_v39  ;;  %v7135_v30 = vld [vmem:[%s10513_s17 + $0xe0] sm:$0xff] }
 0x350   : >>> { %8456 = vmatmul.mubr.bf16.vlgmr.msra.gmra.mxu1 %v2811_v13  ;;  %8472 = vmatpush3.bf16.msra.mxu0 %v9187_v19  ;;  %v9205_v19 = vld [vmem:[%s11685_s4 + $0x130] sm:$0xff]   ;;  %v9207_v13 = vld [vmem:[%s11685_s4 + $0x128] sm:$0xff]  }
 0x351   : >>> { %8504 = vmatpush3.bf16.msra.mxu1 %v9188_v26  ;;  %8473 = vmatprep.subr.bf16.mxu0 %v9189_v58  ;;  %v9206_v26 = vld [vmem:[%s11685_s4 + $0x170] sm:$0xff]  }
 0x352   : >>> { %8505 = vmatprep.subr.bf16.mxu1 %v9190_v2  ;;  %8427 = vmatprep.mubr.bf16.mxu0 %v10554_v22 }
 0x353   : >>> { %8459 = vmatprep.mubr.bf16.mxu1 %v10556_v17 }
 0x354   : >>> { %8474 = vmatpush3.bf16.msra.mxu0 %v9189_v58  ;;  %v10679_v58 = vpack.c.bf16 %v3172_v40, %v3171_v55  ;;  %v9232_v55 = vld [vmem:[%s11685_s4 + $0x1c8] sm:$0xff]  }
 0x355   : >>> { %8506 = vmatpush3.bf16.msra.mxu1 %v9190_v2  ;;  %8475 = vmatprep.subr.bf16.mxu0 %v9191_v52  ;;  %v3174_v2 = vld [vmem:[%s10513_s17 + $0x71] sm:$0xff] }
 0x356   : >>> { %8507 = vmatprep.subr.bf16.mxu1 %v9192_v42  ;;  %v10688_v5 = vpack.c.bf16 %v3174_v2, %v3173_v34  ;;  %v9234_v34 = vld [vmem:[%s11685_s4 + $0x1c0] sm:$0xff]   ;;  %v9236_v2 = vld [vmem:[%s11685_s4 + $0x230] sm:$0xff]  }
 0x357   : >>> { %8428 = vmatmul.mubr.bf16.gmra.mxu0 %v10571_v6 }
 0x358   : >>> { %8460 = vmatmul.mubr.bf16.gmra.mxu1 %v10578_v11  ;;  %8476 = vmatpush3.bf16.msra.mxu0 %v9191_v52  ;;  %v9211_v52 = vld [vmem:[%s11685_s4 + $0x118] sm:$0xff]  }
 0x359   : >>> { %8508 = vmatpush3.bf16.msra.mxu1 %v9192_v42  ;;  %8477 = vmatprep.subr.bf16.mxu0 %v9193_v46  ;;  %v9212_v42 = vld [vmem:[%s11685_s4 + $0x158] sm:$0xff]  }
 0x35a   : >>> { %8509 = vmatprep.subr.bf16.mxu1 %v9194_v9  ;;  %8431 = vmatprep.mubr.bf16.mxu0 %v10584_v57 }
 0x35b   : >>> { %8463 = vmatprep.mubr.bf16.mxu1 %v10588_v21 }
 0x35c   : >>> { %8478 = vmatpush3.bf16.msra.mxu0 %v9193_v46  ;;  %v3177_v46 = vld [vmem:[%s10513_s17 + $0x99] sm:$0xff] }
 0x35d   : >>> { %8510 = vmatpush3.bf16.msra.mxu1 %v9194_v9  ;;  %8479 = vmatprep.subr.bf16.mxu0 %v9195_v23  ;;  %v9214_v9 = vld [vmem:[%s11685_s4 + $0x150] sm:$0xff]   ;;  %v10714_v12 = vpack.c.bf16 %v3178_v50, %v3177_v46  ;;  %v9241_v46 = vld [vmem:[%s11685_s4 + $0x208] sm:$0xff]   ;;  %v4002_v50 = vpack.c.bf16 %v7217_v3, %v7216_v0 }
 0x35e   : >>> { %8511 = vmatprep.subr.bf16.mxu1 %v9196_v29 }
 0x35f   : >>> { %8432 = vmatmul.mubr.bf16.gmra.mxu0 %v10604_v27 }
 0x360   : >>> { %8464 = vmatmul.mubr.bf16.gmra.mxu1 %v10607_v54  ;;  %8480 = vmatpush3.bf16.msra.mxu0 %v9195_v23  ;;  %v7094_v23 = vld [vmem:[%s10513_s17 + $0xd7] sm:$0xff] }
 0x361   : >>> { %8512 = vmatpush3.bf16.msra.mxu1 %v9196_v29  ;;  %8481 = vmatprep.subr.bf16.mxu0 %v9197_v4  ;;  %v7095_v29 = vld [vmem:[%s10513_s17 + $0xdf] sm:$0xff] }
 0x362   : >>> { %8513 = vmatprep.subr.bf16.mxu1 %v9198_v15  ;;  %8435 = vmatprep.mubr.bf16.mxu0 %v10616_v28  ;;  %v10734_v33 = vpack.c.bf16 %v7095_v29, %v7094_v23 }
 0x363   : >>> { %8467 = vmatprep.mubr.bf16.mxu1 %v10621_v18 }
 0x364   : >>> { %8482 = vmatpush3.bf16.msra.mxu0 %v9197_v4  ;;  %v9217_v4 = vld [vmem:[%s11685_s4 + $0x100] sm:$0xff]  }
 0x365   : >>> { %8514 = vmatpush3.bf16.msra.mxu1 %v9198_v15  ;;  %8483 = vmatprep.subr.bf16.mxu0 %v9199_v62  ;;  %v9218_v15 = vld [vmem:[%s11685_s4 + $0x140] sm:$0xff]  }
 0x366   : >>> { %8515 = vmatprep.subr.bf16.mxu1 %v9200_v45 }
 0x367   : >>> { %8436 = vmatmul.mubr.bf16.gmra.mxu0 %v10634_v38 }
 0x368   : >>> { %8468 = vmatmul.mubr.bf16.gmra.mxu1 %v10638_v8  ;;  %8484 = vmatpush3.bf16.msra.mxu0 %v9199_v62  ;;  %v9224_v62 = vld [vmem:[%s11685_s4 + $0x1e8] sm:$0xff]  }
 0x369   : >>> { %8516 = vmatpush3.bf16.msra.mxu1 %v9200_v45  ;;  %8485 = vmatprep.subr.bf16.mxu0 %v9201_v47  ;;  %v9226_v45 = vld [vmem:[%s11685_s4 + $0x1e0] sm:$0xff]  }
 0x36a   : >>> { %8517 = vmatprep.subr.bf16.mxu1 %v9202_v41  ;;  %8487 = vmatprep.mubr.bf16.mxu0 %v3181_v48  ;;  %v7172_v48 = vld [vmem:[%s10513_s17 + $0xc9] sm:$0xff] }
 0x36b   : >>> { %8519 = vmatprep.mubr.bf16.mxu1 %v10556_v17  ;;  %v9209_v17 = vld [vmem:[%s11685_s4 + $0x120] sm:$0xff]   ;;  %v10795_v39 = vpack.c.bf16 %v7173_v35, %v7172_v48 }
 0x36c   : >>> { %8486 = vmatpush3.bf16.msra.mxu0 %v9201_v47  ;;  %v7132_v47 = vld [vmem:[%s10513_s17 + $0xc8] sm:$0xff] }
 0x36d   : >>> { %8518 = vmatpush3.bf16.msra.mxu1 %v9202_v41  ;;  %8535 = vmatprep.subr.bf16.mxu0 %v9203_v49  ;;  %v7133_v41 = vld [vmem:[%s10513_s17 + $0xd0] sm:$0xff] }
 0x36e   : >>> { %8567 = vmatprep.subr.bf16.mxu1 %v9204_v53 }
 0x36f   : >>> { %8488 = vmatmul.mubr.bf16.vlgmr.msra.gmra.mxu0 %v3182_v1  ;;  %v7134_v1 = vld [vmem:[%s10513_s17 + $0xd8] sm:$0xff] }
 0x370   : >>> { %8520 = vmatmul.mubr.bf16.vlgmr.msra.gmra.mxu1 %v10578_v11  ;;  %8536 = vmatpush3.bf16.msra.mxu0 %v9203_v49  ;;  %v7092_v11 = vld [vmem:[%s10513_s17 + $0xc7] sm:$0xff]  ;;  %v9230_v49 = vld [vmem:[%s11685_s4 + $0x1d0] sm:$0xff]   ;;  %v3595_v40 = vpack.c.bf16 %v7135_v30, %v7134_v1 }
 0x371   : >>> { %8568 = vmatpush3.bf16.msra.mxu1 %v9204_v53  ;;  %8537 = vmatprep.subr.bf16.mxu0 %v9205_v19  ;;  %v10719_v10 = vpack.c.bf16 %v7093_v43, %v7092_v11  ;;  %v3594_v53 = vpack.c.bf16 %v7133_v41, %v7132_v47  ;;  %v9242_v11 = vld [vmem:[%s11685_s4 + $0x200] sm:$0xff]  }
 0x372   : >>> { %8569 = vmatprep.subr.bf16.mxu1 %v9206_v26  ;;  %8491 = vmatprep.mubr.bf16.mxu0 %v10665_v56  ;;  %v7294_v43 = vld [vmem:[%s10513_s17 + $0xf9] sm:$0xff] }
 0x373   : >>> { %8523 = vmatprep.mubr.bf16.mxu1 %v10588_v21 }
 0x374   : >>> { %8538 = vmatpush3.bf16.msra.mxu0 %v9205_v19  ;;  %v7174_v19 = vld [vmem:[%s10513_s17 + $0xd9] sm:$0xff] }
 0x375   : >>> { %8570 = vmatpush3.bf16.msra.mxu1 %v9206_v26  ;;  %8539 = vmatprep.subr.bf16.mxu0 %v9207_v13  ;;  %v7175_v26 = vld [vmem:[%s10513_s17 + $0xe1] sm:$0xff] }
 0x376   : >>> { %8571 = vmatprep.subr.bf16.mxu1 %v9208_v59 }
 0x377   : >>> { %8492 = vmatmul.mubr.bf16.gmra.mxu0 %v10679_v58 }
 0x378   : >>> { %8524 = vmatmul.mubr.bf16.gmra.mxu1 %v10607_v54  ;;  %8540 = vmatpush3.bf16.msra.mxu0 %v9207_v13  ;;  %v10809_v13 = vpack.c.bf16 %v7175_v26, %v7174_v19 }
 0x379   : >>> { %8572 = vmatpush3.bf16.msra.mxu1 %v9208_v59  ;;  %8541 = vmatprep.subr.bf16.mxu0 %v9209_v17  ;;  %v9233_v59 = vld [vmem:[%s11685_s4 + $0x180] sm:$0xff]  }
 0x37a   : >>> { %8573 = vmatprep.subr.bf16.mxu1 %v9210_v24  ;;  %8495 = vmatprep.mubr.bf16.mxu0 %v10688_v5 }
 0x37b   : >>> { %8527 = vmatprep.mubr.bf16.mxu1 %v10621_v18 }
 0x37c   : >>> { %8542 = vmatpush3.bf16.msra.mxu0 %v9209_v17 }
 0x37d   : >>> { %8574 = vmatpush3.bf16.msra.mxu1 %v9210_v24  ;;  %8543 = vmatprep.subr.bf16.mxu0 %v9211_v52 }
 0x37e   : >>> { %8575 = vmatprep.subr.bf16.mxu1 %v9212_v42 }
 0x37f   : >>> { %8496 = vmatmul.mubr.bf16.gmra.mxu0 %v10702_v14 }
 0x380   : >>> { %8528 = vmatmul.mubr.bf16.gmra.mxu1 %v10638_v8  ;;  %8544 = vmatpush3.bf16.msra.mxu0 %v9211_v52  ;;  %v7256_v52 = vld [vmem:[%s10513_s17 + $0x108] sm:$0xff] }
 0x381   : >>> { %8576 = vmatpush3.bf16.msra.mxu1 %v9212_v42  ;;  %8545 = vmatprep.subr.bf16.mxu0 %v9213_v7  ;;  %v7257_v42 = vld [vmem:[%s10513_s17 + $0x110] sm:$0xff] }
 0x382   : >>> { %8577 = vmatprep.subr.bf16.mxu1 %v9214_v9  ;;  %8499 = vmatprep.mubr.bf16.mxu0 %v10714_v12 }
 0x383   : >>> { %8531 = vmatprep.mubr.bf16.mxu1 %v10719_v10 }
 0x384   : >>> { %8546 = vmatpush3.bf16.msra.mxu0 %v9213_v7  ;;  %v4204_v7 = vpack.c.bf16 %v7257_v42, %v7256_v52 }
 0x385   : >>> { %8578 = vmatpush3.bf16.msra.mxu1 %v9214_v9  ;;  %8547 = vmatprep.subr.bf16.mxu0 %v9215_v36  ;;  %v7295_v9 = vld [vmem:[%s10513_s17 + $0x101] sm:$0xff] }
 0x386   : >>> { %8579 = vmatprep.subr.bf16.mxu1 %v9216_v63  ;;  %v4405_v44 = vpack.c.bf16 %v7295_v9, %v7294_v43 }
 0x387   : >>> { %8500 = vmatmul.mubr.bf16.gmra.mxu0 %v10732_v20 }
 0x388   : >>> { %8532 = vmatmul.mubr.bf16.gmra.mxu1 %v10734_v33  ;;  %8548 = vmatpush3.bf16.msra.mxu0 %v9215_v36 }
 0x389   : >>> { %8580 = vmatpush3.bf16.msra.mxu1 %v9216_v63  ;;  %8549 = vmatprep.subr.bf16.mxu0 %v9217_v4 }
 0x38a   : >>> { %8581 = vmatprep.subr.bf16.mxu1 %v9218_v15  ;;  %8551 = vmatprep.mubr.bf16.mxu0 %v10554_v22  ;;  %v9223_v22 = vld [vmem:[%s11685_s4 + $0x1a8] sm:$0xff]  }
 0x38b   : >>> { %8583 = vmatprep.mubr.bf16.mxu1 %v10665_v56  ;;  %v9231_v56 = vld [vmem:[%s11685_s4 + $0x188] sm:$0xff]  }
 0x38c   : >>> { %8550 = vmatpush3.bf16.msra.mxu0 %v9217_v4 }
 0x38d   : >>> { %8582 = vmatpush3.bf16.msra.mxu1 %v9218_v15  ;;  %8599 = vmatprep.subr.bf16.mxu0 %v9219_v16 }
 0x38e   : >>> { %8631 = vmatprep.subr.bf16.mxu1 %v9220_v51 }
 0x38f   : >>> { %8552 = vmatmul.mubr.bf16.vlgmr.msra.gmra.mxu0 %v10571_v6  ;;  %v9225_v6 = vld [vmem:[%s11685_s4 + $0x1a0] sm:$0xff]  }
 0x390   : >>> { %8584 = vmatmul.mubr.bf16.vlgmr.msra.gmra.mxu1 %v10679_v58  ;;  %8600 = vmatpush3.bf16.msra.mxu0 %v9219_v16  ;;  %v9235_v58 = vld [vmem:[%s11685_s4 + $0x238] sm:$0xff]  }
 0x391   : >>> { %8632 = vmatpush3.bf16.msra.mxu1 %v9220_v51  ;;  %8601 = vmatprep.subr.bf16.mxu0 %v9221_v37 }
 0x392   : >>> { %8633 = vmatprep.subr.bf16.mxu1 %v9222_v31  ;;  %8555 = vmatprep.mubr.bf16.mxu0 %v10584_v57 }
 0x393   : >>> { %8587 = vmatprep.mubr.bf16.mxu1 %v10688_v5 }
 0x394   : >>> { %8602 = vmatpush3.bf16.msra.mxu0 %v9221_v37 }
 0x395   : >>> { %8634 = vmatpush3.bf16.msra.mxu1 %v9222_v31  ;;  %8603 = vmatprep.subr.bf16.mxu0 %v9223_v22 }
 0x396   : >>> { %8635 = vmatprep.subr.bf16.mxu1 %v9224_v62 }
 0x397   : >>> { %8556 = vmatmul.mubr.bf16.gmra.mxu0 %v10604_v27 }
 0x398   : >>> { %8588 = vmatmul.mubr.bf16.gmra.mxu1 %v10702_v14  ;;  %8604 = vmatpush3.bf16.msra.mxu0 %v9223_v22 }
 0x399   : >>> { %8636 = vmatpush3.bf16.msra.mxu1 %v9224_v62  ;;  %8605 = vmatprep.subr.bf16.mxu0 %v9225_v6 }
 0x39a   : >>> { %8637 = vmatprep.subr.bf16.mxu1 %v9226_v45  ;;  %8559 = vmatprep.mubr.bf16.mxu0 %v10616_v28 }
 0x39b   : >>> { %8591 = vmatprep.mubr.bf16.mxu1 %v10714_v12 }
 0x39c   : >>> { %8606 = vmatpush3.bf16.msra.mxu0 %v9225_v6 }
 0x39d   : >>> { %8638 = vmatpush3.bf16.msra.mxu1 %v9226_v45  ;;  %8607 = vmatprep.subr.bf16.mxu0 %v9227_v60 }
 0x39e   : >>> { %8639 = vmatprep.subr.bf16.mxu1 %v9228_v32 }
 0x39f   : >>> { %8560 = vmatmul.mubr.bf16.gmra.mxu0 %v10634_v38 }
 0x3a0   : >>> { %8592 = vmatmul.mubr.bf16.gmra.mxu1 %v10732_v20  ;;  %8608 = vmatpush3.bf16.msra.mxu0 %v9227_v60 }
 0x3a1   : >>> { %8640 = vmatpush3.bf16.msra.mxu1 %v9228_v32  ;;  %8609 = vmatprep.subr.bf16.mxu0 %v9229_v25 }
 0x3a2   : >>> { %8641 = vmatprep.subr.bf16.mxu1 %v9230_v49  ;;  %8563 = vmatprep.mubr.bf16.mxu0 %v3594_v53 }
 0x3a3   : >>> { %8595 = vmatprep.mubr.bf16.mxu1 %v10795_v39 }
 0x3a4   : >>> { %8610 = vmatpush3.bf16.msra.mxu0 %v9229_v25 }
 0x3a5   : >>> { %8642 = vmatpush3.bf16.msra.mxu1 %v9230_v49  ;;  %8611 = vmatprep.subr.bf16.mxu0 %v9231_v56 }
 0x3a6   : >>> { %8643 = vmatprep.subr.bf16.mxu1 %v9232_v55 }
 0x3a7   : >>> { %8564 = vmatmul.mubr.bf16.gmra.mxu0 %v3595_v40 }
 0x3a8   : >>> { %8596 = vmatmul.mubr.bf16.gmra.mxu1 %v10809_v13  ;;  %8612 = vmatpush3.bf16.msra.mxu0 %v9231_v56 }
 0x3a9   : >>> { %8644 = vmatpush3.bf16.msra.mxu1 %v9232_v55  ;;  %8613 = vmatprep.subr.bf16.mxu0 %v9233_v59 }
 0x3aa   : >>> { %8645 = vmatprep.subr.bf16.mxu1 %v9234_v34  ;;  %8615 = vmatprep.mubr.bf16.mxu0 %v10588_v21  ;;  %v9237_v21 = vld [vmem:[%s11685_s4 + $0x228] sm:$0xff]  }
 0x3ab   : >>> { %8647 = vmatprep.mubr.bf16.mxu1 %v10584_v57  ;;  %v9238_v57 = vld [vmem:[%s11685_s4 + $0x220] sm:$0xff]  }
 0x3ac   : >>> { %8614 = vmatpush3.bf16.msra.mxu0 %v9233_v59 }
 0x3ad   : >>> { %8646 = vmatpush3.bf16.msra.mxu1 %v9234_v34  ;;  %8663 = vmatprep.subr.bf16.mxu0 %v9235_v58 }
 0x3ae   : >>> { %9005 = vmatprep.subr.bf16.mxu1 %v9235_v58 }
 0x3af   : >>> { %8616 = vmatmul.mubr.bf16.vlgmr.msra.gmra.mxu0 %v10607_v54  ;;  %v7214_v54 = vld [vmem:[%s10513_s17 + $0xf7] sm:$0xff] }
 0x3b0   : >>> { %8648 = vmatmul.mubr.bf16.vlgmr.msra.gmra.mxu1 %v10604_v27  ;;  %8664 = vmatpush3.bf16.msra.mxu0 %v9235_v58  ;;  %v9239_v27 = vld [vmem:[%s11685_s4 + $0x218] sm:$0xff]  }
 0x3b1   : >>> { %9013 = vmatpush3.bf16.msra.mxu1 %v9235_v58  ;;  %8665 = vmatprep.subr.bf16.mxu0 %v9236_v2 }
 0x3b2   : >>> { %9006 = vmatprep.subr.bf16.mxu1 %v9236_v2  ;;  %8619 = vmatprep.mubr.bf16.mxu0 %v10621_v18  ;;  %v7254_v18 = vld [vmem:[%s10513_s17 + $0xf8] sm:$0xff] }
 0x3b3   : >>> { %8651 = vmatprep.mubr.bf16.mxu1 %v10616_v28  ;;  %v7215_v28 = vld [vmem:[%s10513_s17 + $0xff] sm:$0xff] }
 0x3b4   : >>> { %8666 = vmatpush3.bf16.msra.mxu0 %v9236_v2  ;;  %v4001_v17 = vpack.c.bf16 %v7215_v28, %v7214_v54 }
 0x3b5   : >>> { %9014 = vmatpush3.bf16.msra.mxu1 %v9236_v2  ;;  %8667 = vmatprep.subr.bf16.mxu0 %v9237_v21 }
 0x3b6   : >>> { %9007 = vmatprep.subr.bf16.mxu1 %v9237_v21 }
 0x3b7   : >>> { %8620 = vmatmul.mubr.bf16.gmra.mxu0 %v10638_v8  ;;  %v9240_v8 = vld [vmem:[%s11685_s4 + $0x210] sm:$0xff]  }
 0x3b8   : >>> { %8652 = vmatmul.mubr.bf16.gmra.mxu1 %v10634_v38  ;;  %8668 = vmatpush3.bf16.msra.mxu0 %v9237_v21  ;;  %v7255_v38 = vld [vmem:[%s10513_s17 + $0x100] sm:$0xff] }
 0x3b9   : >>> { %9015 = vmatpush3.bf16.msra.mxu1 %v9237_v21  ;;  %8669 = vmatprep.subr.bf16.mxu0 %v9238_v57  ;;  %v4203_v24 = vpack.c.bf16 %v7255_v38, %v7254_v18 }
 0x3ba   : >>> { %9008 = vmatprep.subr.bf16.mxu1 %v9238_v57  ;;  %8623 = vmatprep.mubr.bf16.mxu0 %v10719_v10  ;;  %v7297_v10 = vld [vmem:[%s10513_s17 + $0x111] sm:$0xff]  ;;  %s7652_s17 = sshll.u32 %s9357_s22, 7  ;;  %s2790_s22 = sadd.s32 1, %s9357_s22  }
 0x3bb   : >>> { %8655 = vmatprep.mubr.bf16.mxu1 %v3594_v53  ;;  %v4406_v23 = vpack.c.bf16 %v7297_v10, %v7296_v61  ;;  %s10990_s20 = scalar_lea.vmem [#allocation4], %s7652_s17  ;;  %p2787_p6 = scmp.ge.s32.totalorder %s2790_s22, 8  }
 0x3bc   : >>> { %8670 = vmatpush3.bf16.msra.mxu0 %v9238_v57  ;;  %s951_s25 = sadd.s32 (%p2787_p6), 1, %s9349_s25  }
 0x3bd   : >>> { %9016 = vmatpush3.bf16.msra.mxu1 %v9238_v57  ;;  %8671 = vmatprep.subr.bf16.mxu0 %v9239_v27  ;;  %p948_p7 = scmp.ge.s32.totalorder (%p2787_p6), %s951_s25, 25  }
 0x3be   : >>> { %9009 = vmatprep.subr.bf16.mxu1 %v9239_v27 }
 0x3bf   : >>> { %8624 = vmatmul.mubr.bf16.gmra.mxu0 %v10734_v33 }
 0x3c0   : >>> { %8656 = vmatmul.mubr.bf16.gmra.mxu1 %v3595_v40  ;;  %8672 = vmatpush3.bf16.msra.mxu0 %v9239_v27 }
 0x3c1   : >>> { %9017 = vmatpush3.bf16.msra.mxu1 %v9239_v27  ;;  %8673 = vmatprep.subr.bf16.mxu0 %v9240_v8 }
 0x3c2   : >>> { %9010 = vmatprep.subr.bf16.mxu1 %v9240_v8  ;;  %8627 = vmatprep.mubr.bf16.mxu0 %v4001_v17 }
 0x3c3   : >>> { %8659 = vmatprep.mubr.bf16.mxu1 %v4203_v24 }
 0x3c4   : >>> { %8674 = vmatpush3.bf16.msra.mxu0 %v9240_v8 }
 0x3c5   : >>> { %9018 = vmatpush3.bf16.msra.mxu1 %v9240_v8  ;;  %8675 = vmatprep.subr.bf16.mxu0 %v9241_v46 }
 0x3c6   : >>> { %9011 = vmatprep.subr.bf16.mxu1 %v9241_v46 }
 0x3c7   : >>> { %8628 = vmatmul.mubr.bf16.gmra.mxu0 %v4002_v50 }
 0x3c8   : >>> { %8660 = vmatmul.mubr.bf16.gmra.mxu1 %v4204_v7  ;;  %8676 = vmatpush3.bf16.msra.mxu0 %v9241_v46 }
 0x3c9   : >>> { %9019 = vmatpush3.bf16.msra.mxu1 %v9241_v46  ;;  %8677 = vmatprep.subr.bf16.mxu0 %v9242_v11 }
 0x3ca   : >>> { %9012 = vmatprep.subr.bf16.mxu1 %v9242_v11  ;;  %8679 = vmatprep.mubr.bf16.mxu0 %v10688_v5 }
 0x3cb   : >>> { %8687 = vmatprep.mubr.bf16.mxu1 %v10795_v39 }
 0x3cc   : >>> { %8678 = vmatpush3.bf16.msra.mxu0 %v9242_v11 }
 0x3cd   : >>> { %9020 = vmatpush3.bf16.msra.mxu1 %v9242_v11 }
 0x3cf   : >>> { %8680 = vmatmul.mubr.bf16.vlgmr.msra.gmra.mxu0 %v10702_v14 }
 0x3d0   : >>> { %8688 = vmatmul.mubr.bf16.vlgmr.msra.gmra.mxu1 %v10809_v13  ;;  %8683 = vmatprep.mubr.bf16.mxu0 %v10714_v12 }
 0x3d1   : >>> { %8691 = vmatprep.mubr.bf16.mxu1 %v4405_v44 }
 0x3d7   : >>> { %8684 = vmatmul.mubr.bf16.gmra.mxu0 %v10732_v20 }
 0x3d8   : >>> { %8692 = vmatmul.mubr.bf16.gmra.mxu1 %v4406_v23 }
 0x40f   : >>> { %v8425_v5 = vpop.f32.mrf.mxu0 }
 0x410   : >>> { %v8457_v29 = vpop.f32.mrf.mxu1 }
 0x411   : >>> { %v3111_v36 = vadd.f32 %v8457_v29, %v8425_v5  ;;  %v2957_v63 = vpop.f32.mrf.mxu0 }
 0x412   : >>> { %v3102_v33 = vpop.f32.mrf.mxu1 }
 0x413   : >>> { %v3103_v4 = vadd.f32 %v3102_v33, %v2957_v63  ;;  %v8426_v15 = vpop.f32.mrf.mxu0 }
 0x414   : >>> { %v8458_v16 = vpop.f32.mrf.mxu1 }
 0x415   : >>> { %v3114_v14 = vadd.f32 %v8458_v16, %v8426_v15  ;;  %v2960_v51 = vpop.f32.mrf.mxu0 }
 0x416   : >>> { %v3105_v37 = vpop.f32.mrf.mxu1 }
 0x417   : >>> { %v3106_v31 = vadd.f32 %v3105_v37, %v2960_v51  ;;  %v8429_v12 = vpop.f32.mrf.mxu0 }
 0x418   : >>> { %v8461_v22 = vpop.f32.mrf.mxu1 }
 0x419   : >>> { %v3127_v62 = vadd.f32 %v8461_v22, %v8429_v12  ;;  %v2973_v6 = vpop.f32.mrf.mxu0 }
 0x41a   : >>> { %v3118_v45 = vpop.f32.mrf.mxu1 }
 0x41b   : >>> { %v3119_v60 = vadd.f32 %v3118_v45, %v2973_v6  ;;  %v8430_v20 = vpop.f32.mrf.mxu0 }
 0x41c   : >>> { %v8462_v32 = vpop.f32.mrf.mxu1 }
 0x41d   : >>> { %v3130_v47 = vadd.f32 %v8462_v32, %v8430_v20  ;;  %v2976_v41 = vpop.f32.mrf.mxu0 }
 0x41e   : >>> { %v3121_v48 = vpop.f32.mrf.mxu1 }
 0x41f   : >>> { %v3122_v35 = vadd.f32 %v3121_v48, %v2976_v41  ;;  %v8433_v25 = vpop.f32.mrf.mxu0 }
 0x420   : >>> { %v8465_v49 = vpop.f32.mrf.mxu1 }
 0x421   : >>> { %v3143_v53 = vadd.f32 %v8465_v49, %v8433_v25  ;;  %v2989_v39 = vpop.f32.mrf.mxu0 }
 0x422   : >>> { %v3134_v1 = vpop.f32.mrf.mxu1 }
 0x423   : >>> { %v3135_v30 = vadd.f32 %v3134_v1, %v2989_v39  ;;  %v8434_v19 = vpop.f32.mrf.mxu0 }
 0x424   : >>> { %v8466_v26 = vpop.f32.mrf.mxu1 }
 0x425   : >>> { %v3146_v56 = vadd.f32 %v8466_v26, %v8434_v19  ;;  %v2992_v55 = vpop.f32.mrf.mxu0 }
 0x426   : >>> { %v3137_v40 = vpop.f32.mrf.mxu1 }
 0x427   : >>> { %v3138_v13 = vadd.f32 %v3137_v40, %v2992_v55  ;;  %v8437_v59 = vpop.f32.mrf.mxu0 }
 0x428   : >>> { %v8469_v34 = vpop.f32.mrf.mxu1 }
 0x429   : >>> { %v3159_v58 = vadd.f32 %v8469_v34, %v8437_v59  ;;  %v3005_v2 = vpop.f32.mrf.mxu0 }
 0x42a   : >>> { %v3150_v21 = vpop.f32.mrf.mxu1 }
 0x42b   : >>> { %v3151_v57 = vadd.f32 %v3150_v21, %v3005_v2  ;;  %v8438_v27 = vpop.f32.mrf.mxu0 }
 0x42c   : >>> { %v8470_v54 = vpop.f32.mrf.mxu1 }
 0x42d   : >>> { %v3162_v28 = vadd.f32 %v8470_v54, %v8438_v27  ;;  %v3008_v18 = vpop.f32.mrf.mxu0 }
 0x42e   : >>> { %v3153_v38 = vpop.f32.mrf.mxu1 }
 0x42f   : >>> { %v3154_v8 = vadd.f32 %v3153_v38, %v3008_v18  ;;  %v8489_v17 = vpop.f32.mrf.mxu0 }
 0x430   : >>> { %v3353_v24 = vadd.f32 %v8489_v17, %v3111_v36  ;;  %v8521_v0 = vpop.f32.mrf.mxu1 }
 0x431   : >>> { %v3288_v3 = vpop.f32.mrf.mxu0 }
 0x432   : >>> { %v10870_v52 = vadd.f32 %v8521_v0, %v3353_v24  ;;  %v3351_v42 = vadd.f32 %v3288_v3, %v3103_v4  ;;  %v3493_v46 = vpop.f32.mrf.mxu1 }
 0x433   : >>> { %v8490_v50 = vpop.f32.mrf.mxu0 }
 0x434   : >>> { %v10872_v7 = vadd.f32 %v3493_v46, %v3351_v42  ;;  %v3354_v11 = vadd.f32 %v8490_v50, %v3114_v14  ;;  %v8522_v43 = vpop.f32.mrf.mxu1 }
 0x435   : >>> { %v3291_v9 = vpop.f32.mrf.mxu0 }
 0x436   : >>> { %v10874_v44 = vadd.f32 %v8522_v43, %v3354_v11  ;;  %v3352_v61 = vadd.f32 %v3291_v9, %v3106_v31  ;;  %v3496_v10 = vpop.f32.mrf.mxu1 }
 0x437   : >>> { %v8493_v23 = vpop.f32.mrf.mxu0 }
 0x438   : >>> { %v10876_v5 = vadd.f32 %v3496_v10, %v3352_v61  ;;  %v3357_v29 = vadd.f32 %v8493_v23, %v3127_v62  ;;  %v8525_v36 = vpop.f32.mrf.mxu1 }
 0x439   : >>> { %v3304_v63 = vpop.f32.mrf.mxu0 }
 0x43a   : >>> { %v10878_v33 = vadd.f32 %v8525_v36, %v3357_v29  ;;  %v3355_v4 = vadd.f32 %v3304_v63, %v3119_v60  ;;  %v3509_v15 = vpop.f32.mrf.mxu1 }
 0x43b   : >>> { %v8494_v16 = vpop.f32.mrf.mxu0 }
 0x43c   : >>> { %v10880_v51 = vadd.f32 %v3509_v15, %v3355_v4  ;;  %v3358_v14 = vadd.f32 %v8494_v16, %v3130_v47  ;;  %v8526_v37 = vpop.f32.mrf.mxu1 }
 0x43d   : >>> { %v3307_v12 = vpop.f32.mrf.mxu0 }
 0x43e   : >>> { %v10882_v22 = vadd.f32 %v8526_v37, %v3358_v14  ;;  %v3356_v31 = vadd.f32 %v3307_v12, %v3122_v35  ;;  %v3512_v6 = vpop.f32.mrf.mxu1 }
 0x43f   : >>> { %v8497_v45 = vpop.f32.mrf.mxu0 }
 0x440   : >>> { %v10884_v20 = vadd.f32 %v3512_v6, %v3356_v31  ;;  %v3361_v62 = vadd.f32 %v8497_v45, %v3143_v53  ;;  %v8529_v32 = vpop.f32.mrf.mxu1 }
 0x441   : >>> { %v3320_v41 = vpop.f32.mrf.mxu0 }
 0x442   : >>> { %v10886_v48 = vadd.f32 %v8529_v32, %v3361_v62  ;;  %v3359_v60 = vadd.f32 %v3320_v41, %v3135_v30  ;;  %v3525_v25 = vpop.f32.mrf.mxu1 }
 0x443   : >>> { %v8498_v49 = vpop.f32.mrf.mxu0 }
 0x444   : >>> { %v10888_v39 = vadd.f32 %v3525_v25, %v3359_v60  ;;  %v3362_v47 = vadd.f32 %v8498_v49, %v3146_v56  ;;  %v8530_v1 = vpop.f32.mrf.mxu1 }
 0x445   : >>> { %v3323_v19 = vpop.f32.mrf.mxu0 }
 0x446   : >>> { %v10890_v26 = vadd.f32 %v8530_v1, %v3362_v47  ;;  %v3360_v35 = vadd.f32 %v3323_v19, %v3138_v13  ;;  %v3528_v55 = vpop.f32.mrf.mxu1 }
 0x447   : >>> { %v8501_v40 = vpop.f32.mrf.mxu0 }
 0x448   : >>> { %v10892_v59 = vadd.f32 %v3528_v55, %v3360_v35  ;;  %v3365_v53 = vadd.f32 %v8501_v40, %v3159_v58  ;;  %v8533_v34 = vpop.f32.mrf.mxu1 }
 0x449   : >>> { %v3336_v2 = vpop.f32.mrf.mxu0 }
 0x44a   : >>> { %v10894_v21 = vadd.f32 %v8533_v34, %v3365_v53  ;;  %v3363_v30 = vadd.f32 %v3336_v2, %v3151_v57  ;;  %v3541_v27 = vpop.f32.mrf.mxu1 }
 0x44b   : >>> { %v8502_v54 = vpop.f32.mrf.mxu0 }
 0x44c   : >>> { %v10896_v18 = vadd.f32 %v3541_v27, %v3363_v30  ;;  %v3366_v56 = vadd.f32 %v8502_v54, %v3162_v28  ;;  %v8534_v38 = vpop.f32.mrf.mxu1 }
 0x44d   : >>> { %v3339_v17 = vpop.f32.mrf.mxu0 }
 0x44e   : >>> { %v10898_v24 = vadd.f32 %v8534_v38, %v3366_v56  ;;  %v3364_v13 = vadd.f32 %v3339_v17, %v3154_v8  ;;  %v3544_v0 = vpop.f32.mrf.mxu1 }
 0x44f   : >>> { %v8553_v3 = vpop.f32.mrf.mxu0 }
 0x450   : >>> { %v10900_v42 = vadd.f32 %v3544_v0, %v3364_v13  ;;  %v10902_v58 = vpop.f32.mrf.mxu1 }
 0x451   : >>> { %v3695_v46 = vpop.f32.mrf.mxu0 }
 0x452   : >>> { %v3897_v50 = vpop.f32.mrf.mxu1 }
 0x453   : >>> { %v8554_v11 = vpop.f32.mrf.mxu0 }
 0x454   : >>> { %v8586_v57 = vpop.f32.mrf.mxu1 }
 0x455   : >>> { %v3698_v43 = vpop.f32.mrf.mxu0 }
 0x456   : >>> { %v3900_v9 = vpop.f32.mrf.mxu1 }
 0x457   : >>> { %v8557_v61 = vpop.f32.mrf.mxu0 }
 0x458   : >>> { %v8589_v10 = vpop.f32.mrf.mxu1 }
 0x459   : >>> { %v3711_v28 = vpop.f32.mrf.mxu0 }
 0x45a   : >>> { %v3913_v23 = vpop.f32.mrf.mxu1 }
 0x45b   : >>> { %v8558_v29 = vpop.f32.mrf.mxu0 }
 0x45c   : >>> { %v8590_v36 = vpop.f32.mrf.mxu1 }
 0x45d   : >>> { %v3714_v63 = vpop.f32.mrf.mxu0 }
 0x45e   : >>> { %v10904_v8 = vpop.f32.mrf.mxu1 }
 0x45f   : >>> { %v8561_v4 = vpop.f32.mrf.mxu0 }
 0x460   : >>> { %v8593_v15 = vpop.f32.mrf.mxu1 }
 0x461   : >>> { %v3727_v16 = vpop.f32.mrf.mxu0 }
 0x462   : >>> { %v10906_v14 = vpop.f32.mrf.mxu1 }
 0x463   : >>> { %v8562_v37 = vpop.f32.mrf.mxu0 }
 0x464   : >>> { %v10908_v12 = vpop.f32.mrf.mxu1 }
 0x465   : >>> { %v3730_v31 = vpop.f32.mrf.mxu0 }
 0x466   : >>> { %v10910_v6 = vpop.f32.mrf.mxu1 }
 0x467   : >>> { %11723 = vst [vmem:[#allocation22_spill] sm:$0xff] %v10910_v6  ;;  %v8565_v45 = vpop.f32.mrf.mxu0 }
 0x468   : >>> { %v10912_v62 = vpop.f32.mrf.mxu1 }
 0x469   : >>> { %11724 = vst [vmem:[#allocation23_spill] sm:$0xff] %v10912_v62  ;;  %v3743_v32 = vpop.f32.mrf.mxu0  ;;  %v3768_v62 = vadd.f32 %v8561_v4, %v10886_v48 }
 0x46a   : >>> { %v10914_v41 = vpop.f32.mrf.mxu1 }
 0x46b   : >>> { %11725 = vst [vmem:[#allocation24_spill] sm:$0xff] %v10914_v41  ;;  %v8566_v60 = vpop.f32.mrf.mxu0  ;;  %v3970_v48 = vadd.f32 %v8593_v15, %v3768_v62 }
 0x46c   : >>> { %v10916_v25 = vpop.f32.mrf.mxu1 }
 0x46d   : >>> { %11726 = vst [vmem:[#allocation25_spill] sm:$0xff] %v10916_v25  ;;  %v3746_v49 = vpop.f32.mrf.mxu0  ;;  %v3761_v25 = vadd.f32 %v8554_v11, %v10874_v44  ;;  %v3763_v11 = vadd.f32 %v3714_v63, %v10884_v20 }
 0x46e   : >>> { %v10918_v47 = vpop.f32.mrf.mxu1 }
 0x46f   : >>> { %11727 = vst [vmem:[#allocation26_spill] sm:$0xff] %v10918_v47  ;;  %v8617_v1 = vpop.f32.mrf.mxu0  ;;  %v3963_v44 = vadd.f32 %v8586_v57, %v3761_v25 }
 0x470   : >>> { %v10920_v19 = vpop.f32.mrf.mxu1 }
 0x471   : >>> { %11728 = vst [vmem:[#allocation27_spill] sm:$0xff] %v10920_v19  ;;  %v4102_v35 = vpop.f32.mrf.mxu0 }
 0x472   : >>> { %v10922_v55 = vpop.f32.mrf.mxu1  ;;  %v11741_v62 = vld [vmem:[#allocation24_spill] sm:$0xff] }
 0x473   : >>> { %11729 = vst [vmem:[#allocation28_spill] sm:$0xff] %v10922_v55  ;;  %v8618_v40 = vpop.f32.mrf.mxu0 }
 0x474   : >>> { %v10924_v53 = vpop.f32.mrf.mxu1  ;;  %v4168_v63 = vadd.f32 %v8618_v40, %v3963_v44  ;;  %v4597_v44 = vld [vmem:[%s10990_s20 + $0x50] sm:$0xff] }
 0x475   : >>> { %11730 = vst [vmem:[#allocation29_spill] sm:$0xff] %v10924_v53  ;;  %v4105_v34 = vpop.f32.mrf.mxu0 }
 0x476   : >>> { %v10926_v2 = vpop.f32.mrf.mxu1 }
 0x477   : >>> { %11731 = vst [vmem:[#allocation30_spill] sm:$0xff] %v10926_v2  ;;  %v8621_v30 = vpop.f32.mrf.mxu0  ;;  %v3760_v2 = vadd.f32 %v8553_v3, %v10870_v52 }
 0x478   : >>> { %v10928_v27 = vpop.f32.mrf.mxu1  ;;  %v11743_v25 = vld [vmem:[#allocation27_spill] sm:$0xff] }
 0x479   : >>> { %11732 = vst [vmem:[#allocation31_spill] sm:$0xff] %v10928_v27  ;;  %v4118_v54 = vpop.f32.mrf.mxu0  ;;  %v3758_v27 = vadd.f32 %v3695_v46, %v10872_v7  ;;  %v3962_v52 = vadd.f32 %v10902_v58, %v3760_v2  ;;  %v3772_v58 = vadd.f32 %v8565_v45, %v10894_v21 }
 0x47a   : >>> { %v10930_v56 = vpop.f32.mrf.mxu1 }
 0x47b   : >>> { %11733 = vst [vmem:[#allocation32_spill] sm:$0xff] %v10930_v56  ;;  %v10932_v38 = vpop.f32.mrf.mxu0  ;;  %v3960_v7 = vadd.f32 %v3897_v50, %v3758_v27  ;;  %v3773_v50 = vadd.f32 %v8566_v60, %v10898_v24  ;;  %v4167_v57 = vadd.f32 %v8617_v1, %v3962_v52  ;;  %v11739_v24 = vld [vmem:[#allocation22_spill] sm:$0xff]  ;;  %v11742_v60 = vld [vmem:[#allocation25_spill] sm:$0xff] }
 0x47c   : >>> { %11734 = vst [vmem:[#allocation33_spill] sm:$0xff] %v10932_v38  ;;  %v10934_v17 = vpop.f32.mrf.mxu1  ;;  %v3759_v38 = vadd.f32 %v3698_v43, %v10876_v5  ;;  %v3766_v5 = vadd.f32 %v3727_v16, %v10888_v39  ;;  %v3770_v39 = vadd.f32 %v3743_v32, %v10896_v18  ;;  %v11746_v27 = vld [vmem:[#allocation29_spill] sm:$0xff] }
 0x47d   : >>> { %11735 = vst [vmem:[#allocation34_spill] sm:$0xff] %v10934_v17  ;;  %v10936_v13 = vpop.f32.mrf.mxu0  ;;  %v3764_v17 = vadd.f32 %v8557_v61, %v10878_v33  ;;  %v3769_v61 = vadd.f32 %v8562_v37, %v10890_v26 }
 0x47e   : >>> { %11736 = vst [vmem:[#allocation35_spill] sm:$0xff] %v10936_v13  ;;  %v10938_v0 = vpop.f32.mrf.mxu1  ;;  %v3762_v13 = vadd.f32 %v3711_v28, %v10880_v51  ;;  %v3961_v33 = vadd.f32 %v3900_v9, %v3759_v38  ;;  %v3767_v28 = vadd.f32 %v3730_v31, %v10892_v59  ;;  %v3968_v20 = vadd.f32 %v10906_v14, %v3766_v5  ;;  %v11747_v38 = vld [vmem:[#allocation30_spill] sm:$0xff] }
 0x47f   : >>> { %11737 = vst [vmem:[#allocation36_spill] sm:$0xff] %v10938_v0  ;;  %v8625_v55 = vpop.f32.mrf.mxu0  ;;  %v3765_v0 = vadd.f32 %v8558_v29, %v10882_v22  ;;  %v3966_v46 = vadd.f32 %v8589_v10, %v3764_v17  ;;  %v3771_v10 = vadd.f32 %v3746_v49, %v10900_v42  ;;  %v3965_v59 = vadd.f32 %v10904_v8, %v3763_v11  ;;  %v11740_v42 = vld [vmem:[#allocation23_spill] sm:$0xff] }
 0x480   : >>> { %v8657_v47 = vpop.f32.mrf.mxu1  ;;  %v3964_v51 = vadd.f32 %v3913_v23, %v3762_v13  ;;  %v4165_v23 = vadd.f32 %v4102_v35, %v3960_v7  ;;  %v4166_v4 = vadd.f32 %v4105_v34, %v3961_v33  ;;  %v3971_v18 = vadd.f32 %v10908_v12, %v3769_v61  ;;  %v11744_v35 = vld [vmem:[#allocation26_spill] sm:$0xff]  ;;  %v11745_v12 = vld [vmem:[#allocation28_spill] sm:$0xff]  ;;  %v11748_v13 = vld [vmem:[#allocation31_spill] sm:$0xff] }
 0x481   : >>> { %v4134_v53 = vpop.f32.mrf.mxu0  ;;  %v3967_v22 = vadd.f32 %v8590_v36, %v3765_v0  ;;  %v4175_v36 = vadd.f32 %v8625_v55, %v3970_v48  ;;  %v4171_v21 = vadd.f32 %v8621_v30, %v3966_v46  ;;  %v3969_v16 = vadd.f32 %v11739_v24, %v3767_v28  ;;  %v4589_v30 = vld [vmem:[%s10990_s20 + $0x10] sm:$0xff]  ;;  %v4587_v48 = vld [vmem:[%s10990_s20] sm:$0xff] }
 0x482   : >>> { %v10940_v19 = vpop.f32.mrf.mxu1  ;;  %v4169_v37 = vadd.f32 %v4118_v54, %v3964_v51  ;;  %v4173_v14 = vadd.f32 %v4134_v53, %v3968_v20  ;;  %v3974_v45 = vadd.f32 %v11740_v42, %v3772_v58  ;;  %v3972_v32 = vadd.f32 %v11741_v62, %v3770_v39  ;;  %v4595_v20 = vld [vmem:[%s10990_s20 + $0x40] sm:$0xff] }
 0x483   : >>> { %11738 = vst [vmem:[#allocation37_spill] sm:$0xff] %v10940_v19  ;;  %v8626_v56 = vpop.f32.mrf.mxu0  ;;  %v3975_v8 = vadd.f32 %v11742_v60, %v3773_v50  ;;  %v4369_v49 = vadd.f32 %v11743_v25, %v4167_v57  ;;  %v10985_v55 = vadd.f32 %v11744_v35, %v3771_v10  ;;  %v4367_v40 = vadd.f32 %v11745_v12, %v4165_v23  ;;  %v11751_v61 = vld [vmem:[#allocation33_spill] sm:$0xff] }
 0x484   : >>> { %v10948_v41 = vpop.f32.mrf.mxu1  ;;  %v4377_v34 = vadd.f32 %v8657_v47, %v4175_v36  ;;  %v4176_v2 = vadd.f32 %v8626_v56, %v3971_v18  ;;  %v4370_v54 = vadd.f32 %v11746_v27, %v4168_v63  ;;  %v4368_v17 = vadd.f32 %v11747_v38, %v4166_v4  ;;  %v11749_v47 = vld [vmem:[#allocation32_spill] sm:$0xff] }
 0x485   : >>> { %v4137_v19 = vpop.f32.mrf.mxu0  ;;  %v4373_v0 = vadd.f32 %v11748_v13, %v4171_v21  ;;  %v10998_v56 = vadd.f32 %v11749_v47, %v4169_v37  ;;  %v4172_v28 = vadd.f32 %v11751_v61, %v3967_v22  ;;  %v11752_v10 = vld [vmem:[#allocation35_spill] sm:$0xff]  ;;  %v4590_v21 = vld [vmem:[%s10990_s20 + $0x18] sm:$0xff]  ;;  %v11753_v47 = vld [vmem:[#allocation34_spill] sm:$0xff] }
 0x486   : >>> { %v10952_v6 = vpop.f32.mrf.mxu1  ;;  %v4174_v46 = vadd.f32 %v4137_v19, %v3969_v16  ;;  %v4170_v23 = vadd.f32 %v11752_v10, %v3965_v59  ;;  %v4378_v36 = vadd.f32 %v10948_v41, %v4176_v2  ;;  %v4598_v37 = vld [vmem:[%s10990_s20 + $0x58] sm:$0xff]  ;;  %v4588_v41 = vld [vmem:[%s10990_s20 + $0x8] sm:$0xff]  ;;  %v4593_v2 = vld [vmem:[%s10990_s20 + $0x30] sm:$0xff] }
 0x487   : >>> { %v8629_v3 = vpop.f32.mrf.mxu0  ;;  %v4602_v10 = vld [vmem:[%s10990_s20 + $0x78] sm:$0xff] }
 0x488   : >>> { %v10957_v43 = vpop.f32.mrf.mxu1  ;;  %v4179_v58 = vadd.f32 %v8629_v3, %v3974_v45 }
 0x489   : >>> { %v4150_v29 = vpop.f32.mrf.mxu0 }
 0x48a   : >>> { %v10965_v9 = vpop.f32.mrf.mxu1  ;;  %v11750_v5 = vld [vmem:[#allocation37_spill] sm:$0xff]  ;;  %v4177_v18 = vadd.f32 %v4150_v29, %v3972_v32  ;;  %v4381_v60 = vadd.f32 %v10957_v43, %v4179_v58 }
 0x48b   : >>> { %v10969_v26 = vpop.f32.mrf.mxu0  ;;  %v4375_v33 = vadd.f32 %v11750_v5, %v4173_v14  ;;  %v4376_v14 = vadd.f32 %v10952_v6, %v4174_v46  ;;  %v4594_v58 = vld [vmem:[%s10990_s20 + $0x38] sm:$0xff] }
 0x48c   : >>> { %v10972_v15 = vpop.f32.mrf.mxu1  ;;  %v4180_v35 = vadd.f32 %v10969_v26, %v3975_v8 }
 0x48d   : >>> { %v10976_v31 = vpop.f32.mrf.mxu0 }
 0x48e   : >>> { %v10982_v1 = vpop.f32.mrf.mxu1  ;;  %v4178_v26 = vadd.f32 %v10976_v31, %v10985_v55  ;;  %v4382_v31 = vadd.f32 %v10972_v15, %v4180_v35 }
 0x48f   : >>> { %v8681_v53 = vpop.f32.mrf.mxu0 }
 0x490   : >>> { %v4571_v52 = vadd.f32 %v8681_v53, %v4369_v49  ;;  %v8689_v7 = vpop.f32.mrf.mxu1  ;;  %v4596_v49 = vld [vmem:[%s10990_s20 + $0x48] sm:$0xff]  ;;  %v4379_v53 = vadd.f32 %v10965_v9, %v4177_v18  ;;  %v4374_v9 = vadd.f32 %v11753_v47, %v4172_v28  ;;  %v11754_v28 = vld [vmem:[#allocation36_spill] sm:$0xff]  ;;  %v4380_v15 = vadd.f32 %v10982_v1, %v4178_v26 }
 0x491   : >>> { %v4579_v51 = vadd.f32 %v8689_v7, %v4377_v34  ;;  %v4506_v11 = vpop.f32.mrf.mxu0 }
 0x492   : >>> { %v4605_v39 = vadd.f32 %v4589_v30, %v4571_v52  ;;  %v4569_v50 = vadd.f32 %v4506_v11, %v4367_v40  ;;  %v4538_v57 = vpop.f32.mrf.mxu1 }
 0x493   : >>> { %v4613_v63 = vadd.f32 %v4597_v44, %v4579_v51  ;;  %v4577_v4 = vadd.f32 %v4538_v57, %v4375_v33  ;;  %v8682_v19 = vpop.f32.mrf.mxu0  ;;  %v4591_v44 = vld [vmem:[%s10990_s20 + $0x20] sm:$0xff] }
 0x494   : >>> { %v4621_v24 = vmax.f32 %v4605_v39, 0.0  ;;  %v4603_v16 = vadd.f32 %v4587_v48, %v4569_v50  ;;  %v4572_v22 = vadd.f32 %v8682_v19, %v4370_v54  ;;  %v8690_v3 = vpop.f32.mrf.mxu1  ;;  %v4599_v51 = vld [vmem:[%s10990_s20 + $0x60] sm:$0xff]  ;;  %v4372_v39 = vadd.f32 %v11754_v28, %v4170_v23 }
 0x495   : >>> { %v4629_v42 = vmax.f32 %v4613_v63, 0.0  ;;  %v4611_v45 = vadd.f32 %v4595_v20, %v4577_v4  ;;  %v4580_v59 = vadd.f32 %v8690_v3, %v4378_v36  ;;  %v4509_v62 = vpop.f32.mrf.mxu0 }
 0x496   : >>> { %7327 = vst [vmem:[%s11013_s23 + $0x48] sm:$0xff] %v4621_v24  ;;  %v4619_v29 = vmax.f32 %v4603_v16, 0.0  ;;  %v4606_v32 = vadd.f32 %v4590_v21, %v4572_v22  ;;  %v4570_v25 = vadd.f32 %v4509_v62, %v4368_v17  ;;  %v4541_v6 = vpop.f32.mrf.mxu1  ;;  %v4601_v17 = vld [vmem:[%s10990_s20 + $0x70] sm:$0xff]  ;;  %v4592_v21 = vld [vmem:[%s10990_s20 + $0x28] sm:$0xff] }
 0x497   : >>> { %7335 = vst [vmem:[%s11013_s23 + $0xa8] sm:$0xff] %v4629_v42  ;;  %v4627_v12 = vmax.f32 %v4611_v45, 0.0  ;;  %v4614_v40 = vadd.f32 %v4598_v37, %v4580_v59  ;;  %v4578_v43 = vadd.f32 %v4541_v6, %v4376_v14  ;;  %v8685_v34 = vpop.f32.mrf.mxu0  ;;  %v4600_v22 = vld [vmem:[%s10990_s20 + $0x68] sm:$0xff] }
 0x498   : >>> { %7325 = vst [vmem:[%s11013_s23 + $0x38] sm:$0xff] %v4619_v29  ;;  %v4622_v30 = vmax.f32 %v4606_v32, 0.0  ;;  %v4604_v27 = vadd.f32 %v4588_v41, %v4570_v25  ;;  %v4575_v54 = vadd.f32 %v8685_v34, %v4373_v0  ;;  %v8693_v38 = vpop.f32.mrf.mxu1 }
 0x499   : >>> { %7333 = vst [vmem:[%s11013_s23 + $0x98] sm:$0xff] %v4627_v12  ;;  %v4630_v8 = vmax.f32 %v4614_v40, 0.0  ;;  %v4612_v13 = vadd.f32 %v4596_v49, %v4578_v43  ;;  %v4583_v52 = vadd.f32 %v8693_v38, %v4381_v60  ;;  %v4522_v7 = vpop.f32.mrf.mxu0 }
 0x49a   : >>> { %7328 = vst [vmem:[%s11013_s23 + $0x50] sm:$0xff] %v4622_v30  ;;  %v4620_v5 = vmax.f32 %v4604_v27, 0.0  ;;  %v4609_v0 = vadd.f32 %v4593_v2, %v4575_v54  ;;  %v4573_v33 = vadd.f32 %v4522_v7, %v10998_v56  ;;  %v4554_v46 = vpop.f32.mrf.mxu1 }
 0x49b   : >>> { %7336 = vst [vmem:[%s11013_s23 + $0xb0] sm:$0xff] %v4630_v8  ;;  %v4628_v55 = vmax.f32 %v4612_v13, 0.0  ;;  %v4617_v11 = vadd.f32 %v4601_v17, %v4583_v52  ;;  %v4581_v48 = vadd.f32 %v4554_v46, %v4379_v53  ;;  %v8686_v61 = vpop.f32.mrf.mxu0 }
 0x49c   : >>> { %7326 = vst [vmem:[%s11013_s23 + $0x40] sm:$0xff] %v4620_v5  ;;  %v4625_v50 = vmax.f32 %v4609_v0, 0.0  ;;  %v4607_v57 = vadd.f32 %v4591_v44, %v4573_v33  ;;  %v4576_v56 = vadd.f32 %v8686_v61, %v4374_v9  ;;  %v8694_v20 = vpop.f32.mrf.mxu1 }
 0x49d   : >>> { %7334 = vst [vmem:[%s11013_s23 + $0xa0] sm:$0xff] %v4628_v55  ;;  %v4633_v36 = vmax.f32 %v4617_v11, 0.0  ;;  %v4615_v63 = vadd.f32 %v4599_v51, %v4581_v48  ;;  %v4584_v4 = vadd.f32 %v8694_v20, %v4382_v31  ;;  %v4525_v19 = vpop.f32.mrf.mxu0 }
 0x49e   : >>> { %7331 = vst [vmem:[%s11013_s23 + $0x78] sm:$0xff] %v4625_v50  ;;  %v4623_v23 = vmax.f32 %v4607_v57, 0.0  ;;  %v4610_v18 = vadd.f32 %v4594_v58, %v4576_v56  ;;  %v4574_v24 = vadd.f32 %v4525_v19, %v4372_v39  ;;  %v4557_v16 = vpop.f32.mrf.mxu1 }
 0x49f   : >>> { %7339 = vst [vmem:[%s11013_s23 + $0xd8] sm:$0xff] %v4633_v36  ;;  %v4631_v1 = vmax.f32 %v4615_v63, 0.0  ;;  %v4618_v3 = vadd.f32 %v4602_v10, %v4584_v4  ;;  %v4582_v37 = vadd.f32 %v4557_v16, %v4380_v15 }
 0x4a0   : >>> { %7329 = vst [vmem:[%s11013_s23 + $0x68] sm:$0xff] %v4623_v23  ;;  %v4626_v14 = vmax.f32 %v4610_v18, 0.0  ;;  %v4608_v42 = vadd.f32 %v4592_v21, %v4574_v24 }
 0x4a1   : >>> { %7337 = vst [vmem:[%s11013_s23 + $0xc8] sm:$0xff] %v4631_v1  ;;  %v4634_v45 = vmax.f32 %v4618_v3, 0.0  ;;  %v4616_v59 = vadd.f32 %v4600_v22, %v4582_v37  ;;  %2789 = sbr.rel (!%p2787_p6) target bundleno = 814 (0x32e), region = 175 }
 0x4a2   : >>> { %7332 = vst [vmem:[%s11013_s23 + $0x80] sm:$0xff] %v4626_v14  ;;  %v4624_v62 = vmax.f32 %v4608_v42, 0.0 }
 0x4a3   : >>> { %7340 = vst [vmem:[%s11013_s23 + $0xe0] sm:$0xff] %v4634_v45  ;;  %v4632_v41 = vmax.f32 %v4616_v59, 0.0 }
 0x4a4   : >>> { %7330 = vst [vmem:[%s11013_s23 + $0x70] sm:$0xff] %v4624_v62 }
 0x4a5   : >>> { %7338 = vst [vmem:[%s11013_s23 + $0xd0] sm:$0xff] %v4632_v41 }
 0x4a6   : > { %950 = sbr.rel (!%p948_p7) target bundleno = 439 (0x1b7), region = 186  ;;  %s11055_s11 = smov (%p948_p7), 0  }
 0x4ab LB: >> { %v9243_v60 = vld [vmem:[%s11686_s5 + $0x78] sm:$0xff]   ;;  %v9245_v32 = vld [vmem:[%s11686_s5 + $0x70] sm:$0xff]   ;;  %v9247_v6 = vld [vmem:[%s11686_s5 + $0x68] sm:$0xff]   ;;  %s7342_s19 = smul.u32 192, %s9361_s11  ;;  %vm6487_vm2 = vcmask 31744   ;;  %s9361_s11 = sphi %s11055_s11, %s4657_s11  }
 0x4ac   : >> { %v9244_v29 = vld [vmem:[%s11686_s5 + $0x38] sm:$0xff]   ;;  %8695 = vmatprep.subr.bf16.mxu0 %v9243_v60  ;;  %v9246_v25 = vld [vmem:[%s11686_s5 + $0x30] sm:$0xff]   ;;  %v9248_v49 = vld [vmem:[%s11686_s5 + $0x28] sm:$0xff]  }
 0x4ad   : >> { %8727 = vmatprep.subr.bf16.mxu1 %v9244_v29  ;;  %8696 = vmatpush3.bf16.msra.mxu0 %v9243_v60  ;;  %v9249_v35 = vld [vmem:[%s11686_s5 + $0x60] sm:$0xff]   ;;  %v9251_v40 = vld [vmem:[%s11686_s5 + $0x58] sm:$0xff]   ;;  %v9253_v34 = vld [vmem:[%s11686_s5 + $0x50] sm:$0xff]   ;;  %s11094_s22 = scalar_lea.vmem [#allocation2], %s7342_s19 }
 0x4ae   : >> { %8728 = vmatpush3.bf16.msra.mxu1 %v9244_v29  ;;  %8697 = vmatprep.subr.bf16.mxu0 %v9245_v32  ;;  %v9250_v12 = vld [vmem:[%s11686_s5 + $0x20] sm:$0xff]   ;;  %v9252_v43 = vld [vmem:[%s11686_s5 + $0x18] sm:$0xff]   ;;  %v4701_v2 = vld [vmem:[%s11094_s22 + $0x8] sm:$0xff] }
 0x4af   : >> { %8729 = vmatprep.subr.bf16.mxu1 %v9246_v25  ;;  %v4702_v53 = vld [vmem:[%s11094_s22 + $0x10] sm:$0xff]  ;;  %v4661_v30 = vld [vmem:[%s11094_s22 + $0x7] sm:$0xff]  ;;  %v4703_v7 = vld [vmem:[%s11094_s22 + $0x18] sm:$0xff] }
 0x4b0   : >> { %v9254_v27 = vld [vmem:[%s11686_s5 + $0x10] sm:$0xff]   ;;  %v4717_v54 = vpack.c.bf16 %v4702_v53, %v4701_v2  ;;  %v9255_v26 = vld [vmem:[%s11686_s5 + $0x48] sm:$0xff]   ;;  %v9257_v13 = vld [vmem:[%s11686_s5 + $0x40] sm:$0xff]  }
 0x4b1   : >> { %8698 = vmatpush3.bf16.msra.mxu0 %v9245_v32  ;;  %v4662_v38 = vld [vmem:[%s11094_s22 + $0xf] sm:$0xff]  ;;  %v9258_v52 = vld [vmem:[%s11686_s5] sm:$0xff]   ;;  %v4663_v47 = vld [vmem:[%s11094_s22 + $0x17] sm:$0xff] }
 0x4b2   : >> { %8730 = vmatpush3.bf16.msra.mxu1 %v9246_v25  ;;  %8699 = vmatprep.subr.bf16.mxu0 %v9247_v6  ;;  %v4677_v17 = vpack.c.bf16 %v4662_v38, %v4661_v30  ;;  %v9256_v8 = vld [vmem:[%s11686_s5 + $0x8] sm:$0xff]   ;;  %v4704_v44 = vld [vmem:[%s11094_s22 + $0x20] sm:$0xff]  ;;  %v9259_v5 = vld [vmem:[%s11686_s5 + $0xb8] sm:$0xff]  }
 0x4b3   : >> { %8731 = vmatprep.subr.bf16.mxu1 %v9248_v49  ;;  %8711 = vmatprep.mubr.bf16.mxu0 %v4717_v54  ;;  %v4664_v9 = vld [vmem:[%s11094_s22 + $0x1f] sm:$0xff]  ;;  %v4718_v33 = vpack.c.bf16 %v4704_v44, %v4703_v7  ;;  %v4665_v55 = vld [vmem:[%s11094_s22 + $0x37] sm:$0xff]  ;;  %v4707_v39 = vld [vmem:[%s11094_s22 + $0x48] sm:$0xff] }
 0x4b4   : >> { %8743 = vmatprep.mubr.bf16.mxu1 %v4677_v17  ;;  %v9260_v0 = vld [vmem:[%s11686_s5 + $0xf8] sm:$0xff]   ;;  %v4706_v51 = vld [vmem:[%s11094_s22 + $0x40] sm:$0xff]  ;;  %v4678_v31 = vpack.c.bf16 %v4664_v9, %v4663_v47  ;;  %v9261_v48 = vld [vmem:[%s11686_s5 + $0xb0] sm:$0xff]  }
 0x4b5   : >> { %8700 = vmatpush3.bf16.msra.mxu0 %v9247_v6  ;;  %v4705_v46 = vld [vmem:[%s11094_s22 + $0x38] sm:$0xff]  ;;  %v9262_v61 = vld [vmem:[%s11686_s5 + $0xf0] sm:$0xff]   ;;  %v4667_v57 = vld [vmem:[%s11094_s22 + $0x47] sm:$0xff] }
 0x4b6   : >> { %8732 = vmatpush3.bf16.msra.mxu1 %v9248_v49  ;;  %8701 = vmatprep.subr.bf16.mxu0 %v9249_v35  ;;  %v4666_v11 = vld [vmem:[%s11094_s22 + $0x3f] sm:$0xff]  ;;  %v11135_v58 = vpack.c.bf16 %v4706_v51, %v4705_v46  ;;  %v4708_v50 = vld [vmem:[%s11094_s22 + $0x50] sm:$0xff]  ;;  %v9263_v20 = vld [vmem:[%s11686_s5 + $0xa8] sm:$0xff]  }
 0x4b7   : >> { %8733 = vmatprep.subr.bf16.mxu1 %v9250_v12  ;;  %v11137_v28 = vpack.c.bf16 %v4666_v11, %v4665_v55  ;;  %v4668_v56 = vld [vmem:[%s11094_s22 + $0x4f] sm:$0xff]  ;;  %v11152_v36 = vpack.c.bf16 %v4708_v50, %v4707_v39  ;;  %v9265_v63 = vld [vmem:[%s11686_s5 + $0xa0] sm:$0xff]   ;;  %v4711_v16 = vld [vmem:[%s11094_s22 + $0x78] sm:$0xff] }
 0x4b8   : >> { %v9264_v10 = vld [vmem:[%s11686_s5 + $0xe8] sm:$0xff]   ;;  %v4710_v4 = vld [vmem:[%s11094_s22 + $0x70] sm:$0xff]  ;;  %v11159_v21 = vpack.c.bf16 %v4668_v56, %v4667_v57  ;;  %v9266_v18 = vld [vmem:[%s11686_s5 + $0xe0] sm:$0xff]  }
 0x4b9   : >> { %8702 = vmatpush3.bf16.msra.mxu0 %v9249_v35  ;;  %v4709_v15 = vld [vmem:[%s11094_s22 + $0x68] sm:$0xff]  ;;  %v4712_v1 = vld [vmem:[%s11094_s22 + $0x80] sm:$0xff]  ;;  %v4671_v3 = vld [vmem:[%s11094_s22 + $0x77] sm:$0xff] }
 0x4ba   : >> { %8734 = vmatpush3.bf16.msra.mxu1 %v9250_v12  ;;  %8703 = vmatprep.subr.bf16.mxu0 %v9251_v40  ;;  %v4669_v19 = vld [vmem:[%s11094_s22 + $0x67] sm:$0xff]  ;;  %v4670_v23 = vld [vmem:[%s11094_s22 + $0x6f] sm:$0xff]  ;;  %v11165_v24 = vpack.c.bf16 %v4710_v4, %v4709_v15  ;;  %v4672_v37 = vld [vmem:[%s11094_s22 + $0x7f] sm:$0xff]  ;;  %v11185_v62 = vpack.c.bf16 %v4712_v1, %v4711_v16 }
 0x4bb   : >> { %8735 = vmatprep.subr.bf16.mxu1 %v9252_v43  ;;  %v11169_v22 = vpack.c.bf16 %v4670_v23, %v4669_v19  ;;  %v9267_v14 = vld [vmem:[%s11686_s5 + $0x98] sm:$0xff]   ;;  %v4714_v59 = vld [vmem:[%s11094_s22 + $0xa0] sm:$0xff]  ;;  %v11188_v60 = vpack.c.bf16 %v4672_v37, %v4671_v3  ;;  %v9269_v32 = vld [vmem:[%s11686_s5 + $0x90] sm:$0xff]  }
 0x4bc   : >> { %v9268_v42 = vld [vmem:[%s11686_s5 + $0xd8] sm:$0xff]   ;;  %v9270_v25 = vld [vmem:[%s11686_s5 + $0xd0] sm:$0xff]   ;;  %v4715_v49 = vld [vmem:[%s11094_s22 + $0xa8] sm:$0xff] }
 0x4bd   : >> { %8704 = vmatpush3.bf16.msra.mxu0 %v9251_v40  ;;  %v4713_v45 = vld [vmem:[%s11094_s22 + $0x98] sm:$0xff]  ;;  %v4716_v35 = vld [vmem:[%s11094_s22 + $0xb0] sm:$0xff]  ;;  %v4675_v40 = vld [vmem:[%s11094_s22 + $0xa7] sm:$0xff] }
 0x4be   : >> { %8736 = vmatpush3.bf16.msra.mxu1 %v9252_v43  ;;  %8705 = vmatprep.subr.bf16.mxu0 %v9253_v34  ;;  %v4673_v41 = vld [vmem:[%s11094_s22 + $0x97] sm:$0xff]  ;;  %v4674_v29 = vld [vmem:[%s11094_s22 + $0x9f] sm:$0xff]  ;;  %v11197_v6 = vpack.c.bf16 %v4714_v59, %v4713_v45  ;;  %v4676_v43 = vld [vmem:[%s11094_s22 + $0xaf] sm:$0xff]  ;;  %v11215_v53 = vpack.c.bf16 %v4716_v35, %v4715_v49 }
 0x4bf   : >> { %8737 = vmatprep.subr.bf16.mxu1 %v9254_v27  ;;  %v11202_v12 = vpack.c.bf16 %v4674_v29, %v4673_v41  ;;  %v9272_v2 = vld [vmem:[%s11686_s5 + $0xc8] sm:$0xff]   ;;  %v11219_v54 = vpack.c.bf16 %v4676_v43, %v4675_v40  ;;  %v9273_v38 = vld [vmem:[%s11686_s5 + $0x80] sm:$0xff]   ;;  %v9276_v7 = vld [vmem:[%s11686_s5 + $0x178] sm:$0xff]  }
 0x4c0   : >> { %v5032_v30 = vld [vmem:[%s11094_s22 + $0x9] sm:$0xff]  ;;  %v9274_v17 = vld [vmem:[%s11686_s5 + $0xc0] sm:$0xff]   ;;  %v5039_v51 = vld [vmem:[%s11094_s22 + $0x51] sm:$0xff] }
 0x4c1   : >> { %8706 = vmatpush3.bf16.msra.mxu0 %v9253_v34  ;;  %v9271_v34 = vld [vmem:[%s11686_s5 + $0x88] sm:$0xff]   ;;  %v5036_v44 = vld [vmem:[%s11094_s22 + $0x39] sm:$0xff]  ;;  %v9285_v19 = vld [vmem:[%s11686_s5 + $0x110] sm:$0xff]  }
 0x4c2   : >> { %8738 = vmatpush3.bf16.msra.mxu1 %v9254_v27  ;;  %8707 = vmatprep.subr.bf16.mxu0 %v9255_v26  ;;  %v5033_v27 = vld [vmem:[%s11094_s22 + $0x11] sm:$0xff]  ;;  %v5037_v9 = vld [vmem:[%s11094_s22 + $0x41] sm:$0xff]  ;;  %v5038_v46 = vld [vmem:[%s11094_s22 + $0x49] sm:$0xff] }
 0x4c3   : >> { %8739 = vmatprep.subr.bf16.mxu1 %v9256_v8  ;;  %v9280_v55 = vld [vmem:[%s11686_s5 + $0x168] sm:$0xff]   ;;  %v9282_v39 = vld [vmem:[%s11686_s5 + $0x160] sm:$0xff]   ;;  %v5047_v3 = vld [vmem:[%s11094_s22 + $0xb1] sm:$0xff] }
 0x4c4   : >> { %v5040_v11 = vld [vmem:[%s11094_s22 + $0x69] sm:$0xff]  ;;  %v5042_v57 = vld [vmem:[%s11094_s22 + $0x79] sm:$0xff]  ;;  %v5043_v56 = vld [vmem:[%s11094_s22 + $0x81] sm:$0xff] }
 0x4c5   : >> { %8708 = vmatpush3.bf16.msra.mxu0 %v9255_v26  ;;  %v5048_v26 = vpack.c.bf16 %v5033_v27, %v5032_v30  ;;  %v11283_v15 = vpack.c.bf16 %v5043_v56, %v5042_v57  ;;  %v5045_v4 = vld [vmem:[%s11094_s22 + $0xa1] sm:$0xff]  ;;  %v7414_v23 = vld [vmem:[%s11094_s22 + $0xcf] sm:$0xff]  ;;  %v9291_v49 = vld [vmem:[%s11686_s5 + $0x1b8] sm:$0xff]  }
 0x4c6   : >> { %8740 = vmatpush3.bf16.msra.mxu1 %v9256_v8  ;;  %8709 = vmatprep.subr.bf16.mxu0 %v9257_v13  ;;  %v5034_v8 = vld [vmem:[%s11094_s22 + $0x19] sm:$0xff]  ;;  %v5046_v1 = vld [vmem:[%s11094_s22 + $0xa9] sm:$0xff] }
 0x4c7   : >> { %8741 = vmatprep.subr.bf16.mxu1 %v9258_v52  ;;  %v9287_v45 = vld [vmem:[%s11686_s5 + $0x108] sm:$0xff]   ;;  %v11313_v41 = vpack.c.bf16 %v5047_v3, %v5046_v1  ;;  %v9292_v35 = vld [vmem:[%s11686_s5 + $0x1f8] sm:$0xff]   ;;  %v9293_v40 = vld [vmem:[%s11686_s5 + $0x1b0] sm:$0xff]  }
 0x4c8   : >> { %v9288_v59 = vld [vmem:[%s11686_s5 + $0x148] sm:$0xff]   ;;  %v9294_v43 = vld [vmem:[%s11686_s5 + $0x1f0] sm:$0xff]   ;;  %v9299_v30 = vld [vmem:[%s11686_s5 + $0x198] sm:$0xff]  }
 0x4c9   : >> { %8710 = vmatpush3.bf16.msra.mxu0 %v9257_v13  ;;  %v5035_v13 = vld [vmem:[%s11094_s22 + $0x21] sm:$0xff]  ;;  %v9300_v27 = vld [vmem:[%s11686_s5 + $0x1d8] sm:$0xff]   ;;  %v7538_v56 = vld [vmem:[%s11094_s22 + $0x10f] sm:$0xff] }
 0x4ca   : >> { %8742 = vmatpush3.bf16.msra.mxu1 %v9258_v52  ;;  %8759 = vmatprep.subr.bf16.mxu0 %v9259_v5  ;;  %v9275_v52 = vld [vmem:[%s11686_s5 + $0x138] sm:$0xff]   ;;  %v5049_v47 = vpack.c.bf16 %v5035_v13, %v5034_v8  ;;  %v9301_v13 = vld [vmem:[%s11686_s5 + $0x190] sm:$0xff]   ;;  %v7537_v57 = vld [vmem:[%s11094_s22 + $0x107] sm:$0xff] }
 0x4cb   : >> { %8791 = vmatprep.subr.bf16.mxu1 %v9260_v0  ;;  %v7494_v8 = vld [vmem:[%s11094_s22 + $0xd1] sm:$0xff]  ;;  %v7617_v3 = vld [vmem:[%s11094_s22 + $0x109] sm:$0xff] }
 0x4cc   : >> { %8712 = vmatmul.mubr.bf16.vlgmr.msra.gmra.mxu0 %v4718_v33  ;;  %v11246_v33 = vpack.c.bf16 %v5037_v9, %v5036_v44  ;;  %v7456_v9 = vld [vmem:[%s11094_s22 + $0xe0] sm:$0xff] }
 0x4cd   : >> { %8744 = vmatmul.mubr.bf16.vlgmr.msra.gmra.mxu1 %v4678_v31  ;;  %8760 = vmatpush3.bf16.msra.mxu0 %v9259_v5  ;;  %v9277_v5 = vld [vmem:[%s11686_s5 + $0x130] sm:$0xff]   ;;  %v9279_v31 = vld [vmem:[%s11686_s5 + $0x128] sm:$0xff]  }
 0x4ce   : >> { %8792 = vmatpush3.bf16.msra.mxu1 %v9260_v0  ;;  %8761 = vmatprep.subr.bf16.mxu0 %v9261_v48  ;;  %v9278_v0 = vld [vmem:[%s11686_s5 + $0x170] sm:$0xff]  }
 0x4cf   : >> { %8793 = vmatprep.subr.bf16.mxu1 %v9262_v61  ;;  %8715 = vmatprep.mubr.bf16.mxu0 %v11135_v58 }
 0x4d0   : >> { %8747 = vmatprep.mubr.bf16.mxu1 %v11137_v28 }
 0x4d1   : >> { %8762 = vmatpush3.bf16.msra.mxu0 %v9261_v48  ;;  %v11260_v48 = vpack.c.bf16 %v5039_v51, %v5038_v46  ;;  %v9304_v46 = vld [vmem:[%s11686_s5 + $0x1c8] sm:$0xff]  }
 0x4d2   : >> { %8794 = vmatpush3.bf16.msra.mxu1 %v9262_v61  ;;  %8763 = vmatprep.subr.bf16.mxu0 %v9263_v20  ;;  %v5041_v61 = vld [vmem:[%s11094_s22 + $0x71] sm:$0xff] }
 0x4d3   : >> { %8795 = vmatprep.subr.bf16.mxu1 %v9264_v10  ;;  %v11269_v50 = vpack.c.bf16 %v5041_v61, %v5040_v11  ;;  %v9306_v11 = vld [vmem:[%s11686_s5 + $0x1c0] sm:$0xff]   ;;  %v9308_v61 = vld [vmem:[%s11686_s5 + $0x230] sm:$0xff]  }
 0x4d4   : >> { %8716 = vmatmul.mubr.bf16.gmra.mxu0 %v11152_v36 }
 0x4d5   : >> { %8748 = vmatmul.mubr.bf16.gmra.mxu1 %v11159_v21  ;;  %8764 = vmatpush3.bf16.msra.mxu0 %v9263_v20  ;;  %v9283_v20 = vld [vmem:[%s11686_s5 + $0x118] sm:$0xff]  }
 0x4d6   : >> { %8796 = vmatpush3.bf16.msra.mxu1 %v9264_v10  ;;  %8765 = vmatprep.subr.bf16.mxu0 %v9265_v63  ;;  %v9284_v10 = vld [vmem:[%s11686_s5 + $0x158] sm:$0xff]  }
 0x4d7   : >> { %8797 = vmatprep.subr.bf16.mxu1 %v9266_v18  ;;  %8719 = vmatprep.mubr.bf16.mxu0 %v11165_v24 }
 0x4d8   : >> { %8751 = vmatprep.mubr.bf16.mxu1 %v11169_v22 }
 0x4d9   : >> { %8766 = vmatpush3.bf16.msra.mxu0 %v9265_v63  ;;  %v5044_v63 = vld [vmem:[%s11094_s22 + $0x99] sm:$0xff] }
 0x4da   : >> { %8798 = vmatpush3.bf16.msra.mxu1 %v9266_v18  ;;  %8767 = vmatprep.subr.bf16.mxu0 %v9267_v14  ;;  %v9286_v18 = vld [vmem:[%s11686_s5 + $0x150] sm:$0xff]   ;;  %v11295_v16 = vpack.c.bf16 %v5045_v4, %v5044_v63  ;;  %v9313_v63 = vld [vmem:[%s11686_s5 + $0x208] sm:$0xff]   ;;  %v5869_v4 = vpack.c.bf16 %v7538_v56, %v7537_v57 }
 0x4db   : >> { %8799 = vmatprep.subr.bf16.mxu1 %v9268_v42 }
 0x4dc   : >> { %8720 = vmatmul.mubr.bf16.gmra.mxu0 %v11185_v62 }
 0x4dd   : >> { %8752 = vmatmul.mubr.bf16.gmra.mxu1 %v11188_v60  ;;  %8768 = vmatpush3.bf16.msra.mxu0 %v9267_v14  ;;  %v7415_v14 = vld [vmem:[%s11094_s22 + $0xd7] sm:$0xff] }
 0x4de   : >> { %8800 = vmatpush3.bf16.msra.mxu1 %v9268_v42  ;;  %8769 = vmatprep.subr.bf16.mxu0 %v9269_v32  ;;  %v7416_v42 = vld [vmem:[%s11094_s22 + $0xdf] sm:$0xff] }
 0x4df   : >> { %8801 = vmatprep.subr.bf16.mxu1 %v9270_v25  ;;  %8723 = vmatprep.mubr.bf16.mxu0 %v11197_v6  ;;  %v11315_v29 = vpack.c.bf16 %v7416_v42, %v7415_v14 }
 0x4e0   : >> { %8755 = vmatprep.mubr.bf16.mxu1 %v11202_v12 }
 0x4e1   : >> { %8770 = vmatpush3.bf16.msra.mxu0 %v9269_v32  ;;  %v9289_v32 = vld [vmem:[%s11686_s5 + $0x100] sm:$0xff]  }
 0x4e2   : >> { %8802 = vmatpush3.bf16.msra.mxu1 %v9270_v25  ;;  %8771 = vmatprep.subr.bf16.mxu0 %v9271_v34  ;;  %v9290_v25 = vld [vmem:[%s11686_s5 + $0x140] sm:$0xff]  }
 0x4e3   : >> { %8803 = vmatprep.subr.bf16.mxu1 %v9272_v2 }
 0x4e4   : >> { %8724 = vmatmul.mubr.bf16.gmra.mxu0 %v11215_v53 }
 0x4e5   : >> { %8756 = vmatmul.mubr.bf16.gmra.mxu1 %v11219_v54  ;;  %8772 = vmatpush3.bf16.msra.mxu0 %v9271_v34  ;;  %v9296_v34 = vld [vmem:[%s11686_s5 + $0x1e8] sm:$0xff]  }
 0x4e6   : >> { %8804 = vmatpush3.bf16.msra.mxu1 %v9272_v2  ;;  %8773 = vmatprep.subr.bf16.mxu0 %v9273_v38  ;;  %v9298_v2 = vld [vmem:[%s11686_s5 + $0x1e0] sm:$0xff]  }
 0x4e7   : >> { %8805 = vmatprep.subr.bf16.mxu1 %v9274_v17  ;;  %8775 = vmatprep.mubr.bf16.mxu0 %v5048_v26  ;;  %v7493_v26 = vld [vmem:[%s11094_s22 + $0xc9] sm:$0xff] }
 0x4e8   : >> { %8807 = vmatprep.mubr.bf16.mxu1 %v11137_v28  ;;  %v9281_v28 = vld [vmem:[%s11686_s5 + $0x120] sm:$0xff]   ;;  %v11376_v44 = vpack.c.bf16 %v7494_v8, %v7493_v26 }
 0x4e9   : >> { %8774 = vmatpush3.bf16.msra.mxu0 %v9273_v38  ;;  %v7453_v38 = vld [vmem:[%s11094_s22 + $0xc8] sm:$0xff] }
 0x4ea   : >> { %8806 = vmatpush3.bf16.msra.mxu1 %v9274_v17  ;;  %8823 = vmatprep.subr.bf16.mxu0 %v9275_v52  ;;  %v7454_v17 = vld [vmem:[%s11094_s22 + $0xd0] sm:$0xff] }
 0x4eb   : >> { %8855 = vmatprep.subr.bf16.mxu1 %v9276_v7 }
 0x4ec   : >> { %8776 = vmatmul.mubr.bf16.vlgmr.msra.gmra.mxu0 %v5049_v47  ;;  %v7455_v47 = vld [vmem:[%s11094_s22 + $0xd8] sm:$0xff] }
 0x4ed   : >> { %8808 = vmatmul.mubr.bf16.vlgmr.msra.gmra.mxu1 %v11159_v21  ;;  %8824 = vmatpush3.bf16.msra.mxu0 %v9275_v52  ;;  %v7413_v21 = vld [vmem:[%s11094_s22 + $0xc7] sm:$0xff]  ;;  %v9302_v52 = vld [vmem:[%s11686_s5 + $0x1d0] sm:$0xff]   ;;  %v5462_v51 = vpack.c.bf16 %v7456_v9, %v7455_v47 }
 0x4ee   : >> { %8856 = vmatpush3.bf16.msra.mxu1 %v9276_v7  ;;  %8825 = vmatprep.subr.bf16.mxu0 %v9277_v5  ;;  %v11300_v37 = vpack.c.bf16 %v7414_v23, %v7413_v21  ;;  %v5461_v7 = vpack.c.bf16 %v7454_v17, %v7453_v38  ;;  %v9314_v21 = vld [vmem:[%s11686_s5 + $0x200] sm:$0xff]  }
 0x4ef   : >> { %8857 = vmatprep.subr.bf16.mxu1 %v9278_v0  ;;  %8779 = vmatprep.mubr.bf16.mxu0 %v11246_v33  ;;  %v7615_v23 = vld [vmem:[%s11094_s22 + $0xf9] sm:$0xff] }
 0x4f0   : >> { %8811 = vmatprep.mubr.bf16.mxu1 %v11169_v22 }
 0x4f1   : >> { %8826 = vmatpush3.bf16.msra.mxu0 %v9277_v5  ;;  %v7495_v5 = vld [vmem:[%s11094_s22 + $0xd9] sm:$0xff] }
 0x4f2   : >> { %8858 = vmatpush3.bf16.msra.mxu1 %v9278_v0  ;;  %8827 = vmatprep.subr.bf16.mxu0 %v9279_v31  ;;  %v7496_v0 = vld [vmem:[%s11094_s22 + $0xe1] sm:$0xff] }
 0x4f3   : >> { %8859 = vmatprep.subr.bf16.mxu1 %v9280_v55 }
 0x4f4   : >> { %8780 = vmatmul.mubr.bf16.gmra.mxu0 %v11260_v48 }
 0x4f5   : >> { %8812 = vmatmul.mubr.bf16.gmra.mxu1 %v11188_v60  ;;  %8828 = vmatpush3.bf16.msra.mxu0 %v9279_v31  ;;  %v11390_v31 = vpack.c.bf16 %v7496_v0, %v7495_v5 }
 0x4f6   : >> { %8860 = vmatpush3.bf16.msra.mxu1 %v9280_v55  ;;  %8829 = vmatprep.subr.bf16.mxu0 %v9281_v28  ;;  %v9305_v55 = vld [vmem:[%s11686_s5 + $0x180] sm:$0xff]  }
 0x4f7   : >> { %8861 = vmatprep.subr.bf16.mxu1 %v9282_v39  ;;  %8783 = vmatprep.mubr.bf16.mxu0 %v11269_v50 }
 0x4f8   : >> { %8815 = vmatprep.mubr.bf16.mxu1 %v11202_v12 }
 0x4f9   : >> { %8830 = vmatpush3.bf16.msra.mxu0 %v9281_v28 }
 0x4fa   : >> { %8862 = vmatpush3.bf16.msra.mxu1 %v9282_v39  ;;  %8831 = vmatprep.subr.bf16.mxu0 %v9283_v20 }
 0x4fb   : >> { %8863 = vmatprep.subr.bf16.mxu1 %v9284_v10 }
 0x4fc   : >> { %8784 = vmatmul.mubr.bf16.gmra.mxu0 %v11283_v15 }
 0x4fd   : >> { %8816 = vmatmul.mubr.bf16.gmra.mxu1 %v11219_v54  ;;  %8832 = vmatpush3.bf16.msra.mxu0 %v9283_v20  ;;  %v7577_v20 = vld [vmem:[%s11094_s22 + $0x108] sm:$0xff] }
 0x4fe   : >> { %8864 = vmatpush3.bf16.msra.mxu1 %v9284_v10  ;;  %8833 = vmatprep.subr.bf16.mxu0 %v9285_v19  ;;  %v7578_v10 = vld [vmem:[%s11094_s22 + $0x110] sm:$0xff] }
 0x4ff   : >> { %8865 = vmatprep.subr.bf16.mxu1 %v9286_v18  ;;  %8787 = vmatprep.mubr.bf16.mxu0 %v11295_v16 }
 0x500   : >> { %8819 = vmatprep.mubr.bf16.mxu1 %v11300_v37 }
 0x501   : >> { %8834 = vmatpush3.bf16.msra.mxu0 %v9285_v19  ;;  %v6071_v19 = vpack.c.bf16 %v7578_v10, %v7577_v20 }
 0x502   : >> { %8866 = vmatpush3.bf16.msra.mxu1 %v9286_v18  ;;  %8835 = vmatprep.subr.bf16.mxu0 %v9287_v45  ;;  %v7616_v18 = vld [vmem:[%s11094_s22 + $0x101] sm:$0xff] }
 0x503   : >> { %8867 = vmatprep.subr.bf16.mxu1 %v9288_v59  ;;  %v6272_v1 = vpack.c.bf16 %v7616_v18, %v7615_v23 }
 0x504   : >> { %8788 = vmatmul.mubr.bf16.gmra.mxu0 %v11313_v41 }
 0x505   : >> { %8820 = vmatmul.mubr.bf16.gmra.mxu1 %v11315_v29  ;;  %8836 = vmatpush3.bf16.msra.mxu0 %v9287_v45 }
 0x506   : >> { %8868 = vmatpush3.bf16.msra.mxu1 %v9288_v59  ;;  %8837 = vmatprep.subr.bf16.mxu0 %v9289_v32 }
 0x507   : >> { %8869 = vmatprep.subr.bf16.mxu1 %v9290_v25  ;;  %8839 = vmatprep.mubr.bf16.mxu0 %v11135_v58  ;;  %v9295_v58 = vld [vmem:[%s11686_s5 + $0x1a8] sm:$0xff]  }
 0x508   : >> { %8871 = vmatprep.mubr.bf16.mxu1 %v11246_v33  ;;  %v9303_v33 = vld [vmem:[%s11686_s5 + $0x188] sm:$0xff]  }
 0x509   : >> { %8838 = vmatpush3.bf16.msra.mxu0 %v9289_v32 }
 0x50a   : >> { %8870 = vmatpush3.bf16.msra.mxu1 %v9290_v25  ;;  %8887 = vmatprep.subr.bf16.mxu0 %v9291_v49 }
 0x50b   : >> { %8919 = vmatprep.subr.bf16.mxu1 %v9292_v35 }
 0x50c   : >> { %8840 = vmatmul.mubr.bf16.vlgmr.msra.gmra.mxu0 %v11152_v36  ;;  %v9297_v36 = vld [vmem:[%s11686_s5 + $0x1a0] sm:$0xff]  }
 0x50d   : >> { %8872 = vmatmul.mubr.bf16.vlgmr.msra.gmra.mxu1 %v11260_v48  ;;  %8888 = vmatpush3.bf16.msra.mxu0 %v9291_v49  ;;  %v9307_v48 = vld [vmem:[%s11686_s5 + $0x238] sm:$0xff]  }
 0x50e   : >> { %8920 = vmatpush3.bf16.msra.mxu1 %v9292_v35  ;;  %8889 = vmatprep.subr.bf16.mxu0 %v9293_v40 }
 0x50f   : >> { %8921 = vmatprep.subr.bf16.mxu1 %v9294_v43  ;;  %8843 = vmatprep.mubr.bf16.mxu0 %v11165_v24 }
 0x510   : >> { %8875 = vmatprep.mubr.bf16.mxu1 %v11269_v50 }
 0x511   : >> { %8890 = vmatpush3.bf16.msra.mxu0 %v9293_v40 }
 0x512   : >> { %8922 = vmatpush3.bf16.msra.mxu1 %v9294_v43  ;;  %8891 = vmatprep.subr.bf16.mxu0 %v9295_v58 }
 0x513   : >> { %8923 = vmatprep.subr.bf16.mxu1 %v9296_v34 }
 0x514   : >> { %8844 = vmatmul.mubr.bf16.gmra.mxu0 %v11185_v62 }
 0x515   : >> { %8876 = vmatmul.mubr.bf16.gmra.mxu1 %v11283_v15  ;;  %8892 = vmatpush3.bf16.msra.mxu0 %v9295_v58 }
 0x516   : >> { %8924 = vmatpush3.bf16.msra.mxu1 %v9296_v34  ;;  %8893 = vmatprep.subr.bf16.mxu0 %v9297_v36 }
 0x517   : >> { %8925 = vmatprep.subr.bf16.mxu1 %v9298_v2  ;;  %8847 = vmatprep.mubr.bf16.mxu0 %v11197_v6 }
 0x518   : >> { %8879 = vmatprep.mubr.bf16.mxu1 %v11295_v16 }
 0x519   : >> { %8894 = vmatpush3.bf16.msra.mxu0 %v9297_v36 }
 0x51a   : >> { %8926 = vmatpush3.bf16.msra.mxu1 %v9298_v2  ;;  %8895 = vmatprep.subr.bf16.mxu0 %v9299_v30 }
 0x51b   : >> { %8927 = vmatprep.subr.bf16.mxu1 %v9300_v27 }
 0x51c   : >> { %8848 = vmatmul.mubr.bf16.gmra.mxu0 %v11215_v53 }
 0x51d   : >> { %8880 = vmatmul.mubr.bf16.gmra.mxu1 %v11313_v41  ;;  %8896 = vmatpush3.bf16.msra.mxu0 %v9299_v30 }
 0x51e   : >> { %8928 = vmatpush3.bf16.msra.mxu1 %v9300_v27  ;;  %8897 = vmatprep.subr.bf16.mxu0 %v9301_v13 }
 0x51f   : >> { %8929 = vmatprep.subr.bf16.mxu1 %v9302_v52  ;;  %8851 = vmatprep.mubr.bf16.mxu0 %v5461_v7 }
 0x520   : >> { %8883 = vmatprep.mubr.bf16.mxu1 %v11376_v44 }
 0x521   : >> { %8898 = vmatpush3.bf16.msra.mxu0 %v9301_v13 }
 0x522   : >> { %8930 = vmatpush3.bf16.msra.mxu1 %v9302_v52  ;;  %8899 = vmatprep.subr.bf16.mxu0 %v9303_v33 }
 0x523   : >> { %8931 = vmatprep.subr.bf16.mxu1 %v9304_v46 }
 0x524   : >> { %8852 = vmatmul.mubr.bf16.gmra.mxu0 %v5462_v51 }
 0x525   : >> { %8884 = vmatmul.mubr.bf16.gmra.mxu1 %v11390_v31  ;;  %8900 = vmatpush3.bf16.msra.mxu0 %v9303_v33 }
 0x526   : >> { %8932 = vmatpush3.bf16.msra.mxu1 %v9304_v46  ;;  %8901 = vmatprep.subr.bf16.mxu0 %v9305_v55 }
 0x527   : >> { %8933 = vmatprep.subr.bf16.mxu1 %v9306_v11  ;;  %8903 = vmatprep.mubr.bf16.mxu0 %v11169_v22  ;;  %v9309_v22 = vld [vmem:[%s11686_s5 + $0x228] sm:$0xff]  }
 0x528   : >> { %8935 = vmatprep.mubr.bf16.mxu1 %v11165_v24  ;;  %v9310_v24 = vld [vmem:[%s11686_s5 + $0x220] sm:$0xff]  }
 0x529   : >> { %8902 = vmatpush3.bf16.msra.mxu0 %v9305_v55 }
 0x52a   : >> { %8934 = vmatpush3.bf16.msra.mxu1 %v9306_v11  ;;  %8951 = vmatprep.subr.bf16.mxu0 %v9307_v48 }
 0x52b   : >> { %9021 = vmatprep.subr.bf16.mxu1 %v9307_v48 }
 0x52c   : >> { %8904 = vmatmul.mubr.bf16.vlgmr.msra.gmra.mxu0 %v11188_v60  ;;  %v7535_v60 = vld [vmem:[%s11094_s22 + $0xf7] sm:$0xff] }
 0x52d   : >> { %8936 = vmatmul.mubr.bf16.vlgmr.msra.gmra.mxu1 %v11185_v62  ;;  %8952 = vmatpush3.bf16.msra.mxu0 %v9307_v48  ;;  %v9311_v62 = vld [vmem:[%s11686_s5 + $0x218] sm:$0xff]  }
 0x52e   : >> { %9029 = vmatpush3.bf16.msra.mxu1 %v9307_v48  ;;  %8953 = vmatprep.subr.bf16.mxu0 %v9308_v61 }
 0x52f   : >> { %9022 = vmatprep.subr.bf16.mxu1 %v9308_v61  ;;  %8907 = vmatprep.mubr.bf16.mxu0 %v11202_v12  ;;  %v7575_v12 = vld [vmem:[%s11094_s22 + $0xf8] sm:$0xff] }
 0x530   : >> { %8939 = vmatprep.mubr.bf16.mxu1 %v11197_v6  ;;  %v7536_v6 = vld [vmem:[%s11094_s22 + $0xff] sm:$0xff] }
 0x531   : >> { %8954 = vmatpush3.bf16.msra.mxu0 %v9308_v61  ;;  %v5868_v28 = vpack.c.bf16 %v7536_v6, %v7535_v60 }
 0x532   : >> { %9030 = vmatpush3.bf16.msra.mxu1 %v9308_v61  ;;  %8955 = vmatprep.subr.bf16.mxu0 %v9309_v22 }
 0x533   : >> { %9023 = vmatprep.subr.bf16.mxu1 %v9309_v22 }
 0x534   : >> { %8908 = vmatmul.mubr.bf16.gmra.mxu0 %v11219_v54  ;;  %v9312_v54 = vld [vmem:[%s11686_s5 + $0x210] sm:$0xff]  }
 0x535   : >> { %8940 = vmatmul.mubr.bf16.gmra.mxu1 %v11215_v53  ;;  %8956 = vmatpush3.bf16.msra.mxu0 %v9309_v22  ;;  %v7576_v53 = vld [vmem:[%s11094_s22 + $0x100] sm:$0xff] }
 0x536   : >> { %9031 = vmatpush3.bf16.msra.mxu1 %v9309_v22  ;;  %8957 = vmatprep.subr.bf16.mxu0 %v9310_v24  ;;  %v6070_v39 = vpack.c.bf16 %v7576_v53, %v7575_v12 }
 0x537   : >> { %9024 = vmatprep.subr.bf16.mxu1 %v9310_v24  ;;  %8911 = vmatprep.mubr.bf16.mxu0 %v11300_v37  ;;  %v7618_v37 = vld [vmem:[%s11094_s22 + $0x111] sm:$0xff]  ;;  %s7653_s22 = sshll.u32 %s9361_s11, 7  ;;  %s4657_s11 = sadd.s32 1, %s9361_s11  }
 0x538   : >> { %8943 = vmatprep.mubr.bf16.mxu1 %v5461_v7  ;;  %v6273_v14 = vpack.c.bf16 %v7618_v37, %v7617_v3  ;;  %s11578_s15 = scalar_lea.vmem %s9833_s7, %s7653_s22  ;;  %s11606_s16 = scalar_lea.vmem %s9838_s10, %s7653_s22 }
 0x539   : >> { %8958 = vmatpush3.bf16.msra.mxu0 %v9310_v24  ;;  %p4654_p8 = scmp.ge.s32.totalorder %s4657_s11, 8  }
 0x53a   : >> { %9032 = vmatpush3.bf16.msra.mxu1 %v9310_v24  ;;  %8959 = vmatprep.subr.bf16.mxu0 %v9311_v62 }
 0x53b   : >> { %9025 = vmatprep.subr.bf16.mxu1 %v9311_v62 }
 0x53c   : >> { %8912 = vmatmul.mubr.bf16.gmra.mxu0 %v11315_v29 }
 0x53d   : >> { %8944 = vmatmul.mubr.bf16.gmra.mxu1 %v5462_v51  ;;  %8960 = vmatpush3.bf16.msra.mxu0 %v9311_v62 }
 0x53e   : >> { %9033 = vmatpush3.bf16.msra.mxu1 %v9311_v62  ;;  %8961 = vmatprep.subr.bf16.mxu0 %v9312_v54 }
 0x53f   : >> { %9026 = vmatprep.subr.bf16.mxu1 %v9312_v54  ;;  %8915 = vmatprep.mubr.bf16.mxu0 %v5868_v28 }
 0x540   : >> { %8947 = vmatprep.mubr.bf16.mxu1 %v6070_v39 }
 0x541   : >> { %8962 = vmatpush3.bf16.msra.mxu0 %v9312_v54 }
 0x542   : >> { %9034 = vmatpush3.bf16.msra.mxu1 %v9312_v54  ;;  %8963 = vmatprep.subr.bf16.mxu0 %v9313_v63 }
 0x543   : >> { %9027 = vmatprep.subr.bf16.mxu1 %v9313_v63 }
 0x544   : >> { %8916 = vmatmul.mubr.bf16.gmra.mxu0 %v5869_v4 }
 0x545   : >> { %8948 = vmatmul.mubr.bf16.gmra.mxu1 %v6071_v19  ;;  %8964 = vmatpush3.bf16.msra.mxu0 %v9313_v63 }
 0x546   : >> { %9035 = vmatpush3.bf16.msra.mxu1 %v9313_v63  ;;  %8965 = vmatprep.subr.bf16.mxu0 %v9314_v21 }
 0x547   : >> { %9028 = vmatprep.subr.bf16.mxu1 %v9314_v21  ;;  %8967 = vmatprep.mubr.bf16.mxu0 %v11269_v50 }
 0x548   : >> { %8975 = vmatprep.mubr.bf16.mxu1 %v11376_v44 }
 0x549   : >> { %8966 = vmatpush3.bf16.msra.mxu0 %v9314_v21 }
 0x54a   : >> { %9036 = vmatpush3.bf16.msra.mxu1 %v9314_v21 }
 0x54c   : >> { %8968 = vmatmul.mubr.bf16.vlgmr.msra.gmra.mxu0 %v11283_v15 }
 0x54d   : >> { %8976 = vmatmul.mubr.bf16.vlgmr.msra.gmra.mxu1 %v11390_v31  ;;  %8971 = vmatprep.mubr.bf16.mxu0 %v11295_v16 }
 0x54e   : >> { %8979 = vmatprep.mubr.bf16.mxu1 %v6272_v1 }
 0x554   : >> { %8972 = vmatmul.mubr.bf16.gmra.mxu0 %v11313_v41 }
 0x555   : >> { %8980 = vmatmul.mubr.bf16.gmra.mxu1 %v6273_v14 }
 0x58c   : >> { %v8713_v50 = vpop.f32.mrf.mxu0 }
 0x58d   : >> { %v8745_v42 = vpop.f32.mrf.mxu1 }
 0x58e   : >> { %v4978_v45 = vadd.f32 %v8745_v42, %v8713_v50  ;;  %v4824_v59 = vpop.f32.mrf.mxu0 }
 0x58f   : >> { %v4969_v29 = vpop.f32.mrf.mxu1 }
 0x590   : >> { %v4970_v32 = vadd.f32 %v4969_v29, %v4824_v59  ;;  %v8714_v25 = vpop.f32.mrf.mxu0 }
 0x591   : >> { %v8746_v49 = vpop.f32.mrf.mxu1 }
 0x592   : >> { %v4981_v15 = vadd.f32 %v8746_v49, %v8714_v25  ;;  %v4827_v35 = vpop.f32.mrf.mxu0 }
 0x593   : >> { %v4972_v40 = vpop.f32.mrf.mxu1 }
 0x594   : >> { %v4973_v43 = vadd.f32 %v4972_v40, %v4827_v35  ;;  %v8717_v16 = vpop.f32.mrf.mxu0 }
 0x595   : >> { %v8749_v58 = vpop.f32.mrf.mxu1 }
 0x596   : >> { %v4994_v34 = vadd.f32 %v8749_v58, %v8717_v16  ;;  %v4840_v36 = vpop.f32.mrf.mxu0 }
 0x597   : >> { %v4985_v2 = vpop.f32.mrf.mxu1 }
 0x598   : >> { %v4986_v30 = vadd.f32 %v4985_v2, %v4840_v36  ;;  %v8718_v41 = vpop.f32.mrf.mxu0 }
 0x599   : >> { %v8750_v27 = vpop.f32.mrf.mxu1 }
 0x59a   : >> { %v4997_v38 = vadd.f32 %v8750_v27, %v8718_v41  ;;  %v4843_v17 = vpop.f32.mrf.mxu0 }
 0x59b   : >> { %v4988_v26 = vpop.f32.mrf.mxu1 }
 0x59c   : >> { %v4989_v8 = vadd.f32 %v4988_v26, %v4843_v17  ;;  %v8721_v13 = vpop.f32.mrf.mxu0 }
 0x59d   : >> { %v8753_v52 = vpop.f32.mrf.mxu1 }
 0x59e   : >> { %v5010_v7 = vadd.f32 %v8753_v52, %v8721_v13  ;;  %v4856_v44 = vpop.f32.mrf.mxu0 }
 0x59f   : >> { %v5001_v47 = vpop.f32.mrf.mxu1 }
 0x5a0   : >> { %v5002_v9 = vadd.f32 %v5001_v47, %v4856_v44  ;;  %v8722_v5 = vpop.f32.mrf.mxu0 }
 0x5a1   : >> { %v8754_v0 = vpop.f32.mrf.mxu1 }
 0x5a2   : >> { %v5013_v33 = vadd.f32 %v8754_v0, %v8722_v5  ;;  %v4859_v46 = vpop.f32.mrf.mxu0 }
 0x5a3   : >> { %v5004_v51 = vpop.f32.mrf.mxu1 }
 0x5a4   : >> { %v5005_v31 = vadd.f32 %v5004_v51, %v4859_v46  ;;  %v8725_v55 = vpop.f32.mrf.mxu0 }
 0x5a5   : >> { %v8757_v11 = vpop.f32.mrf.mxu1 }
 0x5a6   : >> { %v5026_v48 = vadd.f32 %v8757_v11, %v8725_v55  ;;  %v4872_v61 = vpop.f32.mrf.mxu0 }
 0x5a7   : >> { %v5017_v22 = vpop.f32.mrf.mxu1 }
 0x5a8   : >> { %v5018_v24 = vadd.f32 %v5017_v22, %v4872_v61  ;;  %v8726_v62 = vpop.f32.mrf.mxu0 }
 0x5a9   : >> { %v8758_v60 = vpop.f32.mrf.mxu1 }
 0x5aa   : >> { %v5029_v6 = vadd.f32 %v8758_v60, %v8726_v62  ;;  %v4875_v12 = vpop.f32.mrf.mxu0 }
 0x5ab   : >> { %v5020_v53 = vpop.f32.mrf.mxu1 }
 0x5ac   : >> { %v5021_v54 = vadd.f32 %v5020_v53, %v4875_v12  ;;  %v8777_v28 = vpop.f32.mrf.mxu0 }
 0x5ad   : >> { %v5220_v39 = vadd.f32 %v8777_v28, %v4978_v45  ;;  %v8809_v57 = vpop.f32.mrf.mxu1 }
 0x5ae   : >> { %v5155_v56 = vpop.f32.mrf.mxu0 }
 0x5af   : >> { %v11451_v20 = vadd.f32 %v8809_v57, %v5220_v39  ;;  %v5218_v10 = vadd.f32 %v5155_v56, %v4970_v32  ;;  %v5360_v63 = vpop.f32.mrf.mxu1 }
 0x5b0   : >> { %v8778_v4 = vpop.f32.mrf.mxu0 }
 0x5b1   : >> { %v11453_v19 = vadd.f32 %v5360_v63, %v5218_v10  ;;  %v5221_v21 = vadd.f32 %v8778_v4, %v4981_v15  ;;  %v8810_v23 = vpop.f32.mrf.mxu1 }
 0x5b2   : >> { %v5158_v18 = vpop.f32.mrf.mxu0 }
 0x5b3   : >> { %v11455_v1 = vadd.f32 %v8810_v23, %v5221_v21  ;;  %v5219_v3 = vadd.f32 %v5158_v18, %v4973_v43  ;;  %v5363_v37 = vpop.f32.mrf.mxu1 }
 0x5b4   : >> { %v8781_v14 = vpop.f32.mrf.mxu0 }
 0x5b5   : >> { %v11457_v50 = vadd.f32 %v5363_v37, %v5219_v3  ;;  %v5224_v42 = vadd.f32 %v8781_v14, %v4994_v34  ;;  %v8813_v45 = vpop.f32.mrf.mxu1 }
 0x5b6   : >> { %v5171_v59 = vpop.f32.mrf.mxu0 }
 0x5b7   : >> { %v11459_v29 = vadd.f32 %v8813_v45, %v5224_v42  ;;  %v5222_v32 = vadd.f32 %v5171_v59, %v4986_v30  ;;  %v5376_v25 = vpop.f32.mrf.mxu1 }
 0x5b8   : >> { %v8782_v49 = vpop.f32.mrf.mxu0 }
 0x5b9   : >> { %v11461_v35 = vadd.f32 %v5376_v25, %v5222_v32  ;;  %v5225_v15 = vadd.f32 %v8782_v49, %v4997_v38  ;;  %v8814_v40 = vpop.f32.mrf.mxu1 }
 0x5ba   : >> { %v5174_v16 = vpop.f32.mrf.mxu0 }
 0x5bb   : >> { %v11463_v58 = vadd.f32 %v8814_v40, %v5225_v15  ;;  %v5223_v43 = vadd.f32 %v5174_v16, %v4989_v8  ;;  %v5379_v36 = vpop.f32.mrf.mxu1 }
 0x5bc   : >> { %v8785_v2 = vpop.f32.mrf.mxu0 }
 0x5bd   : >> { %v11465_v41 = vadd.f32 %v5379_v36, %v5223_v43  ;;  %v5228_v34 = vadd.f32 %v8785_v2, %v5010_v7  ;;  %v8817_v27 = vpop.f32.mrf.mxu1 }
 0x5be   : >> { %v5187_v17 = vpop.f32.mrf.mxu0 }
 0x5bf   : >> { %v11467_v26 = vadd.f32 %v8817_v27, %v5228_v34  ;;  %v5226_v30 = vadd.f32 %v5187_v17, %v5002_v9  ;;  %v5392_v13 = vpop.f32.mrf.mxu1 }
 0x5c0   : >> { %v8786_v52 = vpop.f32.mrf.mxu0 }
 0x5c1   : >> { %v11469_v44 = vadd.f32 %v5392_v13, %v5226_v30  ;;  %v5229_v38 = vadd.f32 %v8786_v52, %v5013_v33  ;;  %v8818_v47 = vpop.f32.mrf.mxu1 }
 0x5c2   : >> { %v5190_v5 = vpop.f32.mrf.mxu0 }
 0x5c3   : >> { %v11471_v0 = vadd.f32 %v8818_v47, %v5229_v38  ;;  %v5227_v8 = vadd.f32 %v5190_v5, %v5005_v31  ;;  %v5395_v46 = vpop.f32.mrf.mxu1 }
 0x5c4   : >> { %v8789_v51 = vpop.f32.mrf.mxu0 }
 0x5c5   : >> { %v11473_v55 = vadd.f32 %v5395_v46, %v5227_v8  ;;  %v5232_v7 = vadd.f32 %v8789_v51, %v5026_v48  ;;  %v8821_v11 = vpop.f32.mrf.mxu1 }
 0x5c6   : >> { %v5203_v61 = vpop.f32.mrf.mxu0 }
 0x5c7   : >> { %v11475_v22 = vadd.f32 %v8821_v11, %v5232_v7  ;;  %v5230_v9 = vadd.f32 %v5203_v61, %v5018_v24  ;;  %v5408_v62 = vpop.f32.mrf.mxu1 }
 0x5c8   : >> { %v8790_v60 = vpop.f32.mrf.mxu0 }
 0x5c9   : >> { %v11477_v12 = vadd.f32 %v5408_v62, %v5230_v9  ;;  %v5233_v33 = vadd.f32 %v8790_v60, %v5029_v6  ;;  %v8822_v53 = vpop.f32.mrf.mxu1 }
 0x5ca   : >> { %v5206_v28 = vpop.f32.mrf.mxu0 }
 0x5cb   : >> { %v11479_v39 = vadd.f32 %v8822_v53, %v5233_v33  ;;  %v5231_v31 = vadd.f32 %v5206_v28, %v5021_v54  ;;  %v5411_v57 = vpop.f32.mrf.mxu1 }
 0x5cc   : >> { %v8841_v56 = vpop.f32.mrf.mxu0 }
 0x5cd   : >> { %v11481_v10 = vadd.f32 %v5411_v57, %v5231_v31  ;;  %v8873_v48 = vpop.f32.mrf.mxu1 }
 0x5ce   : >> { %v5562_v63 = vpop.f32.mrf.mxu0 }
 0x5cf   : >> { %v5764_v4 = vpop.f32.mrf.mxu1 }
 0x5d0   : >> { %v8842_v21 = vpop.f32.mrf.mxu0 }
 0x5d1   : >> { %v11483_v23 = vpop.f32.mrf.mxu1 }
 0x5d2   : >> { %v5565_v24 = vpop.f32.mrf.mxu0 }
 0x5d3   : >> { %v11485_v18 = vpop.f32.mrf.mxu1 }
 0x5d4   : >> { %v8845_v3 = vpop.f32.mrf.mxu0 }
 0x5d5   : >> { %v11487_v6 = vpop.f32.mrf.mxu1 }
 0x5d6   : >> { %v5578_v37 = vpop.f32.mrf.mxu0 }
 0x5d7   : >> { %v11489_v14 = vpop.f32.mrf.mxu1 }
 0x5d8   : >> { %v8846_v54 = vpop.f32.mrf.mxu0 }
 0x5d9   : >> { %v11491_v42 = vpop.f32.mrf.mxu1 }
 0x5da   : >> { %v5581_v45 = vpop.f32.mrf.mxu0 }
 0x5db   : >> { %v11493_v59 = vpop.f32.mrf.mxu1 }
 0x5dc   : >> { %v8849_v32 = vpop.f32.mrf.mxu0 }
 0x5dd   : >> { %v8881_v25 = vpop.f32.mrf.mxu1 }
 0x5de   : >> { %v5594_v49 = vpop.f32.mrf.mxu0 }
 0x5df   : >> { %v5796_v15 = vpop.f32.mrf.mxu1 }
 0x5e0   : >> { %v8850_v40 = vpop.f32.mrf.mxu0 }
 0x5e1   : >> { %v11495_v16 = vpop.f32.mrf.mxu1 }
 0x5e2   : >> { %v5597_v43 = vpop.f32.mrf.mxu0 }
 0x5e3   : >> { %v11497_v36 = vpop.f32.mrf.mxu1 }
 0x5e4   : >> { %v8853_v2 = vpop.f32.mrf.mxu0 }
 0x5e5   : >> { %v11499_v34 = vpop.f32.mrf.mxu1 }
 0x5e6   : >> { %v5610_v27 = vpop.f32.mrf.mxu0 }
 0x5e7   : >> { %v11501_v17 = vpop.f32.mrf.mxu1 }
 0x5e8   : >> { %11755 = vst [vmem:[#allocation38_spill] sm:$0xff] %v11501_v17  ;;  %v8854_v30 = vpop.f32.mrf.mxu0 }
 0x5e9   : >> { %v11503_v13 = vpop.f32.mrf.mxu1 }
 0x5ea   : >> { %11756 = vst [vmem:[#allocation39_spill] sm:$0xff] %v11503_v13  ;;  %v11505_v52 = vpop.f32.mrf.mxu0  ;;  %v5633_v13 = vadd.f32 %v5594_v49, %v11469_v44 }
 0x5eb   : >> { %v11507_v38 = vpop.f32.mrf.mxu1 }
 0x5ec   : >> { %11757 = vst [vmem:[#allocation40_spill] sm:$0xff] %v11507_v38  ;;  %v8905_v47 = vpop.f32.mrf.mxu0 }
 0x5ed   : >> { %v11509_v5 = vpop.f32.mrf.mxu1 }
 0x5ee   : >> { %v5969_v8 = vpop.f32.mrf.mxu0 }
 0x5ef   : >> { %v11511_v46 = vpop.f32.mrf.mxu1 }
 0x5f0   : >> { %11758 = vst [vmem:[#allocation41_spill] sm:$0xff] %v11511_v46  ;;  %v11513_v51 = vpop.f32.mrf.mxu0 }
 0x5f1   : >> { %v11515_v7 = vpop.f32.mrf.mxu1 }
 0x5f2   : >> { %11759 = vst [vmem:[#allocation42_spill] sm:$0xff] %v11515_v7  ;;  %v11517_v11 = vpop.f32.mrf.mxu0 }
 0x5f3   : >> { %11760 = vst [vmem:[#allocation43_spill] sm:$0xff] %v11517_v11  ;;  %v11519_v61 = vpop.f32.mrf.mxu1 }
 0x5f4   : >> { %11761 = vst [vmem:[#allocation44_spill] sm:$0xff] %v11519_v61  ;;  %v11521_v9 = vpop.f32.mrf.mxu0 }
 0x5f5   : >> { %11762 = vst [vmem:[#allocation45_spill] sm:$0xff] %v11521_v9  ;;  %v11523_v62 = vpop.f32.mrf.mxu1 }
 0x5f6   : >> { %11763 = vst [vmem:[#allocation46_spill] sm:$0xff] %v11523_v62  ;;  %v11525_v60 = vpop.f32.mrf.mxu0  ;;  %v5627_v62 = vadd.f32 %v8841_v56, %v11451_v20  ;;  %v5629_v56 = vadd.f32 %v5578_v37, %v11461_v35  ;;  %v5634_v35 = vadd.f32 %v5597_v43, %v11473_v55 }
 0x5f7   : >> { %11764 = vst [vmem:[#allocation47_spill] sm:$0xff] %v11525_v60  ;;  %v11527_v33 = vpop.f32.mrf.mxu1  ;;  %v5625_v60 = vadd.f32 %v5562_v63, %v11453_v19  ;;  %v5631_v19 = vadd.f32 %v8845_v3, %v11459_v29  ;;  %v5630_v29 = vadd.f32 %v5581_v45, %v11465_v41 }
 0x5f8   : >> { %11765 = vst [vmem:[#allocation48_spill] sm:$0xff] %v11527_v33  ;;  %v11529_v53 = vpop.f32.mrf.mxu0  ;;  %v5628_v33 = vadd.f32 %v8842_v21, %v11455_v1  ;;  %v5829_v17 = vadd.f32 %v8873_v48, %v5627_v62 }
 0x5f9   : >> { %11766 = vst [vmem:[#allocation49_spill] sm:$0xff] %v11529_v53  ;;  %v11531_v28 = vpop.f32.mrf.mxu1  ;;  %v5827_v20 = vadd.f32 %v5764_v4, %v5625_v60 }
 0x5fa   : >> { %11767 = vst [vmem:[#allocation50_spill] sm:$0xff] %v11531_v28  ;;  %v11533_v31 = vpop.f32.mrf.mxu0  ;;  %v5635_v28 = vadd.f32 %v8849_v32, %v11467_v26  ;;  %v5830_v1 = vadd.f32 %v11483_v23, %v5628_v33  ;;  %v5632_v26 = vadd.f32 %v8846_v54, %v11463_v58  ;;  %v6034_v48 = vadd.f32 %v8905_v47, %v5829_v17  ;;  %v11772_v17 = vld [vmem:[#allocation39_spill] sm:$0xff]  ;;  %v6454_v33 = vld [vmem:[%s11578_s15] sm:$0xff] }
 0x5fb   : >> { %11768 = vst [vmem:[#allocation51_spill] sm:$0xff] %v11533_v31  ;;  %v11535_v57 = vpop.f32.mrf.mxu1  ;;  %v5835_v23 = vadd.f32 %v5796_v15, %v5633_v13  ;;  %v5639_v58 = vadd.f32 %v8853_v2, %v11475_v22  ;;  %v5833_v54 = vadd.f32 %v11487_v6, %v5631_v19  ;;  %v5831_v32 = vadd.f32 %v11489_v14, %v5629_v56 }
 0x5fc   : >> { %11769 = vst [vmem:[#allocation52_spill] sm:$0xff] %v11535_v57  ;;  %v8913_v7 = vpop.f32.mrf.mxu0  ;;  %v5626_v57 = vadd.f32 %v5565_v24, %v11457_v50  ;;  %v5837_v21 = vadd.f32 %v8881_v25, %v5635_v28  ;;  %v5636_v50 = vadd.f32 %v8850_v40, %v11471_v0  ;;  %v5637_v0 = vadd.f32 %v5610_v27, %v11477_v12  ;;  %v6456_v27 = vld [vmem:[%s11578_s15 + $0x10] sm:$0xff]  ;;  %v11777_v28 = vld [vmem:[#allocation42_spill] sm:$0xff] }
 0x5fd   : >> { %v8945_v38 = vpop.f32.mrf.mxu1  ;;  %v6032_v41 = vadd.f32 %v5969_v8, %v5827_v20  ;;  %v5834_v55 = vadd.f32 %v11491_v42, %v5632_v26  ;;  %v5638_v12 = vadd.f32 %v11505_v52, %v11481_v10  ;;  %v11587_v14 = vadd.f32 %v11493_v59, %v5630_v29  ;;  %v11771_v10 = vld [vmem:[#allocation38_spill] sm:$0xff]  ;;  %v11774_v52 = vld [vmem:[#allocation43_spill] sm:$0xff]  ;;  %v11778_v20 = vld [vmem:[#allocation45_spill] sm:$0xff] }
 0x5fe   : >> { %v6001_v11 = vpop.f32.mrf.mxu0  ;;  %v5828_v44 = vadd.f32 %v11485_v18, %v5626_v57  ;;  %v6042_v3 = vadd.f32 %v8913_v7, %v5837_v21  ;;  %v5640_v18 = vadd.f32 %v8854_v30, %v11479_v39  ;;  %v5838_v22 = vadd.f32 %v11495_v16, %v5636_v50  ;;  %v11775_v7 = vld [vmem:[#allocation40_spill] sm:$0xff]  ;;  %v6462_v21 = vld [vmem:[%s11578_s15 + $0x40] sm:$0xff] }
 0x5ff   : >> { %v11537_v61 = vpop.f32.mrf.mxu1  ;;  %v6040_v25 = vadd.f32 %v6001_v11, %v5835_v23  ;;  %v5836_v39 = vadd.f32 %v11497_v36, %v5634_v35  ;;  %v6236_v49 = vadd.f32 %v11509_v5, %v6034_v48  ;;  %v6035_v15 = vadd.f32 %v11513_v51, %v5830_v1  ;;  %v11773_v36 = vld [vmem:[#allocation41_spill] sm:$0xff]  ;;  %v6464_v51 = vld [vmem:[%s11578_s15 + $0x50] sm:$0xff] }
 0x600   : >> { %11770 = vst [vmem:[#allocation53_spill] sm:$0xff] %v11537_v61  ;;  %v8914_v9 = vpop.f32.mrf.mxu0  ;;  %v5841_v42 = vadd.f32 %v11499_v34, %v5639_v58  ;;  %v5839_v16 = vadd.f32 %v11771_v10, %v5637_v0  ;;  %v6244_v43 = vadd.f32 %v8945_v38, %v6042_v3  ;;  %v5842_v30 = vadd.f32 %v11772_v17, %v5640_v18  ;;  %v6457_v48 = vld [vmem:[%s11578_s15 + $0x18] sm:$0xff]  ;;  %v11779_v23 = vld [vmem:[#allocation44_spill] sm:$0xff]  ;;  %v11780_v0 = vld [vmem:[#allocation47_spill] sm:$0xff] }
 0x601   : >> { %v11541_v46 = vpop.f32.mrf.mxu1  ;;  %v6043_v2 = vadd.f32 %v8914_v9, %v5838_v22  ;;  %v6234_v13 = vadd.f32 %v11773_v36, %v6032_v41  ;;  %v6033_v47 = vadd.f32 %v11774_v52, %v5828_v44  ;;  %v5840_v11 = vadd.f32 %v11775_v7, %v5638_v12  ;;  %v6465_v22 = vld [vmem:[%s11578_s15 + $0x58] sm:$0xff] }
 0x602   : >> { %v6004_v31 = vpop.f32.mrf.mxu0  ;;  %v6237_v57 = vadd.f32 %v11777_v28, %v6035_v15  ;;  %v6038_v19 = vadd.f32 %v11778_v20, %v5833_v54  ;;  %v6036_v3 = vadd.f32 %v11780_v0, %v5831_v32  ;;  %v11781_v32 = vld [vmem:[#allocation46_spill] sm:$0xff] }
 0x603   : >> { %v11546_v53 = vpop.f32.mrf.mxu1  ;;  %v6041_v60 = vadd.f32 %v6004_v31, %v5836_v39  ;;  %v6245_v31 = vadd.f32 %v11541_v46, %v6043_v2  ;;  %v6235_v58 = vadd.f32 %v11779_v23, %v6033_v47  ;;  %v11784_v47 = vld [vmem:[#allocation51_spill] sm:$0xff] }
 0x604   : >> { %v11549_v61 = vpop.f32.mrf.mxu0  ;;  %v6240_v15 = vadd.f32 %v11781_v32, %v6038_v19  ;;  %v6459_v23 = vld [vmem:[%s11578_s15 + $0x28] sm:$0xff] }
 0x605   : >> { %v11553_v63 = vpop.f32.mrf.mxu1  ;;  %v6046_v50 = vadd.f32 %v11549_v61, %v5841_v42  ;;  %v6243_v46 = vadd.f32 %v11546_v53, %v6041_v60  ;;  %v11782_v42 = vld [vmem:[#allocation49_spill] sm:$0xff] }
 0x606   : >> { %v11558_v24 = vpop.f32.mrf.mxu0  ;;  %v6039_v10 = vadd.f32 %v11782_v42, %v5834_v55  ;;  %v11783_v55 = vld [vmem:[#allocation48_spill] sm:$0xff] }
 0x607   : >> { %v11564_v4 = vpop.f32.mrf.mxu1  ;;  %v11776_v34 = vld [vmem:[#allocation53_spill] sm:$0xff]  ;;  %v6044_v61 = vadd.f32 %v11558_v24, %v5839_v16  ;;  %v6248_v24 = vadd.f32 %v11553_v63, %v6046_v50  ;;  %v6238_v52 = vadd.f32 %v11783_v55, %v6036_v3 }
 0x608   : >> { %v11568_v37 = vpop.f32.mrf.mxu0  ;;  %v6242_v62 = vadd.f32 %v11776_v34, %v6040_v25 }
 0x609   : >> { %v11573_v45 = vpop.f32.mrf.mxu1  ;;  %v6047_v16 = vadd.f32 %v11568_v37, %v5842_v30  ;;  %v6468_v37 = vld [vmem:[%s11578_s15 + $0x70] sm:$0xff]  ;;  %v6246_v30 = vadd.f32 %v11564_v4, %v6044_v61  ;;  %v6466_v4 = vld [vmem:[%s11578_s15 + $0x60] sm:$0xff] }
 0x60a   : >> { %v11584_v6 = vpop.f32.mrf.mxu0 }
 0x60b   : >> { %v11592_v40 = vpop.f32.mrf.mxu1  ;;  %v6045_v7 = vadd.f32 %v11584_v6, %v5840_v11  ;;  %v6249_v6 = vadd.f32 %v11573_v45, %v6047_v16 }
 0x60c   : >> { %v8969_v59 = vpop.f32.mrf.mxu0 }
 0x60d   : >> { %v6438_v5 = vadd.f32 %v8969_v59, %v6236_v49  ;;  %v8977_v8 = vpop.f32.mrf.mxu1  ;;  %v6455_v49 = vld [vmem:[%s11578_s15 + $0x8] sm:$0xff]  ;;  %v6247_v45 = vadd.f32 %v11592_v40, %v6045_v7 }
 0x60e   : >> { %v6446_v38 = vadd.f32 %v8977_v8, %v6244_v43  ;;  %v6373_v9 = vpop.f32.mrf.mxu0  ;;  %v6463_v59 = vld [vmem:[%s11578_s15 + $0x48] sm:$0xff] }
 0x60f   : >> { %v6472_v56 = vadd.f32 %v6456_v27, %v6438_v5  ;;  %v6436_v1 = vadd.f32 %v6373_v9, %v6234_v13  ;;  %v6405_v26 = vpop.f32.mrf.mxu1  ;;  %v6460_v13 = vld [vmem:[%s11578_s15 + $0x30] sm:$0xff]  ;;  %v6037_v5 = vadd.f32 %v11784_v47, %v11587_v14  ;;  %v6458_v14 = vld [vmem:[%s11578_s15 + $0x20] sm:$0xff] }
 0x610   : >> { %v6480_v44 = vadd.f32 %v6464_v51, %v6446_v38  ;;  %v6444_v29 = vadd.f32 %v6405_v26, %v6242_v62  ;;  %v8970_v35 = vpop.f32.mrf.mxu0  ;;  %v11785_v38 = vld [vmem:[#allocation50_spill] sm:$0xff] }
 0x611   : >> { %6490 = vst.msk [vmem:[%s11606_s16 + $0x10] sm:$0xff] %vm6487_vm2, %v6472_v56  ;;  %v6470_v54 = vadd.f32 %v6454_v33, %v6436_v1  ;;  %v6439_v18 = vadd.f32 %v8970_v35, %v6237_v57  ;;  %v8978_v41 = vpop.f32.mrf.mxu1  ;;  %v6241_v9 = vadd.f32 %v11785_v38, %v6039_v10  ;;  %v6461_v56 = vld [vmem:[%s11578_s15 + $0x38] sm:$0xff]  ;;  %v11786_v1 = vld [vmem:[#allocation52_spill] sm:$0xff] }
 0x612   : >> { %6498 = vst.msk [vmem:[%s11606_s16 + $0x50] sm:$0xff] %vm6487_vm2, %v6480_v44  ;;  %v6478_v12 = vadd.f32 %v6462_v21, %v6444_v29  ;;  %v6447_v25 = vadd.f32 %v8978_v41, %v6245_v31  ;;  %v6376_v39 = vpop.f32.mrf.mxu0  ;;  %v6239_v26 = vadd.f32 %v11786_v1, %v6037_v5  ;;  %v6469_v44 = vld [vmem:[%s11578_s15 + $0x78] sm:$0xff] }
 0x613   : >> { %6488 = vst.msk [vmem:[%s11606_s16] sm:$0xff] %vm6487_vm2, %v6470_v54  ;;  %v6473_v43 = vadd.f32 %v6457_v48, %v6439_v18  ;;  %v6437_v2 = vadd.f32 %v6376_v39, %v6235_v58  ;;  %v6408_v53 = vpop.f32.mrf.mxu1  ;;  %v6467_v54 = vld [vmem:[%s11578_s15 + $0x68] sm:$0xff] }
 0x614   : >> { %6496 = vst.msk [vmem:[%s11606_s16 + $0x40] sm:$0xff] %vm6487_vm2, %v6478_v12  ;;  %v6481_v27 = vadd.f32 %v6465_v22, %v6447_v25  ;;  %v6445_v17 = vadd.f32 %v6408_v53, %v6243_v46  ;;  %v8973_v36 = vpop.f32.mrf.mxu0 }
 0x615   : >> { %6491 = vst.msk [vmem:[%s11606_s16 + $0x18] sm:$0xff] %vm6487_vm2, %v6473_v43  ;;  %v6471_v8 = vadd.f32 %v6455_v49, %v6437_v2  ;;  %v6442_v63 = vadd.f32 %v8973_v36, %v6240_v15  ;;  %v8981_v51 = vpop.f32.mrf.mxu1 }
 0x616   : >> { %6499 = vst.msk [vmem:[%s11606_s16 + $0x58] sm:$0xff] %vm6487_vm2, %v6481_v27  ;;  %v6479_v34 = vadd.f32 %v6463_v59, %v6445_v17  ;;  %v6450_v62 = vadd.f32 %v8981_v51, %v6248_v24  ;;  %v6389_v60 = vpop.f32.mrf.mxu0 }
 0x617   : >> { %6489 = vst.msk [vmem:[%s11606_s16 + $0x8] sm:$0xff] %vm6487_vm2, %v6471_v8  ;;  %v6476_v33 = vadd.f32 %v6460_v13, %v6442_v63  ;;  %v6440_v28 = vadd.f32 %v6389_v60, %v6238_v52  ;;  %v6421_v57 = vpop.f32.mrf.mxu1 }
 0x618   : >> { %6497 = vst.msk [vmem:[%s11606_s16 + $0x48] sm:$0xff] %vm6487_vm2, %v6479_v34  ;;  %v6484_v11 = vadd.f32 %v6468_v37, %v6450_v62  ;;  %v6448_v20 = vadd.f32 %v6421_v57, %v6246_v30  ;;  %v8974_v19 = vpop.f32.mrf.mxu0 }
 0x619   : >> { %6494 = vst.msk [vmem:[%s11606_s16 + $0x30] sm:$0xff] %vm6487_vm2, %v6476_v33  ;;  %v6474_v21 = vadd.f32 %v6458_v14, %v6440_v28  ;;  %v6443_v31 = vadd.f32 %v8974_v19, %v6241_v9  ;;  %v8982_v50 = vpop.f32.mrf.mxu1 }
 0x61a   : >> { %6502 = vst.msk [vmem:[%s11606_s16 + $0x70] sm:$0xff] %vm6487_vm2, %v6484_v11  ;;  %v6482_v29 = vadd.f32 %v6466_v4, %v6448_v20  ;;  %v6451_v35 = vadd.f32 %v8982_v50, %v6249_v6  ;;  %v6392_v48 = vpop.f32.mrf.mxu0 }
 0x61b   : >> { %6492 = vst.msk [vmem:[%s11606_s16 + $0x20] sm:$0xff] %vm6487_vm2, %v6474_v21  ;;  %v6477_v58 = vadd.f32 %v6461_v56, %v6443_v31  ;;  %v6441_v0 = vadd.f32 %v6392_v48, %v6239_v26  ;;  %v6424_v3 = vpop.f32.mrf.mxu1 }
 0x61c   : >> { %6500 = vst.msk [vmem:[%s11606_s16 + $0x60] sm:$0xff] %vm6487_vm2, %v6482_v29  ;;  %v6485_v18 = vadd.f32 %v6469_v44, %v6451_v35  ;;  %v6449_v41 = vadd.f32 %v6424_v3, %v6247_v45  ;;  %4656 = sbr.rel (!%p4654_p8) target bundleno = 1195 (0x4ab), region = 197 }
 0x61d   : >> { %6495 = vst.msk [vmem:[%s11606_s16 + $0x38] sm:$0xff] %vm6487_vm2, %v6477_v58  ;;  %v6475_v40 = vadd.f32 %v6459_v23, %v6441_v0 }
 0x61e   : >> { %6503 = vst.msk [vmem:[%s11606_s16 + $0x78] sm:$0xff] %vm6487_vm2, %v6485_v18  ;;  %v6483_v22 = vadd.f32 %v6467_v54, %v6449_v41 }
 0x61f   : >> { %6493 = vst.msk [vmem:[%s11606_s16 + $0x28] sm:$0xff] %vm6487_vm2, %v6475_v40 }
 0x620   : >> { %6501 = vst.msk [vmem:[%s11606_s16 + $0x68] sm:$0xff] %vm6487_vm2, %v6483_v22 }
 0x621 PF: > { %s16_s21 = sadd.s32 1, %s9341_s21  }
 0x622   : > { %p13_p9 = scmp.ge.s32.totalorder %s16_s21, 4  }
 0x624   :  { %15 = sbr.rel (!%p13_p9) target bundleno = 1 (0x1), region = 208 }

</bundles_post_ra>
